<compile_context>
chip_gen: v6e
topology: v6e:2x2x1
jax: 0.10.0
libtpu: 0.0.40
codegen_flags: <defaults>
</compile_context>

<pallas_src>
import jax
import jax.numpy as jnp
from jax.experimental import pallas as pl
from jax.experimental.pallas import tpu as pltpu

# ---------------- model config (matches the PyTorch script) ----------------
HIDDEN_LAYER_SIZE = 64
NUM_HIDDEN_LAYERS = 4
HIDDEN_LAYERS = [HIDDEN_LAYER_SIZE * 2 ** i for i in range(NUM_HIDDEN_LAYERS)]  # [64,128,256,512]

INPUT_DIM = 16
LATENT_DIM = 8
CONDITION_DIM = 4

TB = 256                                  # batch tile (fills MXU rows on v6e/v7x)
BATCH = 512                               # 2 batch tiles -> grid=(2,) (2 TCs on v7x)
OUT_WIDTH = INPUT_DIM + 2 * LATENT_DIM    # packed output: recon(16) | mu(8) | logvar(8)

# Bias slab layout: every bias starts at a 128-lane-aligned offset. (offset, width)
_BIAS_LAYOUT = {
    "eb0": (0, 64), "eb1": (128, 128), "eb2": (256, 256), "eb3": (512, 512),
    "bhead": (1024, 16),  # fused [b_mu | b_logvar]
    "db0": (1152, 512), "db1": (1664, 256), "db2": (1920, 128),
    "db3": (2048, 64), "db4": (2176, 16),
}
_BIAS_SLAB_WIDTH = 2304

# Weight slab row layout (rows = contraction dim of each Linear, lanes = out dim):
#   w512 : [  0:256] enc3 (256->512) | [256:268] dec0 ( 12->512)
#   w256 : [  0:128] enc2 (128->256) | [128:640] dec1 (512->256)
#   w128 : [  0: 64] enc1 ( 64->128) | [ 64:320] dec2 (256->128)
#   w64  : [  0: 16] enc0 ( 16-> 64) | [ 16:144] dec3 (128-> 64)
#   w16  : [  0:512] head (512-> 16) | [512:576] dec4 ( 64-> 16)


def cvae_kernel(x_ref, cond_ref, eps_ref,
                w512_ref, w256_ref, w128_ref, w64_ref, w16_ref, bias_ref,
                out_ref):
    f32 = jnp.float32
    bf16 = jnp.bfloat16

    def dense(h, w, bias_name, relu):
        off, width = _BIAS_LAYOUT[bias_name]
        y = jnp.dot(h.astype(bf16), w, preferred_element_type=f32)
        y = y + bias_ref[:, off:off + width]
        # TODO(synk): activation_function is injected in the PyTorch ctor; ReLU assumed.
        return jnp.maximum(y, 0.0) if relu else y

    # ---- encoder ----
    h = x_ref[...]                                   # [TB, 16] f32
    h = dense(h, w64_ref[0:16, :],   "eb0", True)    # 16  -> 64
    h = dense(h, w128_ref[0:64, :],  "eb1", True)    # 64  -> 128
    h = dense(h, w256_ref[0:128, :], "eb2", True)    # 128 -> 256
    h = dense(h, w512_ref[0:256, :], "eb3", True)    # 256 -> 512

    # ---- fused latent heads: one [512,16] matmul -> mu | logvar ----
    head = dense(h, w16_ref[0:512, :], "bhead", False)   # [TB, 16]
    mu = head[:, :LATENT_DIM]
    logvar = head[:, LATENT_DIM:]

    # ---- reparameterize (training mode) ----
    z = mu + eps_ref[...] * jnp.exp(0.5 * logvar)

    # ---- decoder (single unsplit [12,512] first-layer matmul) ----
    zc = jnp.concatenate([z, cond_ref[...]], axis=1)      # [TB, 12]
    d = dense(zc, w512_ref[256:268, :], "db0", True)      # 12  -> 512
    d = dense(d, w256_ref[128:640, :],  "db1", True)      # 512 -> 256
    d = dense(d, w128_ref[64:320, :],   "db2", True)      # 256 -> 128
    d = dense(d, w64_ref[16:144, :],    "db3", True)      # 128 -> 64
    recon = dense(d, w16_ref[512:576, :], "db4", False)   # 64  -> 16

    # lane-contiguous packed output: recon | mu | logvar
    out_ref[...] = jnp.concatenate([recon, mu, logvar], axis=1)


# ---------------------------- parameter handling ----------------------------
def _init_linear(key, fan_in, fan_out):
    """PyTorch-nn.Linear-style uniform init, weight pre-transposed to [in, out]."""
    bound = float(fan_in) ** -0.5
    kw, kb = jax.random.split(key)
    w = jax.random.uniform(kw, (fan_in, fan_out), jnp.float32, -bound, bound)
    b = jax.random.uniform(kb, (fan_out,), jnp.float32, -bound, bound)
    return w, b


def init_raw_params(key):
    """Returns 11 (w, b) f32 pairs: enc0..enc3, fc_mu, fc_logvar, dec0..dec4."""
    keys = jax.random.split(key, 11)
    layers = []
    ki = 0
    dims = [INPUT_DIM] + HIDDEN_LAYERS
    for i in range(NUM_HIDDEN_LAYERS):                       # encoder
        layers.append(_init_linear(keys[ki], dims[i], dims[i + 1])); ki += 1
    layers.append(_init_linear(keys[ki], HIDDEN_LAYERS[-1], LATENT_DIM)); ki += 1  # fc_mu
    layers.append(_init_linear(keys[ki], HIDDEN_LAYERS[-1], LATENT_DIM)); ki += 1  # fc_logvar
    layers.append(_init_linear(keys[ki], LATENT_DIM + CONDITION_DIM,
                               HIDDEN_LAYERS[-1])); ki += 1                         # dec first
    for i in reversed(range(NUM_HIDDEN_LAYERS - 1)):          # 512->256->128->64
        layers.append(_init_linear(keys[ki], HIDDEN_LAYERS[i + 1], HIDDEN_LAYERS[i])); ki += 1
    layers.append(_init_linear(keys[ki], HIDDEN_LAYERS[0], INPUT_DIM)); ki += 1     # dec out
    return layers


def pack_params(raw):
    """Pack into 5 bf16 weight slabs (grouped by out-lane width) + 1 f32 bias slab."""
    (ew0, eb0), (ew1, eb1), (ew2, eb2), (ew3, eb3) = raw[0:4]
    (wmu, bmu), (wlv, blv) = raw[4:6]
    (dw0, db0), (dw1, db1), (dw2, db2), (dw3, db3), (dw4, db4) = raw[6:11]

    whead = jnp.concatenate([wmu, wlv], axis=1)   # [512, 16]
    bhead = jnp.concatenate([bmu, blv], axis=0)   # [16]

    bf16 = jnp.bfloat16
    w512 = jnp.concatenate([ew3, dw0], axis=0).astype(bf16)    # [268, 512]
    w256 = jnp.concatenate([ew2, dw1], axis=0).astype(bf16)    # [640, 256]
    w128 = jnp.concatenate([ew1, dw2], axis=0).astype(bf16)    # [320, 128]
    w64 = jnp.concatenate([ew0, dw3], axis=0).astype(bf16)     # [144, 64]
    w16 = jnp.concatenate([whead, dw4], axis=0).astype(bf16)   # [576, 16]

    bias = jnp.zeros((1, _BIAS_SLAB_WIDTH), jnp.float32)
    for name, vec in (("eb0", eb0), ("eb1", eb1), ("eb2", eb2), ("eb3", eb3),
                      ("bhead", bhead), ("db0", db0), ("db1", db1),
                      ("db2", db2), ("db3", db3), ("db4", db4)):
        off, width = _BIAS_LAYOUT[name]
        bias = bias.at[0, off:off + width].set(vec)

    return (w512, w256, w128, w64, w16, bias)


# ------------------------------- forward call --------------------------------
def cvae_forward(x, condition, eps, packed, tb=TB):
    B = x.shape[0]
    Bp = ((B + tb - 1) // tb) * tb
    if Bp != B:
        pad = ((0, Bp - B), (0, 0))
        x = jnp.pad(x, pad)
        condition = jnp.pad(condition, pad)
        eps = jnp.pad(eps, pad)

    w512, w256, w128, w64, w16, bias = packed

    def data_spec(width):
        return pl.BlockSpec((tb, width), lambda i: (i, 0))

    def param_spec(arr):
        # Full-array block, constant index -> stays VMEM-resident across grid steps.
        return pl.BlockSpec(arr.shape, lambda i: (0, 0))

    out = pl.pallas_call(
        cvae_kernel,
        out_shape=jax.ShapeDtypeStruct((Bp, OUT_WIDTH), jnp.float32),
        grid=(Bp // tb,),
        in_specs=[
            data_spec(INPUT_DIM), data_spec(CONDITION_DIM), data_spec(LATENT_DIM),
            param_spec(w512), param_spec(w256), param_spec(w128),
            param_spec(w64), param_spec(w16), param_spec(bias),
        ],
        out_specs=pl.BlockSpec((tb, OUT_WIDTH), lambda i: (i, 0)),
        compiler_params=pltpu.CompilerParams(
            dimension_semantics=("parallel",),   # v7x: batch tiles across both TCs
        ),
    )(x, condition, eps, w512, w256, w128, w64, w16, bias)

    recon = out[:B, :INPUT_DIM]
    mu = out[:B, INPUT_DIM:INPUT_DIM + LATENT_DIM]
    logvar = out[:B, INPUT_DIM + LATENT_DIM:]
    return recon, mu, logvar


# --------------------------- pure-JAX f32 reference ---------------------------
def cvae_reference(x, cond, eps, raw):
    relu = lambda t: jnp.maximum(t, 0.0)
    h = x
    for w, b in raw[0:4]:
        h = relu(h @ w + b)
    wmu, bmu = raw[4]
    wlv, blv = raw[5]
    mu = h @ wmu + bmu
    logvar = h @ wlv + blv
    z = mu + eps * jnp.exp(0.5 * logvar)
    d = jnp.concatenate([z, cond], axis=1)
    for w, b in raw[6:10]:
        d = relu(d @ w + b)
    w, b = raw[10]
    recon = d @ w + b
    return recon, mu, logvar


if __name__ == "__main__":
    key = jax.random.PRNGKey(0)
    k_params, k_x, k_cond, k_eps = jax.random.split(key, 4)

    raw_params = init_raw_params(k_params)
    packed = pack_params(raw_params)

    x = jax.random.normal(k_x, (BATCH, INPUT_DIM), jnp.float32)
    condition = jax.random.normal(k_cond, (BATCH, CONDITION_DIM), jnp.float32)
    eps = jax.random.normal(k_eps, (BATCH, LATENT_DIM), jnp.float32)

    recon_x, mu, logvar = cvae_forward(x, condition, eps, packed)
    jax.block_until_ready((recon_x, mu, logvar))

    assert recon_x.shape == (BATCH, INPUT_DIM)
    assert mu.shape == (BATCH, LATENT_DIM)
    assert logvar.shape == (BATCH, LATENT_DIM)

    # Sanity check against the f32 reference (loose tolerance: weights are bf16).
    r_ref, m_ref, lv_ref = cvae_reference(x, condition, eps, raw_params)
    for got, ref in ((recon_x, r_ref), (mu, m_ref), (logvar, lv_ref)):
        err = float(jnp.max(jnp.abs(got - ref)))
        bound = 1e-2 + 5e-2 * (float(jnp.max(jnp.abs(ref))) + 1e-6)
        assert jnp.isfinite(err) and err < bound, (err, bound)

    print("KERNEL_OK")
</pallas_src>

<mosaic_0001>
module attributes {stable_mosaic.version = 11 : i64} {
  func.func @cvae_kernel(%arg0: i32, %arg1: memref<256x16xf32, #tpu.memory_space<vmem>>, %arg2: memref<256x4xf32, #tpu.memory_space<vmem>>, %arg3: memref<256x8xf32, #tpu.memory_space<vmem>>, %arg4: memref<268x512xbf16, #tpu.memory_space<vmem>>, %arg5: memref<640x256xbf16, #tpu.memory_space<vmem>>, %arg6: memref<320x128xbf16, #tpu.memory_space<vmem>>, %arg7: memref<144x64xbf16, #tpu.memory_space<vmem>>, %arg8: memref<576x16xbf16, #tpu.memory_space<vmem>>, %arg9: memref<1x2304xf32, #tpu.memory_space<vmem>>, %arg10: memref<256x32xf32, #tpu.memory_space<vmem>>) attributes {dimension_semantics = [#tpu.dimension_semantics<parallel>], iteration_bounds = array<i64: 2>, scalar_prefetch = 0 : i64, scratch_operands = 0 : i64, tpu.core_type = #tpu.core_type<tc>, window_params = [{transform_indices = @transform_0, window_bounds = array<i64: 256, 16>}, {transform_indices = @transform_1, window_bounds = array<i64: 256, 4>}, {transform_indices = @transform_2, window_bounds = array<i64: 256, 8>}, {pipeline_mode = #tpu.pipeline_mode<synchronous>, transform_indices = @transform_3, window_bounds = array<i64: 268, 512>}, {pipeline_mode = #tpu.pipeline_mode<synchronous>, transform_indices = @transform_4, window_bounds = array<i64: 640, 256>}, {pipeline_mode = #tpu.pipeline_mode<synchronous>, transform_indices = @transform_5, window_bounds = array<i64: 320, 128>}, {pipeline_mode = #tpu.pipeline_mode<synchronous>, transform_indices = @transform_6, window_bounds = array<i64: 144, 64>}, {pipeline_mode = #tpu.pipeline_mode<synchronous>, transform_indices = @transform_7, window_bounds = array<i64: 576, 16>}, {pipeline_mode = #tpu.pipeline_mode<synchronous>, transform_indices = @transform_8, window_bounds = array<i64: 1, 2304>}, {transform_indices = @transform_9, window_bounds = array<i64: 256, 32>}]} {
    %c0 = arith.constant 0 : index
    %c0_0 = arith.constant 0 : index
    %0 = vector.load %arg1[%c0, %c0_0] : memref<256x16xf32, #tpu.memory_space<vmem>>, vector<256x16xf32>
    %c0_1 = arith.constant 0 : index
    %c0_2 = arith.constant 0 : index
    %1 = vector.load %arg7[%c0_1, %c0_2] : memref<144x64xbf16, #tpu.memory_space<vmem>>, vector<16x64xbf16>
    %2 = arith.truncf %0 : vector<256x16xf32> to vector<256x16xbf16>
    %cst = arith.constant dense<0.000000e+00> : vector<256x64xf32>
    %3 = tpu.matmul %2, %1, %cst {dimension_numbers = #tpu.dot_dimension_numbers<[1], [0], [0], [1], [0, 0, 1, 1], [], []>} : vector<256x16xbf16>, vector<16x64xbf16>, vector<256x64xf32> -> vector<256x64xf32>
    %c0_3 = arith.constant 0 : index
    %c0_4 = arith.constant 0 : index
    %4 = vector.load %arg9[%c0_3, %c0_4] : memref<1x2304xf32, #tpu.memory_space<vmem>>, vector<1x64xf32>
    %5 = vector.broadcast %4 : vector<1x64xf32> to vector<256x64xf32>
    %6 = arith.addf %3, %5 : vector<256x64xf32>
    %cst_5 = arith.constant 0.000000e+00 : f32
    %7 = vector.broadcast %cst_5 : f32 to vector<256x64xf32>
    %8 = arith.maximumf %6, %7 : vector<256x64xf32>
    %c0_6 = arith.constant 0 : index
    %c0_7 = arith.constant 0 : index
    %9 = vector.load %arg6[%c0_6, %c0_7] : memref<320x128xbf16, #tpu.memory_space<vmem>>, vector<64x128xbf16>
    %10 = arith.truncf %8 : vector<256x64xf32> to vector<256x64xbf16>
    %cst_8 = arith.constant dense<0.000000e+00> : vector<256x128xf32>
    %11 = tpu.matmul %10, %9, %cst_8 {dimension_numbers = #tpu.dot_dimension_numbers<[1], [0], [0], [1], [0, 0, 1, 1], [], []>} : vector<256x64xbf16>, vector<64x128xbf16>, vector<256x128xf32> -> vector<256x128xf32>
    %c0_9 = arith.constant 0 : index
    %c128 = arith.constant 128 : index
    %12 = vector.load %arg9[%c0_9, %c128] : memref<1x2304xf32, #tpu.memory_space<vmem>>, vector<1x128xf32>
    %13 = vector.broadcast %12 : vector<1x128xf32> to vector<256x128xf32>
    %14 = arith.addf %11, %13 : vector<256x128xf32>
    %cst_10 = arith.constant 0.000000e+00 : f32
    %15 = vector.broadcast %cst_10 : f32 to vector<256x128xf32>
    %16 = arith.maximumf %14, %15 : vector<256x128xf32>
    %c0_11 = arith.constant 0 : index
    %c0_12 = arith.constant 0 : index
    %17 = vector.load %arg5[%c0_11, %c0_12] : memref<640x256xbf16, #tpu.memory_space<vmem>>, vector<128x256xbf16>
    %18 = arith.truncf %16 : vector<256x128xf32> to vector<256x128xbf16>
    %cst_13 = arith.constant dense<0.000000e+00> : vector<256x256xf32>
    %19 = tpu.matmul %18, %17, %cst_13 {dimension_numbers = #tpu.dot_dimension_numbers<[1], [0], [0], [1], [0, 0, 1, 1], [], []>} : vector<256x128xbf16>, vector<128x256xbf16>, vector<256x256xf32> -> vector<256x256xf32>
    %c0_14 = arith.constant 0 : index
    %c256 = arith.constant 256 : index
    %20 = vector.load %arg9[%c0_14, %c256] : memref<1x2304xf32, #tpu.memory_space<vmem>>, vector<1x256xf32>
    %21 = vector.broadcast %20 : vector<1x256xf32> to vector<256x256xf32>
    %22 = arith.addf %19, %21 : vector<256x256xf32>
    %cst_15 = arith.constant 0.000000e+00 : f32
    %23 = vector.broadcast %cst_15 : f32 to vector<256x256xf32>
    %24 = arith.maximumf %22, %23 : vector<256x256xf32>
    %c0_16 = arith.constant 0 : index
    %c0_17 = arith.constant 0 : index
    %25 = vector.load %arg4[%c0_16, %c0_17] : memref<268x512xbf16, #tpu.memory_space<vmem>>, vector<256x512xbf16>
    %26 = arith.truncf %24 : vector<256x256xf32> to vector<256x256xbf16>
    %cst_18 = arith.constant dense<0.000000e+00> : vector<256x512xf32>
    %27 = tpu.matmul %26, %25, %cst_18 {dimension_numbers = #tpu.dot_dimension_numbers<[1], [0], [0], [1], [0, 0, 1, 1], [], []>} : vector<256x256xbf16>, vector<256x512xbf16>, vector<256x512xf32> -> vector<256x512xf32>
    %c0_19 = arith.constant 0 : index
    %c512 = arith.constant 512 : index
    %28 = vector.load %arg9[%c0_19, %c512] : memref<1x2304xf32, #tpu.memory_space<vmem>>, vector<1x512xf32>
    %29 = vector.broadcast %28 : vector<1x512xf32> to vector<256x512xf32>
    %30 = arith.addf %27, %29 : vector<256x512xf32>
    %cst_20 = arith.constant 0.000000e+00 : f32
    %31 = vector.broadcast %cst_20 : f32 to vector<256x512xf32>
    %32 = arith.maximumf %30, %31 : vector<256x512xf32>
    %c0_21 = arith.constant 0 : index
    %c0_22 = arith.constant 0 : index
    %33 = vector.load %arg8[%c0_21, %c0_22] : memref<576x16xbf16, #tpu.memory_space<vmem>>, vector<512x16xbf16>
    %34 = arith.truncf %32 : vector<256x512xf32> to vector<256x512xbf16>
    %cst_23 = arith.constant dense<0.000000e+00> : vector<256x16xf32>
    %35 = tpu.matmul %34, %33, %cst_23 {dimension_numbers = #tpu.dot_dimension_numbers<[1], [0], [0], [1], [0, 0, 1, 1], [], []>} : vector<256x512xbf16>, vector<512x16xbf16>, vector<256x16xf32> -> vector<256x16xf32>
    %c0_24 = arith.constant 0 : index
    %c1024 = arith.constant 1024 : index
    %36 = vector.load %arg9[%c0_24, %c1024] : memref<1x2304xf32, #tpu.memory_space<vmem>>, vector<1x16xf32>
    %37 = vector.broadcast %36 : vector<1x16xf32> to vector<256x16xf32>
    %38 = arith.addf %35, %37 : vector<256x16xf32>
    %39 = vector.extract_strided_slice %38 {offsets = [0, 0], sizes = [256, 8], strides = [1, 1]} : vector<256x16xf32> to vector<256x8xf32>
    %40 = vector.extract_strided_slice %38 {offsets = [0, 8], sizes = [256, 8], strides = [1, 1]} : vector<256x16xf32> to vector<256x8xf32>
    %c0_25 = arith.constant 0 : index
    %c0_26 = arith.constant 0 : index
    %41 = vector.load %arg3[%c0_25, %c0_26] : memref<256x8xf32, #tpu.memory_space<vmem>>, vector<256x8xf32>
    %cst_27 = arith.constant 5.000000e-01 : f32
    %42 = vector.broadcast %cst_27 : f32 to vector<256x8xf32>
    %43 = arith.mulf %42, %40 : vector<256x8xf32>
    %44 = math.exp %43 : vector<256x8xf32>
    %45 = arith.mulf %41, %44 : vector<256x8xf32>
    %46 = arith.addf %39, %45 : vector<256x8xf32>
    %c0_28 = arith.constant 0 : index
    %c0_29 = arith.constant 0 : index
    %47 = vector.load %arg2[%c0_28, %c0_29] : memref<256x4xf32, #tpu.memory_space<vmem>>, vector<256x4xf32>
    %48 = tpu.concatenate %46, %47 in 1 : vector<256x8xf32>, vector<256x4xf32> -> vector<256x12xf32>
    %c256_30 = arith.constant 256 : index
    %c0_31 = arith.constant 0 : index
    %49 = vector.load %arg4[%c256_30, %c0_31] : memref<268x512xbf16, #tpu.memory_space<vmem>>, vector<12x512xbf16>
    %50 = arith.truncf %48 : vector<256x12xf32> to vector<256x12xbf16>
    %cst_32 = arith.constant dense<0.000000e+00> : vector<256x512xf32>
    %51 = tpu.matmul %50, %49, %cst_32 {dimension_numbers = #tpu.dot_dimension_numbers<[1], [0], [0], [1], [0, 0, 1, 1], [], []>} : vector<256x12xbf16>, vector<12x512xbf16>, vector<256x512xf32> -> vector<256x512xf32>
    %c0_33 = arith.constant 0 : index
    %c1152 = arith.constant 1152 : index
    %52 = vector.load %arg9[%c0_33, %c1152] : memref<1x2304xf32, #tpu.memory_space<vmem>>, vector<1x512xf32>
    %53 = vector.broadcast %52 : vector<1x512xf32> to vector<256x512xf32>
    %54 = arith.addf %51, %53 : vector<256x512xf32>
    %cst_34 = arith.constant 0.000000e+00 : f32
    %55 = vector.broadcast %cst_34 : f32 to vector<256x512xf32>
    %56 = arith.maximumf %54, %55 : vector<256x512xf32>
    %c128_35 = arith.constant 128 : index
    %c0_36 = arith.constant 0 : index
    %57 = vector.load %arg5[%c128_35, %c0_36] : memref<640x256xbf16, #tpu.memory_space<vmem>>, vector<512x256xbf16>
    %58 = arith.truncf %56 : vector<256x512xf32> to vector<256x512xbf16>
    %cst_37 = arith.constant dense<0.000000e+00> : vector<256x256xf32>
    %59 = tpu.matmul %58, %57, %cst_37 {dimension_numbers = #tpu.dot_dimension_numbers<[1], [0], [0], [1], [0, 0, 1, 1], [], []>} : vector<256x512xbf16>, vector<512x256xbf16>, vector<256x256xf32> -> vector<256x256xf32>
    %c0_38 = arith.constant 0 : index
    %c1664 = arith.constant 1664 : index
    %60 = vector.load %arg9[%c0_38, %c1664] : memref<1x2304xf32, #tpu.memory_space<vmem>>, vector<1x256xf32>
    %61 = vector.broadcast %60 : vector<1x256xf32> to vector<256x256xf32>
    %62 = arith.addf %59, %61 : vector<256x256xf32>
    %cst_39 = arith.constant 0.000000e+00 : f32
    %63 = vector.broadcast %cst_39 : f32 to vector<256x256xf32>
    %64 = arith.maximumf %62, %63 : vector<256x256xf32>
    %c64 = arith.constant 64 : index
    %c0_40 = arith.constant 0 : index
    %65 = vector.load %arg6[%c64, %c0_40] : memref<320x128xbf16, #tpu.memory_space<vmem>>, vector<256x128xbf16>
    %66 = arith.truncf %64 : vector<256x256xf32> to vector<256x256xbf16>
    %cst_41 = arith.constant dense<0.000000e+00> : vector<256x128xf32>
    %67 = tpu.matmul %66, %65, %cst_41 {dimension_numbers = #tpu.dot_dimension_numbers<[1], [0], [0], [1], [0, 0, 1, 1], [], []>} : vector<256x256xbf16>, vector<256x128xbf16>, vector<256x128xf32> -> vector<256x128xf32>
    %c0_42 = arith.constant 0 : index
    %c1920 = arith.constant 1920 : index
    %68 = vector.load %arg9[%c0_42, %c1920] : memref<1x2304xf32, #tpu.memory_space<vmem>>, vector<1x128xf32>
    %69 = vector.broadcast %68 : vector<1x128xf32> to vector<256x128xf32>
    %70 = arith.addf %67, %69 : vector<256x128xf32>
    %cst_43 = arith.constant 0.000000e+00 : f32
    %71 = vector.broadcast %cst_43 : f32 to vector<256x128xf32>
    %72 = arith.maximumf %70, %71 : vector<256x128xf32>
    %c16 = arith.constant 16 : index
    %c0_44 = arith.constant 0 : index
    %73 = vector.load %arg7[%c16, %c0_44] : memref<144x64xbf16, #tpu.memory_space<vmem>>, vector<128x64xbf16>
    %74 = arith.truncf %72 : vector<256x128xf32> to vector<256x128xbf16>
    %cst_45 = arith.constant dense<0.000000e+00> : vector<256x64xf32>
    %75 = tpu.matmul %74, %73, %cst_45 {dimension_numbers = #tpu.dot_dimension_numbers<[1], [0], [0], [1], [0, 0, 1, 1], [], []>} : vector<256x128xbf16>, vector<128x64xbf16>, vector<256x64xf32> -> vector<256x64xf32>
    %c0_46 = arith.constant 0 : index
    %c2048 = arith.constant 2048 : index
    %76 = vector.load %arg9[%c0_46, %c2048] : memref<1x2304xf32, #tpu.memory_space<vmem>>, vector<1x64xf32>
    %77 = vector.broadcast %76 : vector<1x64xf32> to vector<256x64xf32>
    %78 = arith.addf %75, %77 : vector<256x64xf32>
    %cst_47 = arith.constant 0.000000e+00 : f32
    %79 = vector.broadcast %cst_47 : f32 to vector<256x64xf32>
    %80 = arith.maximumf %78, %79 : vector<256x64xf32>
    %c512_48 = arith.constant 512 : index
    %c0_49 = arith.constant 0 : index
    %81 = vector.load %arg8[%c512_48, %c0_49] : memref<576x16xbf16, #tpu.memory_space<vmem>>, vector<64x16xbf16>
    %82 = arith.truncf %80 : vector<256x64xf32> to vector<256x64xbf16>
    %cst_50 = arith.constant dense<0.000000e+00> : vector<256x16xf32>
    %83 = tpu.matmul %82, %81, %cst_50 {dimension_numbers = #tpu.dot_dimension_numbers<[1], [0], [0], [1], [0, 0, 1, 1], [], []>} : vector<256x64xbf16>, vector<64x16xbf16>, vector<256x16xf32> -> vector<256x16xf32>
    %c0_51 = arith.constant 0 : index
    %c2176 = arith.constant 2176 : index
    %84 = vector.load %arg9[%c0_51, %c2176] : memref<1x2304xf32, #tpu.memory_space<vmem>>, vector<1x16xf32>
    %85 = vector.broadcast %84 : vector<1x16xf32> to vector<256x16xf32>
    %86 = arith.addf %83, %85 : vector<256x16xf32>
    %87 = tpu.concatenate %86, %39, %40 in 1 : vector<256x16xf32>, vector<256x8xf32>, vector<256x8xf32> -> vector<256x32xf32>
    %c0_52 = arith.constant 0 : index
    %c0_53 = arith.constant 0 : index
    %88 = vector.load %arg10[%c0_52, %c0_53] : memref<256x32xf32, #tpu.memory_space<vmem>>, vector<256x32xf32>
    tpu.vector_store %arg10[%c0_52, %c0_53], %87 {strides = array<i32>} : memref<256x32xf32, #tpu.memory_space<vmem>>, vector<256x32xf32>,
    return
  }
  func.func @transform_0(%arg0: i32) -> (i32, i32) {
    %c0_i32 = arith.constant 0 : i32
    %c0_i32_0 = arith.constant 0 : i32
    return %arg0, %c0_i32 : i32, i32
  }
  func.func @transform_1(%arg0: i32) -> (i32, i32) {
    %c0_i32 = arith.constant 0 : i32
    %c0_i32_0 = arith.constant 0 : i32
    return %arg0, %c0_i32 : i32, i32
  }
  func.func @transform_2(%arg0: i32) -> (i32, i32) {
    %c0_i32 = arith.constant 0 : i32
    %c0_i32_0 = arith.constant 0 : i32
    return %arg0, %c0_i32 : i32, i32
  }
  func.func @transform_3(%arg0: i32) -> (i32, i32) {
    %c0_i32 = arith.constant 0 : i32
    %c0_i32_0 = arith.constant 0 : i32
    %c0_i32_1 = arith.constant 0 : i32
    return %c0_i32, %c0_i32_0 : i32, i32
  }
  func.func @transform_4(%arg0: i32) -> (i32, i32) {
    %c0_i32 = arith.constant 0 : i32
    %c0_i32_0 = arith.constant 0 : i32
    %c0_i32_1 = arith.constant 0 : i32
    return %c0_i32, %c0_i32_0 : i32, i32
  }
  func.func @transform_5(%arg0: i32) -> (i32, i32) {
    %c0_i32 = arith.constant 0 : i32
    %c0_i32_0 = arith.constant 0 : i32
    %c0_i32_1 = arith.constant 0 : i32
    return %c0_i32, %c0_i32_0 : i32, i32
  }
  func.func @transform_6(%arg0: i32) -> (i32, i32) {
    %c0_i32 = arith.constant 0 : i32
    %c0_i32_0 = arith.constant 0 : i32
    %c0_i32_1 = arith.constant 0 : i32
    return %c0_i32, %c0_i32_0 : i32, i32
  }
  func.func @transform_7(%arg0: i32) -> (i32, i32) {
    %c0_i32 = arith.constant 0 : i32
    %c0_i32_0 = arith.constant 0 : i32
    %c0_i32_1 = arith.constant 0 : i32
    return %c0_i32, %c0_i32_0 : i32, i32
  }
  func.func @transform_8(%arg0: i32) -> (i32, i32) {
    %c0_i32 = arith.constant 0 : i32
    %c0_i32_0 = arith.constant 0 : i32
    %c0_i32_1 = arith.constant 0 : i32
    return %c0_i32, %c0_i32_0 : i32, i32
  }
  func.func @transform_9(%arg0: i32) -> (i32, i32) {
    %c0_i32 = arith.constant 0 : i32
    %c0_i32_0 = arith.constant 0 : i32
    return %arg0, %c0_i32 : i32, i32
  }
}

</mosaic_0001>

<bundles_post_ra>
// kernel: tpu_custom_call.1
= control target key start
LH: loop header
LB: loop body
LE: loop exit
PB: predicated region body
PF: predicated region fallthrough
CT: control target
= control target key end

     0   :  { %s7632_s30 = smov 0   ;;  %s9613_s0 = inlined_call_operand.vmem [shape: f32[512,16], index: 0, kind: input, shape index: {}]   ;;  %s9614_s1 = inlined_call_operand.vmem [shape: f32[512,4], index: 1, kind: input, shape index: {}]   ;;  %s9615_s2 = inlined_call_operand.vmem [shape: f32[512,8], index: 2, kind: input, shape index: {}]   ;;  %s9616_s3 = inlined_call_operand.vmem [shape: bf16[268,512], index: 3, kind: input, shape index: {}]   ;;  %s9617_s4 = inlined_call_operand.vmem [shape: bf16[640,256], index: 4, kind: input, shape index: {}]   ;;  %s9618_s5 = inlined_call_operand.vmem [shape: bf16[320,128], index: 5, kind: input, shape index: {}]   ;;  %s9619_s6 = inlined_call_operand.vmem [shape: bf16[144,64], index: 6, kind: input, shape index: {}]   ;;  %s9620_s7 = inlined_call_operand.vmem [shape: bf16[576,16], index: 7, kind: input, shape index: {}]   ;;  %s9621_s8 = inlined_call_operand.vmem [shape: f32[1,2304], index: 8, kind: input, shape index: {}]   ;;  %s9622_s9 = inlined_call_operand.vmem [shape: f32[512,32], index: 9, kind: output, shape index: {}]  }
   0x1 LB: > { %s6232_s10 = sadd.s32 4294967295, %s7576_s30   ;;  %p6236_p0 = scmp.ge.s32.totalorder %s7576_s30, 1  ;;  %s7576_s30 = sphi %s7632_s30, %s19_s30  }
   0x2   : > { %p310_p1 = scmp.lt.s32.totalorder %s7576_s30, 3 }
   0x4   : > { %p311_p2 = pnand %p6236_p0, %p310_p1 }
   0x5   : > { %s6237_s13 = sshll.u32 (!%p311_p2), %s6232_s10, 5  ;;  %s7580_s25 = smov (!%p311_p2), 120  }
   0x6   : > { %314 = sbr.rel (%p311_p2) target bundleno = 2337 (0x921), region = 56  ;;  %p357_p3 = scmp.lt.s32.totalorder (!%p311_p2), %s6237_s13, 63 }
   0x7   : > { %s7581_s22 = smov (!%p311_p2), 16  }
   0xb   : > { %v7219_v0 = vld [vmem:[%s9619_s6] sm:$0xff]   ;;  %v7220_v1 = vld [vmem:[%s9618_s5 + $0x18] sm:$0xff]   ;;  %s9624_s13 = smov (!%p357_p3, %s6237_s13), 63  ;;  %vm444_vm0 = vcmask 130048   ;;  %v7221_v50 = vld [vmem:[%s9618_s5 + $0x10] sm:$0xff]   ;;  %vm741_vm1 = vcmask 523264  }
   0xc   : > { %6965 = vmatprep.subr.bf16.mxu0 %v7219_v0  ;;  %6999 = vmatprep.subr.bf16.mxu1 %v7220_v1  ;;  %s7646_s16 = sshll.u32 %s9624_s13, 3  ;;  %v7222_v51 = vld [vmem:[%s9618_s5 + $0x8] sm:$0xff]   ;;  %v7223_v52 = vld [vmem:[%s9618_s5] sm:$0xff]   ;;  %v7224_v53 = vld [vmem:[%s9617_s4 + $0x70] ss:$8 sps:$4 sm:$0xff]   ;;  %s7579_s13 = smov 8  }
   0xd   : > { %6966 = vmatpush3.bf16.msra.mxu0 %v7219_v0  ;;  %7000 = vmatpush3.bf16.msra.mxu1 %v7220_v1  ;;  %s7652_s19 = scalar_lea.vmem %s9613_s0, %s7646_s16  ;;  %v7226_v54 = vld [vmem:[%s9617_s4 + $0x74] ss:$8 sps:$4 sm:$0xff]   ;;  %v7229_v55 = vld [vmem:[%s9617_s4 + $0x64] ss:$8 sps:$4 sm:$0xff]   ;;  %v7227_v56 = vld [vmem:[%s9617_s4 + $0x60] ss:$8 sps:$4 sm:$0xff]   ;;  %s8370_s12 = scalar_lea.vmem %s9614_s1, %s7646_s16 }
   0xe   : > { %v381_v2 = vld [vmem:[%s7652_s19] sm:$0xff]  ;;  %v382_v3 = vld [vmem:[%s7652_s19 + $0x8] sm:$0xff]  ;;  %v383_v4 = vld [vmem:[%s7652_s19 + $0x10] sm:$0xff]  ;;  %7001 = vmatprep.subr.bf16.mxu1 %v7221_v50  ;;  %1107 = vmatprep.subr.bf16.mxu0 %v7226_v54  ;;  %vm3585_vm2 = vcmask 1045504   ;;  %s8627_s14 = scalar_lea.vmem %s9615_s2, %s7646_s16  ;;  %vm3445_vm3 = vcmask 64512   ;;  %vm3536_vm4 = vcmask 97280   ;;  %s9449_s28 = scalar_lea.vmem %s9622_s9, %s7646_s16 }
   0xf   : > { %v415_v5 = vpack.c.bf16 %v382_v3, %v381_v2  ;;  %v384_v6 = vld [vmem:[%s7652_s19 + $0x18] sm:$0xff]  ;;  %v385_v7 = vld [vmem:[%s7652_s19 + $0x20] sm:$0xff]  ;;  %v386_v8 = vld [vmem:[%s7652_s19 + $0x28] sm:$0xff]  ;;  %vm6086_vm5 = vcmask 195584   ;;  %vm6119_vm6 = vcmask 261120  }
  0x10   : > { %v416_v9 = vpack.c.bf16 %v384_v6, %v383_v4  ;;  %v417_v10 = vpack.c.bf16 %v386_v8, %v385_v7  ;;  %v387_v11 = vld [vmem:[%s7652_s19 + $0x30] sm:$0xff]  ;;  %v388_v12 = vld [vmem:[%s7652_s19 + $0x38] sm:$0xff]  ;;  %v389_v13 = vld [vmem:[%s7652_s19 + $0x40] sm:$0xff] }
  0x11   : > { %6967 = vmatprep.mubr.msk.bf16.mxu0 %vm444_vm0, %v415_v5  ;;  %v390_v14 = vld [vmem:[%s7652_s19 + $0x48] sm:$0xff]  ;;  %v418_v15 = vpack.c.bf16 %v388_v12, %v387_v11  ;;  %v391_v17 = vld [vmem:[%s7652_s19 + $0x50] sm:$0xff]  ;;  %v392_v18 = vld [vmem:[%s7652_s19 + $0x58] sm:$0xff]  ;;  %7002 = vmatpush3.bf16.msra.mxu1 %v7221_v50 }
  0x12   : > { %6968 = vmatmul.mubr.msk.bf16.vlgmr.msra.gmra.mxu0 %vm444_vm0, %v416_v9  ;;  %v419_v16 = vpack.c.bf16 %v390_v14, %v389_v13  ;;  %v393_v19 = vld [vmem:[%s7652_s19 + $0x60] sm:$0xff]  ;;  %v394_v20 = vld [vmem:[%s7652_s19 + $0x68] sm:$0xff]  ;;  %v420_v21 = vpack.c.bf16 %v392_v18, %v391_v17  ;;  %v395_v23 = vld [vmem:[%s7652_s19 + $0x70] sm:$0xff]  ;;  %7003 = vmatprep.subr.bf16.mxu1 %v7222_v51 }
  0x13   : > { %6971 = vmatprep.mubr.msk.bf16.mxu0 %vm444_vm0, %v417_v10  ;;  %v421_v22 = vpack.c.bf16 %v394_v20, %v393_v19  ;;  %v396_v24 = vld [vmem:[%s7652_s19 + $0x78] sm:$0xff]  ;;  %v397_v25 = vld [vmem:[%s7652_s19 + $0x80] sm:$0xff]  ;;  %v398_v26 = vld [vmem:[%s7652_s19 + $0x88] sm:$0xff]  ;;  %1108 = vmatpush1.bf16.msra.mxu0 %v7224_v53 }
  0x14   : > { %v422_v27 = vpack.c.bf16 %v396_v24, %v395_v23  ;;  %v423_v28 = vpack.c.bf16 %v398_v26, %v397_v25  ;;  %v399_v29 = vld [vmem:[%s7652_s19 + $0x90] sm:$0xff]  ;;  %v400_v30 = vld [vmem:[%s7652_s19 + $0x98] sm:$0xff]  ;;  %v401_v31 = vld [vmem:[%s7652_s19 + $0xa0] sm:$0xff]  ;;  %1109 = vmatprep.subr.bf16.mxu0 %v7229_v55 }
  0x15   : > { %v402_v32 = vld [vmem:[%s7652_s19 + $0xa8] sm:$0xff]  ;;  %v424_v33 = vpack.c.bf16 %v400_v30, %v399_v29  ;;  %v403_v35 = vld [vmem:[%s7652_s19 + $0xb0] sm:$0xff]  ;;  %v404_v36 = vld [vmem:[%s7652_s19 + $0xb8] sm:$0xff]  ;;  %7004 = vmatpush3.bf16.msra.mxu1 %v7222_v51 }
  0x16   : > { %v425_v34 = vpack.c.bf16 %v402_v32, %v401_v31  ;;  %v405_v37 = vld [vmem:[%s7652_s19 + $0xc0] sm:$0xff]  ;;  %v406_v38 = vld [vmem:[%s7652_s19 + $0xc8] sm:$0xff]  ;;  %v426_v39 = vpack.c.bf16 %v404_v36, %v403_v35  ;;  %v407_v41 = vld [vmem:[%s7652_s19 + $0xd0] sm:$0xff]  ;;  %7005 = vmatprep.subr.bf16.mxu1 %v7223_v52 }
  0x17   : > { %v427_v40 = vpack.c.bf16 %v406_v38, %v405_v37  ;;  %v408_v42 = vld [vmem:[%s7652_s19 + $0xd8] sm:$0xff]  ;;  %v409_v43 = vld [vmem:[%s7652_s19 + $0xe0] sm:$0xff]  ;;  %v410_v44 = vld [vmem:[%s7652_s19 + $0xe8] sm:$0xff]  ;;  %1110 = vmatpush1.bf16.msra.mxu0 %v7227_v56 }
  0x18   : > { %v428_v45 = vpack.c.bf16 %v408_v42, %v407_v41  ;;  %v429_v46 = vpack.c.bf16 %v410_v44, %v409_v43  ;;  %v411_v47 = vld [vmem:[%s7652_s19 + $0xf0] sm:$0xff]  ;;  %v412_v48 = vld [vmem:[%s7652_s19 + $0xf8] sm:$0xff]  ;;  %v7235_v59 = vld [vmem:[%s9617_s4 + $0x44] ss:$8 sps:$4 sm:$0xff]  }
  0x19   : > { %v430_v49 = vpack.c.bf16 %v412_v48, %v411_v47  ;;  %7006 = vmatpush3.bf16.msra.mxu1 %v7223_v52  ;;  %v7232_v57 = vld [vmem:[%s9617_s4 + $0x54] ss:$8 sps:$4 sm:$0xff]   ;;  %v7230_v58 = vld [vmem:[%s9617_s4 + $0x50] ss:$8 sps:$4 sm:$0xff]   ;;  %v7233_v60 = vld [vmem:[%s9617_s4 + $0x40] ss:$8 sps:$4 sm:$0xff]  }
  0x1a   : > { %6972 = vmatmul.mubr.msk.bf16.gmra.mxu0 %vm444_vm0, %v418_v15  ;;  %1111 = vmatprep.subr.bf16.mxu0 %v7232_v57  ;;  %v7238_v61 = vld [vmem:[%s9617_s4 + $0x34] ss:$8 sps:$4 sm:$0xff]   ;;  %v7236_v62 = vld [vmem:[%s9617_s4 + $0x30] ss:$8 sps:$4 sm:$0xff]   ;;  %v7241_v63 = vld [vmem:[%s9617_s4 + $0x24] ss:$8 sps:$4 sm:$0xff]  }
  0x1b   : > { %6975 = vmatprep.mubr.msk.bf16.mxu0 %vm444_vm0, %v419_v16  ;;  %1112 = vmatpush1.bf16.msra.mxu0 %v7230_v58  ;;  %v7239_v0 = vld [vmem:[%s9617_s4 + $0x20] ss:$8 sps:$4 sm:$0xff]   ;;  %v7244_v1 = vld [vmem:[%s9617_s4 + $0x14] ss:$8 sps:$4 sm:$0xff]   ;;  %v7242_v2 = vld [vmem:[%s9617_s4 + $0x10] ss:$8 sps:$4 sm:$0xff]  }
  0x1c   : > { %1113 = vmatprep.subr.bf16.mxu0 %v7235_v59  ;;  %v7756_v5 = vld [vmem:[%s9621_s8] ss:$0 sm:$0xff] }
  0x1f   : > { %1114 = vmatpush1.bf16.msra.mxu0 %v7233_v60 }
  0x20   : > { %1115 = vmatprep.subr.bf16.mxu0 %v7238_v61 }
  0x22   : > { %6976 = vmatmul.mubr.msk.bf16.gmra.mxu0 %vm444_vm0, %v420_v21 }
  0x23   : > { %6979 = vmatprep.mubr.msk.bf16.mxu0 %vm444_vm0, %v421_v22  ;;  %1116 = vmatpush1.bf16.msra.mxu0 %v7236_v62 }
  0x24   : > { %1117 = vmatprep.subr.bf16.mxu0 %v7241_v63 }
  0x27   : > { %1118 = vmatpush1.bf16.msra.mxu0 %v7239_v0 }
  0x28   : > { %1119 = vmatprep.subr.bf16.mxu0 %v7244_v1 }
  0x2a   : > { %6980 = vmatmul.mubr.msk.bf16.gmra.mxu0 %vm444_vm0, %v422_v27 }
  0x2b   : > { %6983 = vmatprep.mubr.msk.bf16.mxu0 %vm444_vm0, %v423_v28  ;;  %1120 = vmatpush1.bf16.msra.mxu0 %v7242_v2 }
  0x32   : > { %6984 = vmatmul.mubr.msk.bf16.gmra.mxu0 %vm444_vm0, %v424_v33 }
  0x33   : > { %6987 = vmatprep.mubr.msk.bf16.mxu0 %vm444_vm0, %v425_v34 }
  0x3a   : > { %6988 = vmatmul.mubr.msk.bf16.gmra.mxu0 %vm444_vm0, %v426_v39 }
  0x3b   : > { %6991 = vmatprep.mubr.msk.bf16.mxu0 %vm444_vm0, %v427_v40 }
  0x42   : > { %6992 = vmatmul.mubr.msk.bf16.gmra.mxu0 %vm444_vm0, %v428_v45 }
  0x43   : > { %6995 = vmatprep.mubr.msk.bf16.mxu0 %vm444_vm0, %v429_v46 }
  0x4a   : > { %6996 = vmatmul.mubr.msk.bf16.gmra.mxu0 %vm444_vm0, %v430_v49 }
  0xd2   : > { %v6969_v3 = vpop.f32.mrf.mxu0 }
  0xd3   : > { %v536_v9 = vadd.f32 %v6969_v3, %v7756_v5 }
  0xd4   : > { %v527_v4 = vpop.f32.mrf.mxu0 }
  0xd5   : > { %v528_v7 = vadd.f32 %v7756_v5, %v527_v4  ;;  %v656_v16 = vmax.f32 %v536_v9, 0.0 }
  0xd6   : > { %v6970_v6 = vpop.f32.mrf.mxu0 }
  0xd7   : > { %v539_v8 = vadd.f32 %v6970_v6, %v7756_v5  ;;  %v654_v14 = vmax.f32 %v528_v7, 0.0 }
  0xd8   : > { %v530_v10 = vpop.f32.mrf.mxu0 }
  0xd9   : > { %v531_v11 = vadd.f32 %v7756_v5, %v530_v10  ;;  %v657_v12 = vmax.f32 %v539_v8, 0.0 }
  0xda   : > { %v6973_v13 = vpop.f32.mrf.mxu0 }
  0xdb   : > { %v655_v15 = vmax.f32 %v531_v11, 0.0  ;;  %v552_v17 = vadd.f32 %v6973_v13, %v7756_v5  ;;  %v695_v21 = vpack.c.bf16 %v657_v12, %v656_v16 }
  0xdc   : > { %v543_v18 = vpop.f32.mrf.mxu0 }
  0xdd   : > { %v544_v19 = vadd.f32 %v7756_v5, %v543_v18  ;;  %v694_v20 = vpack.c.bf16 %v655_v15, %v654_v14  ;;  %v660_v24 = vmax.f32 %v552_v17, 0.0 }
  0xde   : > { %v6974_v22 = vpop.f32.mrf.mxu0 }
  0xdf   : > { %v555_v23 = vadd.f32 %v6974_v22, %v7756_v5  ;;  %7007 = vmatprep.mubr.msk.bf16.mxu1 %vm741_vm1, %v694_v20  ;;  %v658_v26 = vmax.f32 %v544_v19, 0.0 }
  0xe0   : > { %v546_v25 = vpop.f32.mrf.mxu0  ;;  %7008 = vmatmul.mubr.msk.bf16.vlgmr.msra.gmra.mxu1 %vm741_vm1, %v695_v21 }
  0xe1   : > { %v661_v27 = vmax.f32 %v555_v23, 0.0  ;;  %v547_v28 = vadd.f32 %v7756_v5, %v546_v25 }
  0xe2   : > { %v6977_v29 = vpop.f32.mrf.mxu0 }
  0xe3   : > { %v659_v30 = vmax.f32 %v547_v28, 0.0  ;;  %v697_v31 = vpack.c.bf16 %v661_v27, %v660_v24  ;;  %v568_v32 = vadd.f32 %v6977_v29, %v7756_v5 }
  0xe4   : > { %v559_v33 = vpop.f32.mrf.mxu0 }
  0xe5   : > { %v696_v34 = vpack.c.bf16 %v659_v30, %v658_v26  ;;  %v560_v35 = vadd.f32 %v7756_v5, %v559_v33  ;;  %v664_v38 = vmax.f32 %v568_v32, 0.0 }
  0xe6   : > { %v6978_v36 = vpop.f32.mrf.mxu0 }
  0xe7   : > { %7011 = vmatprep.mubr.msk.bf16.mxu1 %vm741_vm1, %v696_v34  ;;  %v571_v37 = vadd.f32 %v6978_v36, %v7756_v5  ;;  %v662_v40 = vmax.f32 %v560_v35, 0.0 }
  0xe8   : > { %7012 = vmatmul.mubr.msk.bf16.gmra.mxu1 %vm741_vm1, %v697_v31  ;;  %v562_v39 = vpop.f32.mrf.mxu0 }
  0xe9   : > { %v665_v41 = vmax.f32 %v571_v37, 0.0  ;;  %v563_v42 = vadd.f32 %v7756_v5, %v562_v39 }
  0xea   : > { %v6981_v43 = vpop.f32.mrf.mxu0 }
  0xeb   : > { %v663_v44 = vmax.f32 %v563_v42, 0.0  ;;  %v699_v45 = vpack.c.bf16 %v665_v41, %v664_v38  ;;  %v584_v46 = vadd.f32 %v6981_v43, %v7756_v5 }
  0xec   : > { %v575_v47 = vpop.f32.mrf.mxu0 }
  0xed   : > { %v698_v48 = vpack.c.bf16 %v663_v44, %v662_v40  ;;  %v576_v49 = vadd.f32 %v7756_v5, %v575_v47  ;;  %v668_v52 = vmax.f32 %v584_v46, 0.0 }
  0xee   : > { %v6982_v50 = vpop.f32.mrf.mxu0 }
  0xef   : > { %7015 = vmatprep.mubr.msk.bf16.mxu1 %vm741_vm1, %v698_v48  ;;  %v587_v51 = vadd.f32 %v6982_v50, %v7756_v5  ;;  %v666_v54 = vmax.f32 %v576_v49, 0.0 }
  0xf0   : > { %7016 = vmatmul.mubr.msk.bf16.gmra.mxu1 %vm741_vm1, %v699_v45  ;;  %v578_v53 = vpop.f32.mrf.mxu0 }
  0xf1   : > { %v669_v55 = vmax.f32 %v587_v51, 0.0  ;;  %v579_v56 = vadd.f32 %v7756_v5, %v578_v53  ;;  %v7247_v53 = vld [vmem:[%s9617_s4 + $0x4] ss:$8 sps:$4 sm:$0xff]  }
  0xf2   : > { %v6985_v57 = vpop.f32.mrf.mxu0  ;;  %1121 = vmatprep.subr.bf16.mxu0 %v7247_v53 }
  0xf3   : > { %v667_v58 = vmax.f32 %v579_v56, 0.0  ;;  %v701_v59 = vpack.c.bf16 %v669_v55, %v668_v52  ;;  %v600_v60 = vadd.f32 %v6985_v57, %v7756_v5  ;;  %v7578_v55 = vmov 0  }
  0xf4   : > { %v591_v61 = vpop.f32.mrf.mxu0  ;;  %1139 = vmatprep.mubr.bf16.mxu0 %v7578_v55 }
  0xf5   : > { %v700_v62 = vpack.c.bf16 %v667_v58, %v666_v54  ;;  %v592_v63 = vadd.f32 %v7756_v5, %v591_v61  ;;  %v672_v2 = vmax.f32 %v600_v60, 0.0  ;;  %v7245_v54 = vld [vmem:[%s9617_s4] ss:$8 sps:$4 sm:$0xff]  }
  0xf6   : > { %v6986_v0 = vpop.f32.mrf.mxu0  ;;  %1122 = vmatpush1.bf16.msra.mxu0 %v7245_v54  ;;  %v7819_v58 = vld [vmem:[%s9621_s8 + $0x1] ss:$0 sm:$0xff] }
  0xf7   : > { %7019 = vmatprep.mubr.msk.bf16.mxu1 %vm741_vm1, %v700_v62  ;;  %v603_v1 = vadd.f32 %v6986_v0, %v7756_v5  ;;  %v670_v4 = vmax.f32 %v592_v63, 0.0  ;;  %v7272_v62 = vld [vmem:[%s9616_s3 + $0xe0] ss:$16 sps:$4 sm:$0xff]   ;;  %v7274_v0 = vld [vmem:[%s9616_s3 + $0xe4] ss:$16 sps:$4 sm:$0xff]  }
  0xf8   : > { %7020 = vmatmul.mubr.msk.bf16.gmra.mxu1 %vm741_vm1, %v701_v59  ;;  %v594_v3 = vpop.f32.mrf.mxu0  ;;  %1802 = vmatprep.subr.bf16.mxu1 %v7274_v0  ;;  %v7277_v0 = vld [vmem:[%s9616_s3 + $0x1ec] ss:$16 sps:$4 sm:$0xff]  }
  0xf9   : > { %v673_v6 = vmax.f32 %v603_v1, 0.0  ;;  %v595_v7 = vadd.f32 %v7756_v5, %v594_v3  ;;  %1803 = vmatpush1.bf16.msra.mxu1 %v7272_v62 }
  0xfa   : > { %v6989_v8 = vpop.f32.mrf.mxu0 }
  0xfb   : > { %v671_v9 = vmax.f32 %v595_v7, 0.0  ;;  %v703_v10 = vpack.c.bf16 %v673_v6, %v672_v2  ;;  %v616_v11 = vadd.f32 %v6989_v8, %v7756_v5  ;;  %v7280_v2 = vld [vmem:[%s9616_s3 + $0xc4] ss:$16 sps:$4 sm:$0xff]   ;;  %v7248_v7 = vld [vmem:[%s9616_s3 + $0xe8] ss:$16 sps:$4 sm:$0xff]  }
  0xfc   : > { %v607_v12 = vpop.f32.mrf.mxu0  ;;  %1804 = vmatprep.subr.bf16.mxu1 %v7280_v2 }
  0xfd   : > { %v702_v13 = vpack.c.bf16 %v671_v9, %v670_v4  ;;  %v608_v14 = vadd.f32 %v7756_v5, %v607_v12  ;;  %v676_v17 = vmax.f32 %v616_v11, 0.0  ;;  %v7278_v11 = vld [vmem:[%s9616_s3 + $0xc0] ss:$16 sps:$4 sm:$0xff]  }
  0xfe   : > { %v6990_v15 = vpop.f32.mrf.mxu0  ;;  %1805 = vmatpush1.bf16.msra.mxu1 %v7278_v11 }
  0xff   : > { %7023 = vmatprep.mubr.msk.bf16.mxu1 %vm741_vm1, %v702_v13  ;;  %v619_v16 = vadd.f32 %v6990_v15, %v7756_v5  ;;  %v674_v19 = vmax.f32 %v608_v14, 0.0  ;;  %v7283_v13 = vld [vmem:[%s9616_s3 + $0xa4] ss:$16 sps:$4 sm:$0xff]   ;;  %v7251_v15 = vld [vmem:[%s9616_s3 + $0xc8] ss:$16 sps:$4 sm:$0xff]  }
 0x100   : > { %7024 = vmatmul.mubr.msk.bf16.gmra.mxu1 %vm741_vm1, %v703_v10  ;;  %v610_v18 = vpop.f32.mrf.mxu0  ;;  %v7253_v10 = vld [vmem:[%s9616_s3 + $0xcc] ss:$16 sps:$4 sm:$0xff]   ;;  %1806 = vmatprep.subr.bf16.mxu1 %v7283_v13  ;;  %v7284_v13 = vld [vmem:[%s9616_s3 + $0x1c8] ss:$16 sps:$4 sm:$0xff]  }
 0x101   : > { %v677_v20 = vmax.f32 %v619_v16, 0.0  ;;  %v611_v21 = vadd.f32 %v7756_v5, %v610_v18  ;;  %v7281_v18 = vld [vmem:[%s9616_s3 + $0xa0] ss:$16 sps:$4 sm:$0xff]  }
 0x102   : > { %v6993_v22 = vpop.f32.mrf.mxu0  ;;  %1807 = vmatpush1.bf16.msra.mxu1 %v7281_v18 }
 0x103   : > { %v675_v23 = vmax.f32 %v611_v21, 0.0  ;;  %v705_v24 = vpack.c.bf16 %v677_v20, %v676_v17  ;;  %v632_v25 = vadd.f32 %v6993_v22, %v7756_v5  ;;  %v7256_v17 = vld [vmem:[%s9616_s3 + $0xac] ss:$16 sps:$4 sm:$0xff]   ;;  %v7289_v20 = vld [vmem:[%s9616_s3 + $0x84] ss:$16 sps:$4 sm:$0xff]  }
 0x104   : > { %v623_v26 = vpop.f32.mrf.mxu0  ;;  %v7254_v22 = vld [vmem:[%s9616_s3 + $0xa8] ss:$16 sps:$4 sm:$0xff]   ;;  %1808 = vmatprep.subr.bf16.mxu1 %v7289_v20 }
 0x105   : > { %v704_v27 = vpack.c.bf16 %v675_v23, %v674_v19  ;;  %v624_v28 = vadd.f32 %v7756_v5, %v623_v26  ;;  %v680_v31 = vmax.f32 %v632_v25, 0.0  ;;  %v7259_v25 = vld [vmem:[%s9616_s3 + $0x8c] ss:$16 sps:$4 sm:$0xff]   ;;  %v7287_v26 = vld [vmem:[%s9616_s3 + $0x80] ss:$16 sps:$4 sm:$0xff]  }
 0x106   : > { %v6994_v29 = vpop.f32.mrf.mxu0  ;;  %1809 = vmatpush1.bf16.msra.mxu1 %v7287_v26  ;;  %v7293_v20 = vld [vmem:[%s9616_s3 + $0x1a8] ss:$16 sps:$4 sm:$0xff]  }
 0x107   : > { %7027 = vmatprep.mubr.msk.bf16.mxu1 %vm741_vm1, %v704_v27  ;;  %v635_v30 = vadd.f32 %v6994_v29, %v7756_v5  ;;  %v678_v33 = vmax.f32 %v624_v28, 0.0  ;;  %v7292_v28 = vld [vmem:[%s9616_s3 + $0x64] ss:$16 sps:$4 sm:$0xff]  }
 0x108   : > { %7028 = vmatmul.mubr.msk.bf16.gmra.mxu1 %vm741_vm1, %v705_v24  ;;  %v626_v32 = vpop.f32.mrf.mxu0  ;;  %1810 = vmatprep.subr.bf16.mxu1 %v7292_v28  ;;  %v7302_v28 = vld [vmem:[%s9616_s3 + $0x188] ss:$16 sps:$4 sm:$0xff]  }
 0x109   : > { %v681_v34 = vmax.f32 %v635_v30, 0.0  ;;  %v627_v35 = vadd.f32 %v7756_v5, %v626_v32  ;;  %v7257_v30 = vld [vmem:[%s9616_s3 + $0x88] ss:$16 sps:$4 sm:$0xff]   ;;  %v7262_v32 = vld [vmem:[%s9616_s3 + $0x6c] ss:$16 sps:$4 sm:$0xff]  }
 0x10a   : > { %v6997_v36 = vpop.f32.mrf.mxu0 }
 0x10b   : > { %v679_v37 = vmax.f32 %v627_v35, 0.0  ;;  %v707_v38 = vpack.c.bf16 %v681_v34, %v680_v31  ;;  %v648_v39 = vadd.f32 %v6997_v36, %v7756_v5  ;;  %v7298_v35 = vld [vmem:[%s9616_s3 + $0x44] ss:$16 sps:$4 sm:$0xff]  }
 0x10c   : > { %v639_v40 = vpop.f32.mrf.mxu0 }
 0x10d   : > { %v706_v41 = vpack.c.bf16 %v679_v37, %v678_v33  ;;  %v640_v42 = vadd.f32 %v7756_v5, %v639_v40  ;;  %v684_v45 = vmax.f32 %v648_v39, 0.0  ;;  %v7290_v33 = vld [vmem:[%s9616_s3 + $0x60] ss:$16 sps:$4 sm:$0xff]   ;;  %v7260_v37 = vld [vmem:[%s9616_s3 + $0x68] ss:$16 sps:$4 sm:$0xff]  }
 0x10e   : > { %v6998_v43 = vpop.f32.mrf.mxu0  ;;  %v7265_v40 = vld [vmem:[%s9616_s3 + $0x4c] ss:$16 sps:$4 sm:$0xff]   ;;  %1811 = vmatpush1.bf16.msra.mxu1 %v7290_v33 }
 0x10f   : > { %7031 = vmatprep.mubr.msk.bf16.mxu1 %vm741_vm1, %v706_v41  ;;  %v651_v44 = vadd.f32 %v6998_v43, %v7756_v5  ;;  %v682_v47 = vmax.f32 %v640_v42, 0.0  ;;  %v7296_v41 = vld [vmem:[%s9616_s3 + $0x40] ss:$16 sps:$4 sm:$0xff]   ;;  %1812 = vmatprep.subr.bf16.mxu1 %v7298_v35  ;;  %v7301_v43 = vld [vmem:[%s9616_s3 + $0x24] ss:$16 sps:$4 sm:$0xff]  }
 0x110   : > { %7032 = vmatmul.mubr.msk.bf16.gmra.mxu1 %vm741_vm1, %v707_v38  ;;  %v642_v46 = vpop.f32.mrf.mxu0 }
 0x111   : > { %v685_v48 = vmax.f32 %v651_v44, 0.0  ;;  %v643_v49 = vadd.f32 %v7756_v5, %v642_v46  ;;  %v7250_v5 = vld [vmem:[%s9616_s3 + $0xec] ss:$16 sps:$4 sm:$0xff]  }
 0x112   : > { %1995 = vmatprep.subr.bf16.mxu0 %v7250_v5  ;;  %1813 = vmatpush1.bf16.msra.mxu1 %v7296_v41 }
 0x113   : > { %v683_v50 = vmax.f32 %v643_v49, 0.0  ;;  %v709_v51 = vpack.c.bf16 %v685_v48, %v684_v45  ;;  %v7263_v45 = vld [vmem:[%s9616_s3 + $0x48] ss:$16 sps:$4 sm:$0xff]   ;;  %v7299_v48 = vld [vmem:[%s9616_s3 + $0x20] ss:$16 sps:$4 sm:$0xff]   ;;  %1814 = vmatprep.subr.bf16.mxu1 %v7301_v43 }
 0x114   : > { %v7331_v43 = vld [vmem:[%s9616_s3 + $0x12c] ss:$16 sps:$4 sm:$0xff]  }
 0x115   : > { %v708_v52 = vpack.c.bf16 %v683_v50, %v682_v47  ;;  %v7268_v47 = vld [vmem:[%s9616_s3 + $0x2c] ss:$16 sps:$4 sm:$0xff]   ;;  %v7307_v50 = vld [vmem:[%s9616_s3 + $0x4] ss:$16 sps:$4 sm:$0xff]  }
 0x116   : > { %1815 = vmatpush1.bf16.msra.mxu1 %v7299_v48 }
 0x117   : > { %7035 = vmatprep.mubr.msk.bf16.mxu1 %vm741_vm1, %v708_v52  ;;  %v7266_v52 = vld [vmem:[%s9616_s3 + $0x28] ss:$16 sps:$4 sm:$0xff]   ;;  %1816 = vmatprep.subr.bf16.mxu1 %v7307_v50 }
 0x118   : > { %7036 = vmatmul.mubr.msk.bf16.gmra.mxu1 %vm741_vm1, %v709_v51 }
 0x1a0   : > { %v7009_v56 = vpop.f32.mrf.mxu1 }
 0x1a1   : > { %v833_v14 = vadd.f32 %v7009_v56, %v7819_v58  ;;  %v7271_v56 = vld [vmem:[%s9616_s3 + $0xc] ss:$16 sps:$4 sm:$0xff]  }
 0x1a2   : > { %v824_v57 = vpop.f32.mrf.mxu1 }
 0x1a3   : > { %v825_v60 = vadd.f32 %v7819_v58, %v824_v57  ;;  %v953_v21 = vmax.f32 %v833_v14, 0.0  ;;  %v7305_v57 = vld [vmem:[%s9616_s3] ss:$16 sps:$4 sm:$0xff]  }
 0x1a4   : > { %v7010_v59 = vpop.f32.mrf.mxu1  ;;  %1817 = vmatpush1.bf16.msra.mxu1 %v7305_v57  ;;  %v7334_v57 = vld [vmem:[%s9616_s3 + $0x144] ss:$16 sps:$4 sm:$0xff]  }
 0x1a5   : > { %v951_v3 = vmax.f32 %v825_v60, 0.0  ;;  %v836_v8 = vadd.f32 %v7010_v59, %v7819_v58  ;;  %v7310_v60 = vld [vmem:[%s9616_s3 + $0x1e4] ss:$16 sps:$4 sm:$0xff]  }
 0x1a6   : > { %v827_v61 = vpop.f32.mrf.mxu1  ;;  %1818 = vmatprep.subr.bf16.mxu1 %v7310_v60 }
 0x1a7   : > { %v828_v63 = vadd.f32 %v7819_v58, %v827_v61  ;;  %v954_v16 = vmax.f32 %v836_v8, 0.0  ;;  %v7269_v61 = vld [vmem:[%s9616_s3 + $0x8] ss:$16 sps:$4 sm:$0xff]  }
 0x1a8   : > { %v7829_v1 = vpop.f32.mrf.mxu1 }
 0x1a9   : > { %v952_v4 = vmax.f32 %v828_v63, 0.0  ;;  %v1000_v23 = vpack.c.bf16 %v954_v16, %v953_v21  ;;  %v849_v44 = vadd.f32 %v7829_v1, %v7819_v58  ;;  %v7308_v1 = vld [vmem:[%s9616_s3 + $0x1e0] ss:$16 sps:$4 sm:$0xff]   ;;  %v7295_v16 = vld [vmem:[%s9616_s3 + $0x1ac] ss:$16 sps:$4 sm:$0xff]  }
 0x1aa   : > { %v840_v6 = vpop.f32.mrf.mxu1  ;;  %1819 = vmatpush2.bf16.msra.mxu1 %v7308_v1 }
 0x1ab   : > { %v999_v9 = vpack.c.bf16 %v952_v4, %v951_v3  ;;  %v841_v29 = vadd.f32 %v7819_v58, %v840_v6  ;;  %v957_v51 = vmax.f32 %v849_v44, 0.0  ;;  %v7316_v3 = vld [vmem:[%s9616_s3 + $0x1c4] ss:$16 sps:$4 sm:$0xff]   ;;  %v7275_v4 = vld [vmem:[%s9616_s3 + $0x1e8] ss:$16 sps:$4 sm:$0xff]  }
 0x1ac   : > { %v7014_v12 = vpop.f32.mrf.mxu1  ;;  %1820 = vmatprep.subr.bf16.mxu1 %v7316_v3 }
 0x1ad   : > { %1140 = vmatmul.mubr.bf16.vlgmr.msra.gmra.mxu0 %v999_v9  ;;  %v955_v36 = vmax.f32 %v841_v29, 0.0  ;;  %v852_v38 = vadd.f32 %v7014_v12, %v7819_v58  ;;  %v7286_v9 = vld [vmem:[%s9616_s3 + $0x1cc] ss:$16 sps:$4 sm:$0xff]   ;;  %v7319_v12 = vld [vmem:[%s9616_s3 + $0x1a4] ss:$16 sps:$4 sm:$0xff]  }
 0x1ae   : > { %1149 = vmatprep.mubr.bf16.mxu0 %v7578_v55  ;;  %1996 = vmatpush1.bf16.msra.mxu0 %v7248_v7  ;;  %v843_v19 = vpop.f32.mrf.mxu1 }
 0x1af   : > { %1997 = vmatprep.subr.bf16.mxu0 %v7253_v10  ;;  %v844_v24 = vadd.f32 %v7819_v58, %v843_v19  ;;  %v958_v46 = vmax.f32 %v852_v38, 0.0  ;;  %v7314_v10 = vld [vmem:[%s9616_s3 + $0x1c0] ss:$16 sps:$4 sm:$0xff]   ;;  %v7325_v19 = vld [vmem:[%s9616_s3 + $0x184] ss:$16 sps:$4 sm:$0xff]  }
 0x1b0   : > { %v7871_v27 = vpop.f32.mrf.mxu1  ;;  %1821 = vmatpush2.bf16.msra.mxu1 %v7314_v10  ;;  %v7322_v38 = vld [vmem:[%s9616_s3 + $0x14c] ss:$16 sps:$4 sm:$0xff]  }
 0x1b1   : > { %v956_v31 = vmax.f32 %v844_v24, 0.0  ;;  %v1002_v53 = vpack.c.bf16 %v958_v46, %v957_v51  ;;  %v865_v6 = vadd.f32 %v7871_v27, %v7819_v58  ;;  %1822 = vmatprep.subr.bf16.mxu1 %v7319_v12  ;;  %v7304_v24 = vld [vmem:[%s9616_s3 + $0x18c] ss:$16 sps:$4 sm:$0xff]   ;;  %v7328_v27 = vld [vmem:[%s9616_s3 + $0x164] ss:$16 sps:$4 sm:$0xff]  }
 0x1b2   : > { %1998 = vmatpush1.bf16.msra.mxu0 %v7251_v15  ;;  %v856_v34 = vpop.f32.mrf.mxu1 }
 0x1b3   : > { %1999 = vmatprep.subr.bf16.mxu0 %v7256_v17  ;;  %v1001_v39 = vpack.c.bf16 %v956_v31, %v955_v36  ;;  %v857_v54 = vadd.f32 %v7819_v58, %v856_v34  ;;  %v961_v14 = vmax.f32 %v865_v6, 0.0  ;;  %v7317_v17 = vld [vmem:[%s9616_s3 + $0x1a0] ss:$16 sps:$4 sm:$0xff]   ;;  %v7313_v31 = vld [vmem:[%s9616_s3 + $0x16c] ss:$16 sps:$4 sm:$0xff]  }
 0x1b4   : > { %v7018_v42 = vpop.f32.mrf.mxu1  ;;  %1823 = vmatpush2.bf16.msra.mxu1 %v7317_v17  ;;  %v7311_v34 = vld [vmem:[%s9616_s3 + $0x168] ss:$16 sps:$4 sm:$0xff]   ;;  %v7340_v6 = vld [vmem:[%s9616_s3 + $0x10c] ss:$16 sps:$4 sm:$0xff]  }
 0x1b5   : > { %1150 = vmatmul.mubr.bf16.gmra.mxu0 %v1000_v23  ;;  %v959_v62 = vmax.f32 %v857_v54, 0.0  ;;  %v868_v7 = vadd.f32 %v7018_v42, %v7819_v58  ;;  %1824 = vmatprep.subr.bf16.mxu1 %v7325_v19 }
 0x1b6   : > { %1159 = vmatprep.mubr.bf16.mxu0 %v7578_v55  ;;  %2000 = vmatpush1.bf16.msra.mxu0 %v7254_v22  ;;  %v859_v49 = vpop.f32.mrf.mxu1 }
 0x1b7   : > { %2001 = vmatprep.subr.bf16.mxu0 %v7259_v25  ;;  %v860_v5 = vadd.f32 %v7819_v58, %v859_v49  ;;  %v962_v15 = vmax.f32 %v868_v7, 0.0  ;;  %v7323_v25 = vld [vmem:[%s9616_s3 + $0x180] ss:$16 sps:$4 sm:$0xff]   ;;  %v7343_v7 = vld [vmem:[%s9616_s3 + $0x104] ss:$16 sps:$4 sm:$0xff]  }
 0x1b8   : > { %v7929_v59 = vpop.f32.mrf.mxu1  ;;  %1825 = vmatpush2.bf16.msra.mxu1 %v7323_v25 }
 0x1b9   : > { %v960_v63 = vmax.f32 %v860_v5, 0.0  ;;  %v1004_v21 = vpack.c.bf16 %v962_v15, %v961_v14  ;;  %1826 = vmatprep.subr.bf16.mxu1 %v7328_v27  ;;  %v881_v35 = vadd.f32 %v7929_v59, %v7819_v58  ;;  %v7332_v59 = vld [vmem:[%s9616_s3 + $0x140] ss:$16 sps:$4 sm:$0xff]  }
 0x1ba   : > { %2002 = vmatpush1.bf16.msra.mxu0 %v7257_v30  ;;  %v872_v2 = vpop.f32.mrf.mxu1 }
 0x1bb   : > { %2003 = vmatprep.subr.bf16.mxu0 %v7262_v32  ;;  %v1003_v8 = vpack.c.bf16 %v960_v63, %v959_v62  ;;  %v873_v22 = vadd.f32 %v7819_v58, %v872_v2  ;;  %v7326_v32 = vld [vmem:[%s9616_s3 + $0x160] ss:$16 sps:$4 sm:$0xff]   ;;  %v965_v41 = vmax.f32 %v881_v35, 0.0  ;;  %v7337_v63 = vld [vmem:[%s9616_s3 + $0x124] ss:$16 sps:$4 sm:$0xff]  }
 0x1bc   : > { %v7022_v11 = vpop.f32.mrf.mxu1  ;;  %1827 = vmatpush2.bf16.msra.mxu1 %v7326_v32 }
 0x1bd   : > { %1160 = vmatmul.mubr.bf16.gmra.mxu0 %v1001_v39  ;;  %v963_v29 = vmax.f32 %v873_v22, 0.0  ;;  %v884_v36 = vadd.f32 %v7022_v11, %v7819_v58  ;;  %1828 = vmatprep.subr.bf16.mxu1 %v7334_v57 }
 0x1be   : > { %1169 = vmatprep.mubr.bf16.mxu0 %v7578_v55  ;;  %2004 = vmatpush1.bf16.msra.mxu0 %v7260_v37  ;;  %v875_v18 = vpop.f32.mrf.mxu1 }
 0x1bf   : > { %2005 = vmatprep.subr.bf16.mxu0 %v7265_v40  ;;  %v876_v23 = vadd.f32 %v7819_v58, %v875_v18  ;;  %v7320_v40 = vld [vmem:[%s9616_s3 + $0x148] ss:$16 sps:$4 sm:$0xff]   ;;  %v966_v42 = vmax.f32 %v884_v36, 0.0 }
 0x1c0   : > { %v7025_v26 = vpop.f32.mrf.mxu1  ;;  %1829 = vmatpush2.bf16.msra.mxu1 %v7332_v59 }
 0x1c1   : > { %v964_v30 = vmax.f32 %v876_v23, 0.0  ;;  %v1006_v46 = vpack.c.bf16 %v966_v42, %v965_v41  ;;  %1830 = vmatprep.subr.bf16.mxu1 %v7337_v63 }
 0x1c2   : > { %2006 = vmatpush1.bf16.msra.mxu0 %v7263_v45  ;;  %v888_v33 = vpop.f32.mrf.mxu1  ;;  %v7329_v45 = vld [vmem:[%s9616_s3 + $0x128] ss:$16 sps:$4 sm:$0xff]  }
 0x1c3   : > { %2007 = vmatprep.subr.bf16.mxu0 %v7268_v47  ;;  %v1005_v37 = vpack.c.bf16 %v964_v30, %v963_v29  ;;  %v889_v47 = vadd.f32 %v7819_v58, %v888_v33 }
 0x1c4   : > { %v7026_v39 = vpop.f32.mrf.mxu1 }
 0x1c5   : > { %1170 = vmatmul.mubr.bf16.gmra.mxu0 %v1002_v53  ;;  %v967_v50 = vmax.f32 %v889_v47, 0.0  ;;  %v897_v53 = vadd.f32 %v7025_v26, %v7819_v58  ;;  %v900_v54 = vadd.f32 %v7026_v39, %v7819_v58  ;;  %v1017_v47 = vlaneseq }
 0x1c6   : > { %1179 = vmatprep.mubr.bf16.mxu0 %v7578_v55  ;;  %2008 = vmatpush1.bf16.msra.mxu0 %v7266_v52  ;;  %v891_v44 = vpop.f32.mrf.mxu1 }
 0x1c7   : > { %2009 = vmatprep.subr.bf16.mxu0 %v7271_v56  ;;  %v892_v48 = vadd.f32 %v7819_v58, %v891_v44  ;;  %v969_v60 = vmax.f32 %v897_v53, 0.0 }
 0x1c8   : > { %v7029_v49 = vpop.f32.mrf.mxu1 }
 0x1c9   : > { %v968_v51 = vmax.f32 %v892_v48, 0.0 }
 0x1ca   : > { %2010 = vmatpush1.bf16.msra.mxu0 %v7269_v61  ;;  %v904_v52 = vpop.f32.mrf.mxu1  ;;  %v970_v61 = vmax.f32 %v900_v54, 0.0 }
 0x1cb   : > { %2011 = vmatprep.subr.bf16.mxu0 %v7277_v0  ;;  %v1007_v5 = vpack.c.bf16 %v968_v51, %v967_v50  ;;  %v7335_v0 = vld [vmem:[%s9616_s3 + $0x120] ss:$16 sps:$4 sm:$0xff]   ;;  %v905_v2 = vadd.f32 %v7819_v58, %v904_v52 }
 0x1cc   : > { %v7030_v56 = vpop.f32.mrf.mxu1  ;;  %v1008_v1 = vpack.c.bf16 %v970_v61, %v969_v60  ;;  %1831 = vmatpush2.bf16.msra.mxu1 %v7335_v0  ;;  %v1015_v50 = vld [vmem:[%s9621_s8 + $0x2] sm:$0x3] }
 0x1cd   : > { %1180 = vmatmul.mubr.bf16.gmra.mxu0 %v1003_v8  ;;  %v7338_v8 = vld [vmem:[%s9616_s3 + $0x108] ss:$16 sps:$4 sm:$0xff]   ;;  %v971_v10 = vmax.f32 %v905_v2, 0.0  ;;  %1832 = vmatprep.subr.bf16.mxu1 %v7343_v7  ;;  %v916_v14 = vadd.f32 %v7030_v56, %v7819_v58 }
 0x1ce   : > { %1189 = vmatprep.mubr.bf16.mxu0 %v7578_v55  ;;  %2012 = vmatpush2.bf16.msra.mxu0 %v7275_v4  ;;  %v907_v62 = vpop.f32.mrf.mxu1  ;;  %v7347_v7 = vld [vmem:[%s9620_s7 + $0xb8] sm:$0xff]  }
 0x1cf   : > { %2013 = vmatprep.subr.bf16.mxu0 %v7286_v9  ;;  %v908_v3 = vadd.f32 %v7819_v58, %v907_v62  ;;  %v7341_v9 = vld [vmem:[%s9616_s3 + $0x100] ss:$16 sps:$4 sm:$0xff]   ;;  %v974_v18 = vmax.f32 %v916_v14, 0.0 }
 0x1d0   : > { %v7033_v4 = vpop.f32.mrf.mxu1  ;;  %1833 = vmatpush2.bf16.msra.mxu1 %v7341_v9 }
 0x1d1   : > { %v972_v11 = vmax.f32 %v908_v3, 0.0  ;;  %v929_v27 = vadd.f32 %v7033_v4, %v7819_v58 }
 0x1d2   : > { %2014 = vmatpush2.bf16.msra.mxu0 %v7284_v13  ;;  %v920_v12 = vpop.f32.mrf.mxu1  ;;  %v913_v13 = vadd.f32 %v7029_v49, %v7819_v58 }
 0x1d3   : > { %2015 = vmatprep.subr.bf16.mxu0 %v7295_v16  ;;  %v1009_v15 = vpack.c.bf16 %v972_v11, %v971_v10  ;;  %v7348_v10 = vld [vmem:[%s9620_s7 + $0x70] sm:$0xff]  }
 0x1d4   : > { %v7034_v16 = vpop.f32.mrf.mxu1  ;;  %v973_v17 = vmax.f32 %v913_v13, 0.0  ;;  %v7350_v11 = vld [vmem:[%s9620_s7 + $0xf0] sm:$0xff]  }
 0x1d5   : > { %1190 = vmatmul.mubr.bf16.gmra.mxu0 %v1004_v21  ;;  %v921_v21 = vadd.f32 %v7819_v58, %v920_v12 }
 0x1d6   : > { %1199 = vmatprep.mubr.bf16.mxu0 %v7578_v55  ;;  %2016 = vmatpush2.bf16.msra.mxu0 %v7293_v20  ;;  %v923_v19 = vpop.f32.mrf.mxu1  ;;  %v1010_v20 = vpack.c.bf16 %v974_v18, %v973_v17  ;;  %v7349_v17 = vld [vmem:[%s9620_s7 + $0x30] sm:$0xff]  }
 0x1d7   : > { %2017 = vmatprep.subr.bf16.mxu0 %v7304_v24  ;;  %v924_v22 = vadd.f32 %v7819_v58, %v923_v19  ;;  %v975_v24 = vmax.f32 %v921_v21, 0.0  ;;  %v7351_v18 = vld [vmem:[%s9620_s7 + $0xb0] sm:$0xff]   ;;  %v7352_v21 = vld [vmem:[%s9620_s7 + $0x68] sm:$0xff]  }
 0x1d8   : > { %v7037_v23 = vpop.f32.mrf.mxu1 }
 0x1d9   : > { %v976_v25 = vmax.f32 %v924_v22, 0.0  ;;  %v945_v39 = vadd.f32 %v7037_v23, %v7819_v58  ;;  %v7354_v22 = vld [vmem:[%s9620_s7 + $0xe8] sm:$0xff]  }
 0x1da   : > { %2018 = vmatpush2.bf16.msra.mxu0 %v7302_v28  ;;  %v936_v26 = vpop.f32.mrf.mxu1  ;;  %v932_v28 = vadd.f32 %v7034_v16, %v7819_v58 }
 0x1db   : > { %2019 = vmatprep.subr.bf16.mxu0 %v7313_v31  ;;  %v1011_v29 = vpack.c.bf16 %v976_v25, %v975_v24  ;;  %v977_v31 = vmax.f32 %v929_v27, 0.0  ;;  %v937_v35 = vadd.f32 %v7819_v58, %v936_v26  ;;  %v981_v42 = vmax.f32 %v945_v39, 0.0  ;;  %v7357_v39 = vld [vmem:[%s9620_s7 + $0x20] sm:$0xff]  }
 0x1dc   : > { %v7038_v30 = vpop.f32.mrf.mxu1  ;;  %v978_v32 = vmax.f32 %v932_v28, 0.0  ;;  %v7353_v28 = vld [vmem:[%s9620_s7 + $0x28] sm:$0xff]  }
 0x1dd   : > { %1200 = vmatmul.mubr.bf16.gmra.mxu0 %v1005_v37  ;;  %v979_v37 = vmax.f32 %v937_v35, 0.0 }
 0x1de   : > { %1209 = vmatprep.mubr.bf16.mxu0 %v7578_v55  ;;  %2020 = vmatpush2.bf16.msra.mxu0 %v7311_v34  ;;  %v939_v33 = vpop.f32.mrf.mxu1  ;;  %v1012_v34 = vpack.c.bf16 %v978_v32, %v977_v31  ;;  %v7356_v32 = vld [vmem:[%s9620_s7 + $0x60] sm:$0xff]  }
 0x1df   : > { %2021 = vmatprep.subr.bf16.mxu0 %v7322_v38  ;;  %v940_v36 = vadd.f32 %v7819_v58, %v939_v33  ;;  %v7358_v33 = vld [vmem:[%s9620_s7 + $0xe0] sm:$0xff]  }
 0x1e1   : > { %v980_v38 = vmax.f32 %v940_v36, 0.0 }
 0x1e2   : > { %2022 = vmatpush2.bf16.msra.mxu0 %v7320_v40  ;;  %v948_v40 = vadd.f32 %v7038_v30, %v7819_v58  ;;  %v8072_v58 = vshrl.u32 %v1017_v47, 7 }
 0x1e3   : > { %2023 = vmatprep.subr.bf16.mxu0 %v7331_v43  ;;  %v1013_v41 = vpack.c.bf16 %v980_v38, %v979_v37 }
 0x1e4   : > { %v982_v43 = vmax.f32 %v948_v40, 0.0  ;;  %v8075_v48 = vsub.s32 1, %v8072_v58  ;;  %v8078_v49 = vsub.s32 0, %v8072_v58  ;;  %v7359_v40 = vld [vmem:[%s9620_s7 + $0xa0] sm:$0xff]  }
 0x1e5   : > { %1210 = vmatmul.mubr.bf16.gmra.mxu0 %v1006_v46  ;;  %v7346_v46 = vld [vmem:[%s9620_s7 + $0xf8] sm:$0xff]  }
 0x1e6   : > { %1219 = vmatprep.mubr.bf16.mxu0 %v7578_v55  ;;  %2024 = vmatpush2.bf16.msra.mxu0 %v7329_v45  ;;  %v1014_v44 = vpack.c.bf16 %v982_v43, %v981_v42  ;;  %v7344_v45 = vld [vmem:[%s9620_s7 + $0x78] sm:$0xff]   ;;  %v8084_v52 = vrot.slane %v1015_v50, %v8075_v48  ;;  %v8087_v53 = vrot.slane %v1015_v50, %v8078_v49 }
 0x1e7   : > { %2025 = vmatprep.subr.bf16.mxu0 %v7340_v6  ;;  %6585 = vmatprep.subr.bf16.mxu1 %v7344_v45  ;;  %v7345_v6 = vld [vmem:[%s9620_s7 + $0x38] sm:$0xff]  }
 0x1e8   : > { %v7360_v43 = vld [vmem:[%s9620_s7 + $0x58] sm:$0xff]  }
 0x1ea   : > { %2026 = vmatpush2.bf16.msra.mxu0 %v7338_v8 }
 0x1eb   : > { %6697 = vmatprep.subr.bf16.mxu0 %v7346_v46 }
 0x1ed   : > { %1220 = vmatmul.mubr.bf16.gmra.mxu0 %v1007_v5 }
 0x1ee   : > { %1229 = vmatprep.mubr.bf16.mxu0 %v7578_v55 }
 0x1f5   : > { %1230 = vmatmul.mubr.bf16.gmra.mxu0 %v1008_v1 }
 0x1f6   : > { %1239 = vmatprep.mubr.bf16.mxu0 %v7578_v55 }
 0x1fd   : > { %1240 = vmatmul.mubr.bf16.gmra.mxu0 %v1009_v15 }
 0x1fe   : > { %1249 = vmatprep.mubr.bf16.mxu0 %v7578_v55 }
 0x205   : > { %1250 = vmatmul.mubr.bf16.gmra.mxu0 %v1010_v20 }
 0x206   : > { %1259 = vmatprep.mubr.bf16.mxu0 %v7578_v55 }
 0x20d   : > { %1260 = vmatmul.mubr.bf16.gmra.mxu0 %v1011_v29  ;;  %v7355_v29 = vld [vmem:[%s9620_s7 + $0xa8] sm:$0xff]  }
 0x20e   : > { %1269 = vmatprep.mubr.bf16.mxu0 %v7578_v55 }
 0x215   : > { %1270 = vmatmul.mubr.bf16.gmra.mxu0 %v1012_v34 }
 0x216   : > { %1279 = vmatprep.mubr.bf16.mxu0 %v7578_v55 }
 0x21d   : > { %1280 = vmatmul.mubr.bf16.gmra.mxu0 %v1013_v41 }
 0x21e   : > { %1289 = vmatprep.mubr.bf16.mxu0 %v7578_v55 }
 0x225   : > { %1290 = vmatmul.mubr.bf16.gmra.mxu0 %v1014_v44  ;;  %v7362_v44 = vld [vmem:[%s9620_s7 + $0xd8] sm:$0xff]  }
 0x26d   : > { %v1141_v51 = vpop.f32.mrf.mxu0 }
 0x26e   : > { %v1142_v59 = vadd.f32 %v1141_v51, %v8087_v53 }
 0x26f   : > { %v1143_v54 = vpop.f32.mrf.mxu0 }
 0x270   : > { %v1144_v56 = vadd.f32 %v1143_v54, %v8084_v52  ;;  %v1300_v2 = vmax.f32 %v1142_v59, 0.0  ;;  %v7361_v54 = vld [vmem:[%s9620_s7 + $0x18] sm:$0xff]   ;;  %v7364_v59 = vld [vmem:[%s9620_s7 + $0x50] sm:$0xff]  }
 0x271   : > { %v1145_v5 = vpop.f32.mrf.mxu0 }
 0x272   : > { %v1146_v57 = vadd.f32 %v1145_v5, %v8087_v53  ;;  %v1301_v0 = vmax.f32 %v1144_v56, 0.0  ;;  %v7363_v5 = vld [vmem:[%s9620_s7 + $0x98] sm:$0xff]  }
 0x273   : > { %v1147_v60 = vpop.f32.mrf.mxu0 }
 0x274   : > { %v1148_v61 = vadd.f32 %v1147_v60, %v8084_v52  ;;  %v1302_v62 = vmax.f32 %v1146_v57, 0.0  ;;  %v7366_v60 = vld [vmem:[%s9620_s7 + $0xd0] sm:$0xff]  }
 0x275   : > { %v1151_v63 = vpop.f32.mrf.mxu0 }
 0x276   : > { %v1303_v1 = vmax.f32 %v1148_v61, 0.0  ;;  %v1428_v8 = vpack.c.bf16 %v1302_v62, %v1300_v2  ;;  %v1152_v14 = vadd.f32 %v1151_v63, %v8087_v53  ;;  %v7365_v2 = vld [vmem:[%s9620_s7 + $0x10] sm:$0xff]  }
 0x277   : > { %v1153_v3 = vpop.f32.mrf.mxu0 }
 0x278   : > { %v1429_v4 = vpack.c.bf16 %v1303_v1, %v1301_v0  ;;  %v1154_v12 = vadd.f32 %v1153_v3, %v8084_v52  ;;  %v1304_v25 = vmax.f32 %v1152_v14, 0.0  ;;  %v7367_v3 = vld [vmem:[%s9620_s7 + $0x90] sm:$0xff]   ;;  %v7369_v14 = vld [vmem:[%s9620_s7 + $0x8] sm:$0xff]  }
 0x279   : > { %v1155_v9 = vpop.f32.mrf.mxu0 }
 0x27a   : > { %v1156_v13 = vadd.f32 %v1155_v9, %v8087_v53  ;;  %1834 = vmatprep.mubr.bf16.mxu1 %v1429_v4  ;;  %2027 = vmatprep.mubr.bf16.mxu0 %v1429_v4  ;;  %v1305_v23 = vmax.f32 %v1154_v12, 0.0 }
 0x27b   : > { %v1157_v15 = vpop.f32.mrf.mxu0  ;;  %1835 = vmatmul.mubr.bf16.vlgmr.msra.gmra.mxu1 %v1428_v8  ;;  %2028 = vmatmul.mubr.bf16.vlgmr.msra.gmra.mxu0 %v1428_v8  ;;  %v7370_v8 = vld [vmem:[%s9620_s7 + $0xc8] sm:$0xff]  }
 0x27c   : > { %v1158_v16 = vadd.f32 %v1157_v15, %v8084_v52  ;;  %6586 = vmatpush3.bf16.msra.mxu1 %v7345_v6  ;;  %6698 = vmatpush3.bf16.msra.mxu0 %v7347_v7  ;;  %v1306_v19 = vmax.f32 %v1156_v13, 0.0  ;;  %v7368_v7 = vld [vmem:[%s9620_s7 + $0x48] sm:$0xff]  }
 0x27d   : > { %v1161_v20 = vpop.f32.mrf.mxu0  ;;  %6587 = vmatprep.subr.bf16.mxu1 %v7348_v10  ;;  %6699 = vmatprep.subr.bf16.mxu0 %v7350_v11  ;;  %v7371_v15 = vld [vmem:[%s9620_s7 + $0x88] sm:$0xff]  }
 0x27e   : > { %v1307_v24 = vmax.f32 %v1158_v16, 0.0  ;;  %v1430_v30 = vpack.c.bf16 %v1306_v19, %v1304_v25  ;;  %v1162_v36 = vadd.f32 %v1161_v20, %v8087_v53  ;;  %v7374_v19 = vld [vmem:[%s9620_s7 + $0xc0] sm:$0xff]  }
 0x27f   : > { %v1163_v26 = vpop.f32.mrf.mxu0  ;;  %v7373_v25 = vld [vmem:[%s9620_s7] sm:$0xff]  }
 0x280   : > { %v1431_v27 = vpack.c.bf16 %v1307_v24, %v1305_v23  ;;  %6588 = vmatpush3.bf16.msra.mxu1 %v7349_v17  ;;  %6700 = vmatpush3.bf16.msra.mxu0 %v7351_v18  ;;  %v1164_v34 = vadd.f32 %v1163_v26, %v8084_v52  ;;  %v1308_v47 = vmax.f32 %v1162_v36, 0.0  ;;  %v7372_v18 = vld [vmem:[%s9620_s7 + $0x40] sm:$0xff]  }
 0x281   : > { %v1165_v31 = vpop.f32.mrf.mxu0  ;;  %6589 = vmatprep.subr.bf16.mxu1 %v7352_v21  ;;  %6701 = vmatprep.subr.bf16.mxu0 %v7354_v22 }
 0x282   : > { %v1166_v35 = vadd.f32 %v1165_v31, %v8087_v53  ;;  %1844 = vmatprep.mubr.bf16.mxu1 %v1431_v27  ;;  %2037 = vmatprep.mubr.bf16.mxu0 %v1431_v27  ;;  %v1309_v45 = vmax.f32 %v1164_v34, 0.0 }
 0x283   : > { %v1167_v37 = vpop.f32.mrf.mxu0  ;;  %1845 = vmatmul.mubr.bf16.gmra.mxu1 %v1430_v30  ;;  %2038 = vmatmul.mubr.bf16.gmra.mxu0 %v1430_v30 }
 0x284   : > { %v1168_v38 = vadd.f32 %v1167_v37, %v8084_v52  ;;  %6590 = vmatpush3.bf16.msra.mxu1 %v7353_v28  ;;  %6702 = vmatpush3.bf16.msra.mxu0 %v7355_v29  ;;  %v1310_v41 = vmax.f32 %v1166_v35, 0.0 }
 0x285   : > { %v1171_v42 = vpop.f32.mrf.mxu0  ;;  %6591 = vmatprep.subr.bf16.mxu1 %v7356_v32  ;;  %6703 = vmatprep.subr.bf16.mxu0 %v7358_v33 }
 0x286   : > { %v1311_v46 = vmax.f32 %v1168_v38, 0.0  ;;  %v1432_v56 = vpack.c.bf16 %v1310_v41, %v1308_v47  ;;  %v1172_v63 = vadd.f32 %v1171_v42, %v8087_v53 }
 0x287   : > { %v1173_v50 = vpop.f32.mrf.mxu0 }
 0x288   : > { %v1433_v51 = vpack.c.bf16 %v1311_v46, %v1309_v45  ;;  %6592 = vmatpush3.bf16.msra.mxu1 %v7357_v39  ;;  %6704 = vmatpush3.bf16.msra.mxu0 %v7359_v40  ;;  %v1174_v61 = vadd.f32 %v1173_v50, %v8084_v52  ;;  %v1312_v11 = vmax.f32 %v1172_v63, 0.0 }
 0x289   : > { %v1175_v57 = vpop.f32.mrf.mxu0  ;;  %6593 = vmatprep.subr.bf16.mxu1 %v7360_v43  ;;  %6705 = vmatprep.subr.bf16.mxu0 %v7362_v44 }
 0x28a   : > { %v1176_v62 = vadd.f32 %v1175_v57, %v8087_v53  ;;  %1854 = vmatprep.mubr.bf16.mxu1 %v1433_v51  ;;  %2047 = vmatprep.mubr.bf16.mxu0 %v1433_v51  ;;  %v1313_v9 = vmax.f32 %v1174_v61, 0.0 }
 0x28b   : > { %v1177_v0 = vpop.f32.mrf.mxu0  ;;  %1855 = vmatmul.mubr.bf16.gmra.mxu1 %v1432_v56  ;;  %2048 = vmatmul.mubr.bf16.gmra.mxu0 %v1432_v56 }
 0x28c   : > { %v1178_v1 = vadd.f32 %v1177_v0, %v8084_v52  ;;  %6594 = vmatpush3.bf16.msra.mxu1 %v7361_v54  ;;  %6706 = vmatpush3.bf16.msra.mxu0 %v7363_v5  ;;  %v1314_v4 = vmax.f32 %v1176_v62, 0.0 }
 0x28d   : > { %v1181_v6 = vpop.f32.mrf.mxu0  ;;  %6595 = vmatprep.subr.bf16.mxu1 %v7364_v59  ;;  %6707 = vmatprep.subr.bf16.mxu0 %v7366_v60 }
 0x28e   : > { %v1315_v10 = vmax.f32 %v1178_v1, 0.0  ;;  %v1434_v16 = vpack.c.bf16 %v1314_v4, %v1312_v11  ;;  %v1182_v22 = vadd.f32 %v1181_v6, %v8087_v53 }
 0x28f   : > { %v1183_v12 = vpop.f32.mrf.mxu0 }
 0x290   : > { %v1435_v13 = vpack.c.bf16 %v1315_v10, %v1313_v9  ;;  %6596 = vmatpush3.bf16.msra.mxu1 %v7365_v2  ;;  %6708 = vmatpush3.bf16.msra.mxu0 %v7367_v3  ;;  %v1184_v20 = vadd.f32 %v1183_v12, %v8084_v52  ;;  %v1316_v30 = vmax.f32 %v1182_v22, 0.0 }
 0x291   : > { %v1185_v17 = vpop.f32.mrf.mxu0  ;;  %6597 = vmatprep.subr.bf16.mxu1 %v7368_v7  ;;  %6709 = vmatprep.subr.bf16.mxu0 %v7370_v8 }
 0x292   : > { %v1186_v21 = vadd.f32 %v1185_v17, %v8087_v53  ;;  %1864 = vmatprep.mubr.bf16.mxu1 %v1435_v13  ;;  %2057 = vmatprep.mubr.bf16.mxu0 %v1435_v13  ;;  %v1317_v28 = vmax.f32 %v1184_v20, 0.0 }
 0x293   : > { %v1187_v23 = vpop.f32.mrf.mxu0  ;;  %1865 = vmatmul.mubr.bf16.gmra.mxu1 %v1434_v16  ;;  %2058 = vmatmul.mubr.bf16.gmra.mxu0 %v1434_v16 }
 0x294   : > { %v1188_v24 = vadd.f32 %v1187_v23, %v8084_v52  ;;  %6598 = vmatpush3.bf16.msra.mxu1 %v7369_v14  ;;  %6710 = vmatpush3.bf16.msra.mxu0 %v7371_v15  ;;  %v1318_v26 = vmax.f32 %v1186_v21, 0.0 }
 0x295   : > { %v1191_v27 = vpop.f32.mrf.mxu0  ;;  %6599 = vmatprep.subr.bf16.mxu1 %v7372_v18  ;;  %6711 = vmatprep.subr.bf16.mxu0 %v7374_v19 }
 0x296   : > { %v1319_v29 = vmax.f32 %v1188_v24, 0.0  ;;  %v1436_v33 = vpack.c.bf16 %v1318_v26, %v1316_v30  ;;  %v1192_v37 = vadd.f32 %v1191_v27, %v8087_v53 }
 0x297   : > { %v1193_v31 = vpop.f32.mrf.mxu0 }
 0x298   : > { %v1437_v32 = vpack.c.bf16 %v1319_v29, %v1317_v28  ;;  %6600 = vmatpush3.bf16.msra.mxu1 %v7373_v25  ;;  %v1194_v35 = vadd.f32 %v1193_v31, %v8084_v52  ;;  %v1320_v44 = vmax.f32 %v1192_v37, 0.0 }
 0x299   : > { %v1195_v34 = vpop.f32.mrf.mxu0 }
 0x29a   : > { %v1196_v36 = vadd.f32 %v1195_v34, %v8087_v53  ;;  %1874 = vmatprep.mubr.bf16.mxu1 %v1437_v32  ;;  %2067 = vmatprep.mubr.bf16.mxu0 %v1437_v32  ;;  %v1321_v42 = vmax.f32 %v1194_v35, 0.0 }
 0x29b   : > { %v1197_v38 = vpop.f32.mrf.mxu0  ;;  %1875 = vmatmul.mubr.bf16.gmra.mxu1 %v1436_v33  ;;  %2068 = vmatmul.mubr.bf16.gmra.mxu0 %v1436_v33 }
 0x29c   : > { %v1198_v39 = vadd.f32 %v1197_v38, %v8084_v52  ;;  %v1322_v40 = vmax.f32 %v1196_v36, 0.0 }
 0x29d   : > { %v1201_v41 = vpop.f32.mrf.mxu0 }
 0x29e   : > { %v1323_v43 = vmax.f32 %v1198_v39, 0.0  ;;  %v1438_v47 = vpack.c.bf16 %v1322_v40, %v1320_v44  ;;  %v1202_v5 = vadd.f32 %v1201_v41, %v8087_v53 }
 0x29f   : > { %v1203_v45 = vpop.f32.mrf.mxu0 }
 0x2a0   : > { %v1439_v46 = vpack.c.bf16 %v1323_v43, %v1321_v42  ;;  %v1204_v51 = vadd.f32 %v1203_v45, %v8084_v52  ;;  %v1324_v63 = vmax.f32 %v1202_v5, 0.0  ;;  %v7375_v42 = vld [vmem:[%s9620_s7 + $0x80] sm:$0xff]  }
 0x2a1   : > { %v1205_v50 = vpop.f32.mrf.mxu0  ;;  %6712 = vmatpush3.bf16.msra.mxu0 %v7375_v42 }
 0x2a2   : > { %v1206_v54 = vadd.f32 %v1205_v50, %v8087_v53  ;;  %1884 = vmatprep.mubr.bf16.mxu1 %v1439_v46  ;;  %2077 = vmatprep.mubr.bf16.mxu0 %v1439_v46  ;;  %v1325_v61 = vmax.f32 %v1204_v51, 0.0 }
 0x2a3   : > { %v1207_v56 = vpop.f32.mrf.mxu0  ;;  %1885 = vmatmul.mubr.bf16.gmra.mxu1 %v1438_v47  ;;  %2078 = vmatmul.mubr.bf16.gmra.mxu0 %v1438_v47 }
 0x2a4   : > { %v1208_v57 = vadd.f32 %v1207_v56, %v8084_v52  ;;  %v1326_v59 = vmax.f32 %v1206_v54, 0.0 }
 0x2a5   : > { %v1211_v60 = vpop.f32.mrf.mxu0 }
 0x2a6   : > { %v1327_v62 = vmax.f32 %v1208_v57, 0.0  ;;  %v1440_v2 = vpack.c.bf16 %v1326_v59, %v1324_v63  ;;  %v1212_v7 = vadd.f32 %v1211_v60, %v8087_v53 }
 0x2a7   : > { %v1213_v0 = vpop.f32.mrf.mxu0 }
 0x2a8   : > { %v1441_v1 = vpack.c.bf16 %v1327_v62, %v1325_v61  ;;  %v1214_v4 = vadd.f32 %v1213_v0, %v8084_v52  ;;  %v1328_v14 = vmax.f32 %v1212_v7, 0.0 }
 0x2a9   : > { %v1215_v3 = vpop.f32.mrf.mxu0 }
 0x2aa   : > { %v1216_v6 = vadd.f32 %v1215_v3, %v8087_v53  ;;  %1894 = vmatprep.mubr.bf16.mxu1 %v1441_v1  ;;  %2087 = vmatprep.mubr.bf16.mxu0 %v1441_v1  ;;  %v1329_v12 = vmax.f32 %v1214_v4, 0.0 }
 0x2ab   : > { %v1217_v8 = vpop.f32.mrf.mxu0  ;;  %1895 = vmatmul.mubr.bf16.gmra.mxu1 %v1440_v2  ;;  %2088 = vmatmul.mubr.bf16.gmra.mxu0 %v1440_v2 }
 0x2ac   : > { %v1218_v9 = vadd.f32 %v1217_v8, %v8084_v52  ;;  %v1330_v10 = vmax.f32 %v1216_v6, 0.0 }
 0x2ad   : > { %v1221_v11 = vpop.f32.mrf.mxu0 }
 0x2ae   : > { %v1331_v13 = vmax.f32 %v1218_v9, 0.0  ;;  %v1442_v17 = vpack.c.bf16 %v1330_v10, %v1328_v14  ;;  %v1222_v21 = vadd.f32 %v1221_v11, %v8087_v53 }
 0x2af   : > { %v1223_v15 = vpop.f32.mrf.mxu0 }
 0x2b0   : > { %v1443_v16 = vpack.c.bf16 %v1331_v13, %v1329_v12  ;;  %v1224_v19 = vadd.f32 %v1223_v15, %v8084_v52  ;;  %v1332_v28 = vmax.f32 %v1222_v21, 0.0 }
 0x2b1   : > { %v1225_v18 = vpop.f32.mrf.mxu0 }
 0x2b2   : > { %v1226_v20 = vadd.f32 %v1225_v18, %v8087_v53  ;;  %1904 = vmatprep.mubr.bf16.mxu1 %v1443_v16  ;;  %2097 = vmatprep.mubr.bf16.mxu0 %v1443_v16  ;;  %v1333_v26 = vmax.f32 %v1224_v19, 0.0 }
 0x2b3   : > { %v1227_v22 = vpop.f32.mrf.mxu0  ;;  %1905 = vmatmul.mubr.bf16.gmra.mxu1 %v1442_v17  ;;  %2098 = vmatmul.mubr.bf16.gmra.mxu0 %v1442_v17 }
 0x2b4   : > { %v1228_v23 = vadd.f32 %v1227_v22, %v8084_v52  ;;  %v1334_v24 = vmax.f32 %v1226_v20, 0.0 }
 0x2b5   : > { %v1231_v25 = vpop.f32.mrf.mxu0 }
 0x2b6   : > { %v1335_v27 = vmax.f32 %v1228_v23, 0.0  ;;  %v1444_v31 = vpack.c.bf16 %v1334_v24, %v1332_v28  ;;  %v1232_v35 = vadd.f32 %v1231_v25, %v8087_v53 }
 0x2b7   : > { %v1233_v29 = vpop.f32.mrf.mxu0 }
 0x2b8   : > { %v1445_v30 = vpack.c.bf16 %v1335_v27, %v1333_v26  ;;  %v1234_v33 = vadd.f32 %v1233_v29, %v8084_v52  ;;  %v1336_v43 = vmax.f32 %v1232_v35, 0.0 }
 0x2b9   : > { %v1235_v32 = vpop.f32.mrf.mxu0 }
 0x2ba   : > { %v1236_v34 = vadd.f32 %v1235_v32, %v8087_v53  ;;  %1914 = vmatprep.mubr.bf16.mxu1 %v1445_v30  ;;  %2107 = vmatprep.mubr.bf16.mxu0 %v1445_v30  ;;  %v1337_v40 = vmax.f32 %v1234_v33, 0.0 }
 0x2bb   : > { %v1237_v36 = vpop.f32.mrf.mxu0  ;;  %1915 = vmatmul.mubr.bf16.gmra.mxu1 %v1444_v31  ;;  %2108 = vmatmul.mubr.bf16.gmra.mxu0 %v1444_v31 }
 0x2bc   : > { %v1238_v37 = vadd.f32 %v1237_v36, %v8084_v52  ;;  %v1338_v38 = vmax.f32 %v1236_v34, 0.0 }
 0x2bd   : > { %v1241_v39 = vpop.f32.mrf.mxu0 }
 0x2be   : > { %v1339_v41 = vmax.f32 %v1238_v37, 0.0  ;;  %v1446_v46 = vpack.c.bf16 %v1338_v38, %v1336_v43  ;;  %v1242_v54 = vadd.f32 %v1241_v39, %v8087_v53 }
 0x2bf   : > { %v1243_v44 = vpop.f32.mrf.mxu0 }
 0x2c0   : > { %v1447_v45 = vpack.c.bf16 %v1339_v41, %v1337_v40  ;;  %v1244_v50 = vadd.f32 %v1243_v44, %v8084_v52  ;;  %v1340_v62 = vmax.f32 %v1242_v54, 0.0 }
 0x2c1   : > { %v1245_v47 = vpop.f32.mrf.mxu0 }
 0x2c2   : > { %v1246_v51 = vadd.f32 %v1245_v47, %v8087_v53  ;;  %1924 = vmatprep.mubr.bf16.mxu1 %v1447_v45  ;;  %2117 = vmatprep.mubr.bf16.mxu0 %v1447_v45  ;;  %v1341_v60 = vmax.f32 %v1244_v50, 0.0 }
 0x2c3   : > { %v1247_v5 = vpop.f32.mrf.mxu0  ;;  %1925 = vmatmul.mubr.bf16.gmra.mxu1 %v1446_v46  ;;  %2118 = vmatmul.mubr.bf16.gmra.mxu0 %v1446_v46 }
 0x2c4   : > { %v1248_v56 = vadd.f32 %v1247_v5, %v8084_v52  ;;  %v1342_v57 = vmax.f32 %v1246_v51, 0.0 }
 0x2c5   : > { %v1251_v59 = vpop.f32.mrf.mxu0 }
 0x2c6   : > { %v1343_v61 = vmax.f32 %v1248_v56, 0.0  ;;  %v1448_v1 = vpack.c.bf16 %v1342_v57, %v1340_v62  ;;  %v1252_v6 = vadd.f32 %v1251_v59, %v8087_v53 }
 0x2c7   : > { %v1253_v63 = vpop.f32.mrf.mxu0 }
 0x2c8   : > { %v1449_v0 = vpack.c.bf16 %v1343_v61, %v1341_v60  ;;  %v1254_v3 = vadd.f32 %v1253_v63, %v8084_v52  ;;  %v1344_v13 = vmax.f32 %v1252_v6, 0.0 }
 0x2c9   : > { %v1255_v2 = vpop.f32.mrf.mxu0 }
 0x2ca   : > { %v1256_v4 = vadd.f32 %v1255_v2, %v8087_v53  ;;  %1934 = vmatprep.mubr.bf16.mxu1 %v1449_v0  ;;  %2127 = vmatprep.mubr.bf16.mxu0 %v1449_v0  ;;  %v1345_v11 = vmax.f32 %v1254_v3, 0.0 }
 0x2cb   : > { %v1257_v7 = vpop.f32.mrf.mxu0  ;;  %1935 = vmatmul.mubr.bf16.gmra.mxu1 %v1448_v1  ;;  %2128 = vmatmul.mubr.bf16.gmra.mxu0 %v1448_v1 }
 0x2cc   : > { %v1258_v8 = vadd.f32 %v1257_v7, %v8084_v52  ;;  %v1346_v9 = vmax.f32 %v1256_v4, 0.0 }
 0x2cd   : > { %v1261_v10 = vpop.f32.mrf.mxu0 }
 0x2ce   : > { %v1347_v12 = vmax.f32 %v1258_v8, 0.0  ;;  %v1450_v16 = vpack.c.bf16 %v1346_v9, %v1344_v13  ;;  %v1262_v20 = vadd.f32 %v1261_v10, %v8087_v53  ;;  %v1476_v13 = vsub.s32 3, %v8072_v58 }
 0x2cf   : > { %v1263_v14 = vpop.f32.mrf.mxu0 }
 0x2d0   : > { %v1451_v15 = vpack.c.bf16 %v1347_v12, %v1345_v11  ;;  %v1264_v18 = vadd.f32 %v1263_v14, %v8084_v52  ;;  %v1348_v27 = vmax.f32 %v1262_v20, 0.0  ;;  %v1472_v14 = vsub.s32 2, %v8072_v58 }
 0x2d1   : > { %v1265_v17 = vpop.f32.mrf.mxu0 }
 0x2d2   : > { %v1266_v19 = vadd.f32 %v1265_v17, %v8087_v53  ;;  %1944 = vmatprep.mubr.bf16.mxu1 %v1451_v15  ;;  %2137 = vmatprep.mubr.bf16.mxu0 %v1451_v15  ;;  %v1349_v25 = vmax.f32 %v1264_v18, 0.0 }
 0x2d3   : > { %v1267_v21 = vpop.f32.mrf.mxu0  ;;  %1945 = vmatmul.mubr.bf16.gmra.mxu1 %v1450_v16  ;;  %2138 = vmatmul.mubr.bf16.gmra.mxu0 %v1450_v16 }
 0x2d4   : > { %v1268_v22 = vadd.f32 %v1267_v21, %v8084_v52  ;;  %v1350_v23 = vmax.f32 %v1266_v19, 0.0 }
 0x2d5   : > { %v1271_v24 = vpop.f32.mrf.mxu0 }
 0x2d6   : > { %v1351_v26 = vmax.f32 %v1268_v22, 0.0  ;;  %v1452_v30 = vpack.c.bf16 %v1350_v23, %v1348_v27  ;;  %v1272_v34 = vadd.f32 %v1271_v24, %v8087_v53 }
 0x2d7   : > { %v1273_v28 = vpop.f32.mrf.mxu0 }
 0x2d8   : > { %v1453_v29 = vpack.c.bf16 %v1351_v26, %v1349_v25  ;;  %v1274_v32 = vadd.f32 %v1273_v28, %v8084_v52  ;;  %v1352_v41 = vmax.f32 %v1272_v34, 0.0 }
 0x2d9   : > { %v1275_v31 = vpop.f32.mrf.mxu0 }
 0x2da   : > { %v1276_v33 = vadd.f32 %v1275_v31, %v8087_v53  ;;  %1954 = vmatprep.mubr.bf16.mxu1 %v1453_v29  ;;  %2147 = vmatprep.mubr.bf16.mxu0 %v1453_v29  ;;  %v1353_v39 = vmax.f32 %v1274_v32, 0.0 }
 0x2db   : > { %v1277_v35 = vpop.f32.mrf.mxu0  ;;  %1955 = vmatmul.mubr.bf16.gmra.mxu1 %v1452_v30  ;;  %2148 = vmatmul.mubr.bf16.gmra.mxu0 %v1452_v30 }
 0x2dc   : > { %v1278_v36 = vadd.f32 %v1277_v35, %v8084_v52  ;;  %v1354_v37 = vmax.f32 %v1276_v33, 0.0 }
 0x2dd   : > { %v1281_v38 = vpop.f32.mrf.mxu0 }
 0x2de   : > { %v1355_v40 = vmax.f32 %v1278_v36, 0.0  ;;  %v1454_v44 = vpack.c.bf16 %v1354_v37, %v1352_v41  ;;  %v1282_v50 = vadd.f32 %v1281_v38, %v8087_v53 }
 0x2df   : > { %v1283_v42 = vpop.f32.mrf.mxu0 }
 0x2e0   : > { %v1455_v43 = vpack.c.bf16 %v1355_v40, %v1353_v39  ;;  %v1284_v46 = vadd.f32 %v1283_v42, %v8084_v52  ;;  %v1356_v60 = vmax.f32 %v1282_v50, 0.0 }
 0x2e1   : > { %v1285_v45 = vpop.f32.mrf.mxu0 }
 0x2e2   : > { %v1286_v47 = vadd.f32 %v1285_v45, %v8087_v53  ;;  %1964 = vmatprep.mubr.bf16.mxu1 %v1455_v43  ;;  %2157 = vmatprep.mubr.bf16.mxu0 %v1455_v43  ;;  %v1357_v57 = vmax.f32 %v1284_v46, 0.0 }
 0x2e3   : > { %v1287_v51 = vpop.f32.mrf.mxu0  ;;  %1965 = vmatmul.mubr.bf16.gmra.mxu1 %v1454_v44  ;;  %2158 = vmatmul.mubr.bf16.gmra.mxu0 %v1454_v44 }
 0x2e4   : > { %v1288_v54 = vadd.f32 %v1287_v51, %v8084_v52  ;;  %v1358_v5 = vmax.f32 %v1286_v47, 0.0 }
 0x2e5   : > { %v1291_v56 = vpop.f32.mrf.mxu0 }
 0x2e6   : > { %v1359_v59 = vmax.f32 %v1288_v54, 0.0  ;;  %v1456_v63 = vpack.c.bf16 %v1358_v5, %v1356_v60  ;;  %v1292_v3 = vadd.f32 %v1291_v56, %v8087_v53 }
 0x2e7   : > { %v1293_v61 = vpop.f32.mrf.mxu0 }
 0x2e8   : > { %v1457_v62 = vpack.c.bf16 %v1359_v59, %v1357_v57  ;;  %v1294_v1 = vadd.f32 %v1293_v61, %v8084_v52  ;;  %v1360_v10 = vmax.f32 %v1292_v3, 0.0 }
 0x2e9   : > { %v1295_v0 = vpop.f32.mrf.mxu0 }
 0x2ea   : > { %v1296_v2 = vadd.f32 %v1295_v0, %v8087_v53  ;;  %1974 = vmatprep.mubr.bf16.mxu1 %v1457_v62  ;;  %2167 = vmatprep.mubr.bf16.mxu0 %v1457_v62  ;;  %v1361_v8 = vmax.f32 %v1294_v1, 0.0  ;;  %v1460_v53 = vld [vmem:[%s9621_s8 + $0x4] sm:$0xf] }
 0x2eb   : > { %v1297_v4 = vpop.f32.mrf.mxu0  ;;  %1975 = vmatmul.mubr.bf16.gmra.mxu1 %v1456_v63  ;;  %2168 = vmatmul.mubr.bf16.gmra.mxu0 %v1456_v63  ;;  %v8249_v16 = vrot.slane %v1460_v53, %v8075_v48  ;;  %v8253_v17 = vrot.slane %v1460_v53, %v1476_v13  ;;  %v8256_v18 = vrot.slane %v1460_v53, %v8078_v49 }
 0x2ec   : > { %v1298_v6 = vadd.f32 %v1297_v4, %v8084_v52  ;;  %v1362_v7 = vmax.f32 %v1296_v2, 0.0  ;;  %v8260_v19 = vrot.slane %v1460_v53, %v1472_v14 }
 0x2ee   : > { %v1363_v9 = vmax.f32 %v1298_v6, 0.0  ;;  %v1458_v12 = vpack.c.bf16 %v1362_v7, %v1360_v10 }
 0x2f0   : > { %v1459_v11 = vpack.c.bf16 %v1363_v9, %v1361_v8 }
 0x2f2   : > { %1984 = vmatprep.mubr.bf16.mxu1 %v1459_v11  ;;  %2177 = vmatprep.mubr.bf16.mxu0 %v1459_v11 }
 0x2f3   : > { %1985 = vmatmul.mubr.bf16.gmra.mxu1 %v1458_v12  ;;  %2178 = vmatmul.mubr.bf16.gmra.mxu0 %v1458_v12 }
 0x33b   : > { %v1836_v15 = vpop.f32.mrf.mxu1  ;;  %v2029_v52 = vpop.f32.mrf.mxu0 }
 0x33c   : > { %v1837_v28 = vadd.f32 %v1836_v15, %v8256_v18  ;;  %v2030_v29 = vadd.f32 %v2029_v52, %v8260_v19 }
 0x33d   : > { %v1838_v20 = vpop.f32.mrf.mxu1  ;;  %v2031_v21 = vpop.f32.mrf.mxu0 }
 0x33e   : > { %v1839_v24 = vadd.f32 %v1838_v20, %v8249_v16  ;;  %v2032_v25 = vadd.f32 %v2031_v21, %v8253_v17  ;;  %v2188_v42 = vmax.f32 %v1837_v28, 0.0  ;;  %v2190_v43 = vmax.f32 %v2030_v29, 0.0 }
 0x33f   : > { %v1840_v22 = vpop.f32.mrf.mxu1  ;;  %v2033_v23 = vpop.f32.mrf.mxu0 }
 0x340   : > { %v1841_v26 = vadd.f32 %v1840_v22, %v8256_v18  ;;  %v2034_v27 = vadd.f32 %v2033_v23, %v8260_v19  ;;  %v2189_v38 = vmax.f32 %v1839_v24, 0.0  ;;  %v2191_v39 = vmax.f32 %v2032_v25, 0.0 }
 0x341   : > { %v1842_v30 = vpop.f32.mrf.mxu1  ;;  %v2035_v31 = vpop.f32.mrf.mxu0 }
 0x342   : > { %v1843_v32 = vadd.f32 %v1842_v30, %v8249_v16  ;;  %v2036_v33 = vadd.f32 %v2035_v31, %v8253_v17  ;;  %v2192_v34 = vmax.f32 %v1841_v26, 0.0  ;;  %v2194_v35 = vmax.f32 %v2034_v27, 0.0 }
 0x343   : > { %v1846_v36 = vpop.f32.mrf.mxu1  ;;  %v2039_v37 = vpop.f32.mrf.mxu0 }
 0x344   : > { %v2193_v40 = vmax.f32 %v1843_v32, 0.0  ;;  %v2195_v41 = vmax.f32 %v2036_v33, 0.0  ;;  %v2380_v50 = vpack.c.bf16 %v2192_v34, %v2188_v42  ;;  %v2382_v51 = vpack.c.bf16 %v2194_v35, %v2190_v43 }
 0x345   : > { %v1848_v44 = vpop.f32.mrf.mxu1  ;;  %v2041_v45 = vpop.f32.mrf.mxu0  ;;  %v1847_v61 = vadd.f32 %v1846_v36, %v8256_v18  ;;  %v2040_v62 = vadd.f32 %v2039_v37, %v8260_v19 }
 0x346   : > { %v2381_v46 = vpack.c.bf16 %v2193_v40, %v2189_v38  ;;  %v2383_v47 = vpack.c.bf16 %v2195_v41, %v2191_v39  ;;  %v1849_v54 = vadd.f32 %v1848_v44, %v8249_v16  ;;  %v2042_v57 = vadd.f32 %v2041_v45, %v8253_v17 }
 0x347   : > { %v1850_v5 = vpop.f32.mrf.mxu1  ;;  %v2043_v56 = vpop.f32.mrf.mxu0  ;;  %v2196_v12 = vmax.f32 %v1847_v61, 0.0  ;;  %v2198_v53 = vmax.f32 %v2040_v62, 0.0 }
 0x348   : > { %v1851_v59 = vadd.f32 %v1850_v5, %v8256_v18  ;;  %v2044_v60 = vadd.f32 %v2043_v56, %v8260_v19  ;;  %2675 = vmatprep.mubr.bf16.mxu1 %v2381_v46  ;;  %2836 = vmatprep.mubr.bf16.mxu0 %v2383_v47  ;;  %v2197_v8 = vmax.f32 %v1849_v54, 0.0  ;;  %v2199_v9 = vmax.f32 %v2042_v57, 0.0 }
 0x349   : > { %v1852_v63 = vpop.f32.mrf.mxu1  ;;  %v2045_v0 = vpop.f32.mrf.mxu0  ;;  %2676 = vmatmul.mubr.bf16.vlgmr.msra.gmra.mxu1 %v2380_v50  ;;  %2837 = vmatmul.mubr.bf16.vlgmr.msra.gmra.mxu0 %v2382_v51 }
 0x34a   : > { %v1853_v1 = vadd.f32 %v1852_v63, %v8249_v16  ;;  %v2046_v2 = vadd.f32 %v2045_v0, %v8253_v17  ;;  %v2200_v3 = vmax.f32 %v1851_v59, 0.0  ;;  %v2202_v4 = vmax.f32 %v2044_v60, 0.0 }
 0x34b   : > { %v1856_v6 = vpop.f32.mrf.mxu1  ;;  %v2049_v7 = vpop.f32.mrf.mxu0 }
 0x34c   : > { %v2201_v10 = vmax.f32 %v1853_v1, 0.0  ;;  %v2203_v11 = vmax.f32 %v2046_v2, 0.0  ;;  %v2384_v22 = vpack.c.bf16 %v2200_v3, %v2196_v12  ;;  %v2386_v23 = vpack.c.bf16 %v2202_v4, %v2198_v53 }
 0x34d   : > { %v1858_v15 = vpop.f32.mrf.mxu1  ;;  %v2051_v52 = vpop.f32.mrf.mxu0  ;;  %v1857_v30 = vadd.f32 %v1856_v6, %v8256_v18  ;;  %v2050_v31 = vadd.f32 %v2049_v7, %v8260_v19 }
 0x34e   : > { %v2385_v20 = vpack.c.bf16 %v2201_v10, %v2197_v8  ;;  %v2387_v21 = vpack.c.bf16 %v2203_v11, %v2199_v9  ;;  %v1859_v24 = vadd.f32 %v1858_v15, %v8249_v16  ;;  %v2052_v27 = vadd.f32 %v2051_v52, %v8253_v17 }
 0x34f   : > { %v1860_v25 = vpop.f32.mrf.mxu1  ;;  %v2053_v26 = vpop.f32.mrf.mxu0  ;;  %v2204_v44 = vmax.f32 %v1857_v30, 0.0  ;;  %v2206_v45 = vmax.f32 %v2050_v31, 0.0 }
 0x350   : > { %v1861_v28 = vadd.f32 %v1860_v25, %v8256_v18  ;;  %v2054_v29 = vadd.f32 %v2053_v26, %v8260_v19  ;;  %2683 = vmatprep.mubr.bf16.mxu1 %v2385_v20  ;;  %2844 = vmatprep.mubr.bf16.mxu0 %v2387_v21  ;;  %v2205_v40 = vmax.f32 %v1859_v24, 0.0  ;;  %v2207_v41 = vmax.f32 %v2052_v27, 0.0 }
 0x351   : > { %v1862_v32 = vpop.f32.mrf.mxu1  ;;  %v2055_v33 = vpop.f32.mrf.mxu0  ;;  %2684 = vmatmul.mubr.bf16.gmra.mxu1 %v2384_v22  ;;  %2845 = vmatmul.mubr.bf16.gmra.mxu0 %v2386_v23 }
 0x352   : > { %v1863_v34 = vadd.f32 %v1862_v32, %v8249_v16  ;;  %v2056_v35 = vadd.f32 %v2055_v33, %v8253_v17  ;;  %v2208_v36 = vmax.f32 %v1861_v28, 0.0  ;;  %v2210_v37 = vmax.f32 %v2054_v29, 0.0 }
 0x353   : > { %v1866_v38 = vpop.f32.mrf.mxu1  ;;  %v2059_v39 = vpop.f32.mrf.mxu0 }
 0x354   : > { %v2209_v42 = vmax.f32 %v1863_v34, 0.0  ;;  %v2211_v43 = vmax.f32 %v2056_v35, 0.0  ;;  %v2388_v54 = vpack.c.bf16 %v2208_v36, %v2204_v44  ;;  %v2390_v5 = vpack.c.bf16 %v2210_v37, %v2206_v45 }
 0x355   : > { %v1868_v46 = vpop.f32.mrf.mxu1  ;;  %v2061_v47 = vpop.f32.mrf.mxu0  ;;  %v1867_v63 = vadd.f32 %v1866_v38, %v8256_v18  ;;  %v2060_v0 = vadd.f32 %v2059_v39, %v8260_v19 }
 0x356   : > { %v2389_v50 = vpack.c.bf16 %v2209_v42, %v2205_v40  ;;  %v2391_v51 = vpack.c.bf16 %v2211_v43, %v2207_v41  ;;  %v1869_v56 = vadd.f32 %v1868_v46, %v8249_v16  ;;  %v2062_v60 = vadd.f32 %v2061_v47, %v8253_v17 }
 0x357   : > { %v1870_v57 = vpop.f32.mrf.mxu1  ;;  %v2063_v59 = vpop.f32.mrf.mxu0  ;;  %v2212_v15 = vmax.f32 %v1867_v63, 0.0  ;;  %v2214_v52 = vmax.f32 %v2060_v0, 0.0 }
 0x358   : > { %v1871_v61 = vadd.f32 %v1870_v57, %v8256_v18  ;;  %v2064_v62 = vadd.f32 %v2063_v59, %v8260_v19  ;;  %2691 = vmatprep.mubr.bf16.mxu1 %v2389_v50  ;;  %2852 = vmatprep.mubr.bf16.mxu0 %v2391_v51  ;;  %v2213_v10 = vmax.f32 %v1869_v56, 0.0  ;;  %v2215_v11 = vmax.f32 %v2062_v60, 0.0 }
 0x359   : > { %v1872_v1 = vpop.f32.mrf.mxu1  ;;  %v2065_v2 = vpop.f32.mrf.mxu0  ;;  %2692 = vmatmul.mubr.bf16.gmra.mxu1 %v2388_v54  ;;  %2853 = vmatmul.mubr.bf16.gmra.mxu0 %v2390_v5 }
 0x35a   : > { %v1873_v3 = vadd.f32 %v1872_v1, %v8249_v16  ;;  %v2066_v4 = vadd.f32 %v2065_v2, %v8253_v17  ;;  %v2216_v6 = vmax.f32 %v1871_v61, 0.0  ;;  %v2218_v7 = vmax.f32 %v2064_v62, 0.0 }
 0x35b   : > { %v1876_v8 = vpop.f32.mrf.mxu1  ;;  %v2069_v9 = vpop.f32.mrf.mxu0 }
 0x35c   : > { %v2217_v12 = vmax.f32 %v1873_v3, 0.0  ;;  %v2219_v53 = vmax.f32 %v2066_v4, 0.0  ;;  %v2392_v24 = vpack.c.bf16 %v2216_v6, %v2212_v15  ;;  %v2394_v25 = vpack.c.bf16 %v2218_v7, %v2214_v52 }
 0x35d   : > { %v1878_v20 = vpop.f32.mrf.mxu1  ;;  %v2071_v21 = vpop.f32.mrf.mxu0  ;;  %v1877_v32 = vadd.f32 %v1876_v8, %v8256_v18  ;;  %v2070_v33 = vadd.f32 %v2069_v9, %v8260_v19 }
 0x35e   : > { %v2393_v22 = vpack.c.bf16 %v2217_v12, %v2213_v10  ;;  %v2395_v23 = vpack.c.bf16 %v2219_v53, %v2215_v11  ;;  %v1879_v26 = vadd.f32 %v1878_v20, %v8249_v16  ;;  %v2072_v29 = vadd.f32 %v2071_v21, %v8253_v17 }
 0x35f   : > { %v1880_v27 = vpop.f32.mrf.mxu1  ;;  %v2073_v28 = vpop.f32.mrf.mxu0  ;;  %v2220_v46 = vmax.f32 %v1877_v32, 0.0  ;;  %v2222_v47 = vmax.f32 %v2070_v33, 0.0 }
 0x360   : > { %v1881_v30 = vadd.f32 %v1880_v27, %v8256_v18  ;;  %v2074_v31 = vadd.f32 %v2073_v28, %v8260_v19  ;;  %2699 = vmatprep.mubr.bf16.mxu1 %v2393_v22  ;;  %2860 = vmatprep.mubr.bf16.mxu0 %v2395_v23  ;;  %v2221_v42 = vmax.f32 %v1879_v26, 0.0  ;;  %v2223_v43 = vmax.f32 %v2072_v29, 0.0 }
 0x361   : > { %v1882_v34 = vpop.f32.mrf.mxu1  ;;  %v2075_v35 = vpop.f32.mrf.mxu0  ;;  %2700 = vmatmul.mubr.bf16.gmra.mxu1 %v2392_v24  ;;  %2861 = vmatmul.mubr.bf16.gmra.mxu0 %v2394_v25 }
 0x362   : > { %v1883_v36 = vadd.f32 %v1882_v34, %v8249_v16  ;;  %v2076_v37 = vadd.f32 %v2075_v35, %v8253_v17  ;;  %v2224_v38 = vmax.f32 %v1881_v30, 0.0  ;;  %v2226_v39 = vmax.f32 %v2074_v31, 0.0 }
 0x363   : > { %v1886_v40 = vpop.f32.mrf.mxu1  ;;  %v2079_v41 = vpop.f32.mrf.mxu0 }
 0x364   : > { %v2225_v44 = vmax.f32 %v1883_v36, 0.0  ;;  %v2227_v45 = vmax.f32 %v2076_v37, 0.0  ;;  %v2396_v56 = vpack.c.bf16 %v2224_v38, %v2220_v46  ;;  %v2398_v57 = vpack.c.bf16 %v2226_v39, %v2222_v47 }
 0x365   : > { %v1888_v50 = vpop.f32.mrf.mxu1  ;;  %v2081_v51 = vpop.f32.mrf.mxu0  ;;  %v1887_v1 = vadd.f32 %v1886_v40, %v8256_v18  ;;  %v2080_v2 = vadd.f32 %v2079_v41, %v8260_v19 }
 0x366   : > { %v2397_v54 = vpack.c.bf16 %v2225_v44, %v2221_v42  ;;  %v2399_v5 = vpack.c.bf16 %v2227_v45, %v2223_v43  ;;  %v1889_v59 = vadd.f32 %v1888_v50, %v8249_v16  ;;  %v2082_v62 = vadd.f32 %v2081_v51, %v8253_v17 }
 0x367   : > { %v1890_v60 = vpop.f32.mrf.mxu1  ;;  %v2083_v61 = vpop.f32.mrf.mxu0  ;;  %v2228_v20 = vmax.f32 %v1887_v1, 0.0  ;;  %v2230_v21 = vmax.f32 %v2080_v2, 0.0 }
 0x368   : > { %v1891_v63 = vadd.f32 %v1890_v60, %v8256_v18  ;;  %v2084_v0 = vadd.f32 %v2083_v61, %v8260_v19  ;;  %2707 = vmatprep.mubr.bf16.mxu1 %v2397_v54  ;;  %2868 = vmatprep.mubr.bf16.mxu0 %v2399_v5  ;;  %v2229_v12 = vmax.f32 %v1889_v59, 0.0  ;;  %v2231_v53 = vmax.f32 %v2082_v62, 0.0 }
 0x369   : > { %v1892_v3 = vpop.f32.mrf.mxu1  ;;  %v2085_v4 = vpop.f32.mrf.mxu0  ;;  %2708 = vmatmul.mubr.bf16.gmra.mxu1 %v2396_v56  ;;  %2869 = vmatmul.mubr.bf16.gmra.mxu0 %v2398_v57 }
 0x36a   : > { %v1893_v6 = vadd.f32 %v1892_v3, %v8249_v16  ;;  %v2086_v7 = vadd.f32 %v2085_v4, %v8253_v17  ;;  %v2232_v8 = vmax.f32 %v1891_v63, 0.0  ;;  %v2234_v9 = vmax.f32 %v2084_v0, 0.0 }
 0x36b   : > { %v1896_v10 = vpop.f32.mrf.mxu1  ;;  %v2089_v11 = vpop.f32.mrf.mxu0 }
 0x36c   : > { %v2233_v15 = vmax.f32 %v1893_v6, 0.0  ;;  %v2235_v52 = vmax.f32 %v2086_v7, 0.0  ;;  %v2400_v26 = vpack.c.bf16 %v2232_v8, %v2228_v20  ;;  %v2402_v27 = vpack.c.bf16 %v2234_v9, %v2230_v21 }
 0x36d   : > { %v1898_v22 = vpop.f32.mrf.mxu1  ;;  %v2091_v23 = vpop.f32.mrf.mxu0  ;;  %v1897_v34 = vadd.f32 %v1896_v10, %v8256_v18  ;;  %v2090_v35 = vadd.f32 %v2089_v11, %v8260_v19 }
 0x36e   : > { %v2401_v24 = vpack.c.bf16 %v2233_v15, %v2229_v12  ;;  %v2403_v25 = vpack.c.bf16 %v2235_v52, %v2231_v53  ;;  %v1899_v28 = vadd.f32 %v1898_v22, %v8249_v16  ;;  %v2092_v31 = vadd.f32 %v2091_v23, %v8253_v17 }
 0x36f   : > { %v1900_v29 = vpop.f32.mrf.mxu1  ;;  %v2093_v30 = vpop.f32.mrf.mxu0  ;;  %v2236_v50 = vmax.f32 %v1897_v34, 0.0  ;;  %v2238_v51 = vmax.f32 %v2090_v35, 0.0 }
 0x370   : > { %v1901_v32 = vadd.f32 %v1900_v29, %v8256_v18  ;;  %v2094_v33 = vadd.f32 %v2093_v30, %v8260_v19  ;;  %2715 = vmatprep.mubr.bf16.mxu1 %v2401_v24  ;;  %2876 = vmatprep.mubr.bf16.mxu0 %v2403_v25  ;;  %v2237_v44 = vmax.f32 %v1899_v28, 0.0  ;;  %v2239_v45 = vmax.f32 %v2092_v31, 0.0 }
 0x371   : > { %v1902_v36 = vpop.f32.mrf.mxu1  ;;  %v2095_v37 = vpop.f32.mrf.mxu0  ;;  %2716 = vmatmul.mubr.bf16.gmra.mxu1 %v2400_v26  ;;  %2877 = vmatmul.mubr.bf16.gmra.mxu0 %v2402_v27 }
 0x372   : > { %v1903_v38 = vadd.f32 %v1902_v36, %v8249_v16  ;;  %v2096_v39 = vadd.f32 %v2095_v37, %v8253_v17  ;;  %v2240_v40 = vmax.f32 %v1901_v32, 0.0  ;;  %v2242_v41 = vmax.f32 %v2094_v33, 0.0 }
 0x373   : > { %v1906_v42 = vpop.f32.mrf.mxu1  ;;  %v2099_v43 = vpop.f32.mrf.mxu0 }
 0x374   : > { %v2241_v46 = vmax.f32 %v1903_v38, 0.0  ;;  %v2243_v47 = vmax.f32 %v2096_v39, 0.0  ;;  %v2404_v59 = vpack.c.bf16 %v2240_v40, %v2236_v50  ;;  %v2406_v60 = vpack.c.bf16 %v2242_v41, %v2238_v51 }
 0x375   : > { %v1908_v54 = vpop.f32.mrf.mxu1  ;;  %v2101_v5 = vpop.f32.mrf.mxu0  ;;  %v1907_v3 = vadd.f32 %v1906_v42, %v8256_v18  ;;  %v2100_v4 = vadd.f32 %v2099_v43, %v8260_v19 }
 0x376   : > { %v2405_v56 = vpack.c.bf16 %v2241_v46, %v2237_v44  ;;  %v2407_v57 = vpack.c.bf16 %v2243_v47, %v2239_v45  ;;  %v1909_v61 = vadd.f32 %v1908_v54, %v8249_v16  ;;  %v2102_v0 = vadd.f32 %v2101_v5, %v8253_v17 }
 0x377   : > { %v1910_v62 = vpop.f32.mrf.mxu1  ;;  %v2103_v63 = vpop.f32.mrf.mxu0  ;;  %v2244_v22 = vmax.f32 %v1907_v3, 0.0  ;;  %v2246_v23 = vmax.f32 %v2100_v4, 0.0 }
 0x378   : > { %v1911_v1 = vadd.f32 %v1910_v62, %v8256_v18  ;;  %v2104_v2 = vadd.f32 %v2103_v63, %v8260_v19  ;;  %2723 = vmatprep.mubr.bf16.mxu1 %v2405_v56  ;;  %2884 = vmatprep.mubr.bf16.mxu0 %v2407_v57  ;;  %v2245_v15 = vmax.f32 %v1909_v61, 0.0  ;;  %v2247_v52 = vmax.f32 %v2102_v0, 0.0 }
 0x379   : > { %v1912_v6 = vpop.f32.mrf.mxu1  ;;  %v2105_v7 = vpop.f32.mrf.mxu0  ;;  %2724 = vmatmul.mubr.bf16.gmra.mxu1 %v2404_v59  ;;  %2885 = vmatmul.mubr.bf16.gmra.mxu0 %v2406_v60 }
 0x37a   : > { %v1913_v8 = vadd.f32 %v1912_v6, %v8249_v16  ;;  %v2106_v9 = vadd.f32 %v2105_v7, %v8253_v17  ;;  %v2248_v10 = vmax.f32 %v1911_v1, 0.0  ;;  %v2250_v11 = vmax.f32 %v2104_v2, 0.0 }
 0x37b   : > { %v1916_v12 = vpop.f32.mrf.mxu1  ;;  %v2109_v53 = vpop.f32.mrf.mxu0 }
 0x37c   : > { %v2249_v20 = vmax.f32 %v1913_v8, 0.0  ;;  %v2251_v21 = vmax.f32 %v2106_v9, 0.0  ;;  %v2408_v28 = vpack.c.bf16 %v2248_v10, %v2244_v22  ;;  %v2410_v29 = vpack.c.bf16 %v2250_v11, %v2246_v23 }
 0x37d   : > { %v1918_v24 = vpop.f32.mrf.mxu1  ;;  %v2111_v25 = vpop.f32.mrf.mxu0  ;;  %v1917_v36 = vadd.f32 %v1916_v12, %v8256_v18  ;;  %v2110_v37 = vadd.f32 %v2109_v53, %v8260_v19 }
 0x37e   : > { %v2409_v26 = vpack.c.bf16 %v2249_v20, %v2245_v15  ;;  %v2411_v27 = vpack.c.bf16 %v2251_v21, %v2247_v52  ;;  %v1919_v30 = vadd.f32 %v1918_v24, %v8249_v16  ;;  %v2112_v33 = vadd.f32 %v2111_v25, %v8253_v17 }
 0x37f   : > { %v1920_v31 = vpop.f32.mrf.mxu1  ;;  %v2113_v32 = vpop.f32.mrf.mxu0  ;;  %v2252_v54 = vmax.f32 %v1917_v36, 0.0  ;;  %v2254_v5 = vmax.f32 %v2110_v37, 0.0 }
 0x380   : > { %v1921_v34 = vadd.f32 %v1920_v31, %v8256_v18  ;;  %v2114_v35 = vadd.f32 %v2113_v32, %v8260_v19  ;;  %2731 = vmatprep.mubr.bf16.mxu1 %v2409_v26  ;;  %2892 = vmatprep.mubr.bf16.mxu0 %v2411_v27  ;;  %v2253_v46 = vmax.f32 %v1919_v30, 0.0  ;;  %v2255_v47 = vmax.f32 %v2112_v33, 0.0 }
 0x381   : > { %v1922_v38 = vpop.f32.mrf.mxu1  ;;  %v2115_v39 = vpop.f32.mrf.mxu0  ;;  %2732 = vmatmul.mubr.bf16.gmra.mxu1 %v2408_v28  ;;  %2893 = vmatmul.mubr.bf16.gmra.mxu0 %v2410_v29 }
 0x382   : > { %v1923_v40 = vadd.f32 %v1922_v38, %v8249_v16  ;;  %v2116_v41 = vadd.f32 %v2115_v39, %v8253_v17  ;;  %v2256_v42 = vmax.f32 %v1921_v34, 0.0  ;;  %v2258_v43 = vmax.f32 %v2114_v35, 0.0 }
 0x383   : > { %v1926_v44 = vpop.f32.mrf.mxu1  ;;  %v2119_v45 = vpop.f32.mrf.mxu0 }
 0x384   : > { %v2257_v50 = vmax.f32 %v1923_v40, 0.0  ;;  %v2259_v51 = vmax.f32 %v2116_v41, 0.0  ;;  %v2412_v61 = vpack.c.bf16 %v2256_v42, %v2252_v54  ;;  %v2414_v62 = vpack.c.bf16 %v2258_v43, %v2254_v5 }
 0x385   : > { %v1928_v56 = vpop.f32.mrf.mxu1  ;;  %v2121_v57 = vpop.f32.mrf.mxu0  ;;  %v1927_v6 = vadd.f32 %v1926_v44, %v8256_v18  ;;  %v2120_v7 = vadd.f32 %v2119_v45, %v8260_v19 }
 0x386   : > { %v2413_v59 = vpack.c.bf16 %v2257_v50, %v2253_v46  ;;  %v2415_v60 = vpack.c.bf16 %v2259_v51, %v2255_v47  ;;  %v1929_v63 = vadd.f32 %v1928_v56, %v8249_v16  ;;  %v2122_v2 = vadd.f32 %v2121_v57, %v8253_v17 }
 0x387   : > { %v1930_v0 = vpop.f32.mrf.mxu1  ;;  %v2123_v1 = vpop.f32.mrf.mxu0  ;;  %v2260_v24 = vmax.f32 %v1927_v6, 0.0  ;;  %v2262_v25 = vmax.f32 %v2120_v7, 0.0 }
 0x388   : > { %v1931_v3 = vadd.f32 %v1930_v0, %v8256_v18  ;;  %v2124_v4 = vadd.f32 %v2123_v1, %v8260_v19  ;;  %2739 = vmatprep.mubr.bf16.mxu1 %v2413_v59  ;;  %2900 = vmatprep.mubr.bf16.mxu0 %v2415_v60  ;;  %v2261_v20 = vmax.f32 %v1929_v63, 0.0  ;;  %v2263_v21 = vmax.f32 %v2122_v2, 0.0 }
 0x389   : > { %v1932_v8 = vpop.f32.mrf.mxu1  ;;  %v2125_v9 = vpop.f32.mrf.mxu0  ;;  %2740 = vmatmul.mubr.bf16.gmra.mxu1 %v2412_v61  ;;  %2901 = vmatmul.mubr.bf16.gmra.mxu0 %v2414_v62 }
 0x38a   : > { %v1933_v10 = vadd.f32 %v1932_v8, %v8249_v16  ;;  %v2126_v11 = vadd.f32 %v2125_v9, %v8253_v17  ;;  %v2264_v12 = vmax.f32 %v1931_v3, 0.0  ;;  %v2266_v53 = vmax.f32 %v2124_v4, 0.0 }
 0x38b   : > { %v1936_v15 = vpop.f32.mrf.mxu1  ;;  %v2129_v52 = vpop.f32.mrf.mxu0 }
 0x38c   : > { %v2265_v22 = vmax.f32 %v1933_v10, 0.0  ;;  %v2267_v23 = vmax.f32 %v2126_v11, 0.0  ;;  %v2416_v30 = vpack.c.bf16 %v2264_v12, %v2260_v24  ;;  %v2418_v31 = vpack.c.bf16 %v2266_v53, %v2262_v25 }
 0x38d   : > { %v1938_v26 = vpop.f32.mrf.mxu1  ;;  %v2131_v27 = vpop.f32.mrf.mxu0  ;;  %v1937_v38 = vadd.f32 %v1936_v15, %v8256_v18  ;;  %v2130_v39 = vadd.f32 %v2129_v52, %v8260_v19 }
 0x38e   : > { %v2417_v28 = vpack.c.bf16 %v2265_v22, %v2261_v20  ;;  %v2419_v29 = vpack.c.bf16 %v2267_v23, %v2263_v21  ;;  %v1939_v32 = vadd.f32 %v1938_v26, %v8249_v16  ;;  %v2132_v35 = vadd.f32 %v2131_v27, %v8253_v17 }
 0x38f   : > { %v1940_v33 = vpop.f32.mrf.mxu1  ;;  %v2133_v34 = vpop.f32.mrf.mxu0  ;;  %v2268_v56 = vmax.f32 %v1937_v38, 0.0  ;;  %v2270_v57 = vmax.f32 %v2130_v39, 0.0 }
 0x390   : > { %v1941_v36 = vadd.f32 %v1940_v33, %v8256_v18  ;;  %v2134_v37 = vadd.f32 %v2133_v34, %v8260_v19  ;;  %2747 = vmatprep.mubr.bf16.mxu1 %v2417_v28  ;;  %2908 = vmatprep.mubr.bf16.mxu0 %v2419_v29  ;;  %v2269_v50 = vmax.f32 %v1939_v32, 0.0  ;;  %v2271_v51 = vmax.f32 %v2132_v35, 0.0 }
 0x391   : > { %v1942_v40 = vpop.f32.mrf.mxu1  ;;  %v2135_v41 = vpop.f32.mrf.mxu0  ;;  %2748 = vmatmul.mubr.bf16.gmra.mxu1 %v2416_v30  ;;  %2909 = vmatmul.mubr.bf16.gmra.mxu0 %v2418_v31 }
 0x392   : > { %v1943_v42 = vadd.f32 %v1942_v40, %v8249_v16  ;;  %v2136_v43 = vadd.f32 %v2135_v41, %v8253_v17  ;;  %v2272_v44 = vmax.f32 %v1941_v36, 0.0  ;;  %v2274_v45 = vmax.f32 %v2134_v37, 0.0 }
 0x393   : > { %v1946_v46 = vpop.f32.mrf.mxu1  ;;  %v2139_v47 = vpop.f32.mrf.mxu0 }
 0x394   : > { %v2273_v54 = vmax.f32 %v1943_v42, 0.0  ;;  %v2275_v5 = vmax.f32 %v2136_v43, 0.0  ;;  %v2420_v63 = vpack.c.bf16 %v2272_v44, %v2268_v56  ;;  %v2422_v0 = vpack.c.bf16 %v2274_v45, %v2270_v57 }
 0x395   : > { %v1948_v59 = vpop.f32.mrf.mxu1  ;;  %v2141_v60 = vpop.f32.mrf.mxu0  ;;  %v1947_v8 = vadd.f32 %v1946_v46, %v8256_v18  ;;  %v2140_v9 = vadd.f32 %v2139_v47, %v8260_v19 }
 0x396   : > { %v2421_v61 = vpack.c.bf16 %v2273_v54, %v2269_v50  ;;  %v2423_v62 = vpack.c.bf16 %v2275_v5, %v2271_v51  ;;  %v1949_v1 = vadd.f32 %v1948_v59, %v8249_v16  ;;  %v2142_v4 = vadd.f32 %v2141_v60, %v8253_v17  ;;  %v3285_v59 = vld [vmem:[%s8370_s12] sm:$0xff]  ;;  %v3286_v60 = vld [vmem:[%s8370_s12 + $0x8] sm:$0xff] }
 0x397   : > { %v1950_v2 = vpop.f32.mrf.mxu1  ;;  %v2143_v3 = vpop.f32.mrf.mxu0  ;;  %v2276_v26 = vmax.f32 %v1947_v8, 0.0  ;;  %v2278_v27 = vmax.f32 %v2140_v9, 0.0 }
 0x398   : > { %v1951_v6 = vadd.f32 %v1950_v2, %v8256_v18  ;;  %v2144_v7 = vadd.f32 %v2143_v3, %v8260_v19  ;;  %2755 = vmatprep.mubr.bf16.mxu1 %v2421_v61  ;;  %2916 = vmatprep.mubr.bf16.mxu0 %v2423_v62  ;;  %v2277_v22 = vmax.f32 %v1949_v1, 0.0  ;;  %v2279_v23 = vmax.f32 %v2142_v4, 0.0 }
 0x399   : > { %v1952_v10 = vpop.f32.mrf.mxu1  ;;  %v2145_v11 = vpop.f32.mrf.mxu0  ;;  %2756 = vmatmul.mubr.bf16.gmra.mxu1 %v2420_v63  ;;  %2917 = vmatmul.mubr.bf16.gmra.mxu0 %v2422_v0  ;;  %v7139_v1 = vpack.i.bf16 %v3286_v60, %v3285_v59 }
 0x39a   : > { %v1953_v12 = vadd.f32 %v1952_v10, %v8249_v16  ;;  %v2146_v53 = vadd.f32 %v2145_v11, %v8253_v17  ;;  %v2280_v15 = vmax.f32 %v1951_v6, 0.0  ;;  %v2282_v52 = vmax.f32 %v2144_v7, 0.0 }
 0x39b   : > { %v1956_v20 = vpop.f32.mrf.mxu1  ;;  %v2149_v21 = vpop.f32.mrf.mxu0  ;;  %7140 = vrot.lane.b32.xlu1 %v7139_v1, %s7579_s13 }
 0x39c   : > { %v2281_v24 = vmax.f32 %v1953_v12, 0.0  ;;  %v2283_v25 = vmax.f32 %v2146_v53, 0.0  ;;  %v2424_v32 = vpack.c.bf16 %v2280_v15, %v2276_v26  ;;  %v2426_v33 = vpack.c.bf16 %v2282_v52, %v2278_v27 }
 0x39d   : > { %v1958_v28 = vpop.f32.mrf.mxu1  ;;  %v2151_v29 = vpop.f32.mrf.mxu0  ;;  %v1957_v40 = vadd.f32 %v1956_v20, %v8256_v18  ;;  %v2150_v41 = vadd.f32 %v2149_v21, %v8260_v19 }
 0x39e   : > { %v2425_v30 = vpack.c.bf16 %v2281_v24, %v2277_v22  ;;  %v2427_v31 = vpack.c.bf16 %v2283_v25, %v2279_v23  ;;  %v1959_v34 = vadd.f32 %v1958_v28, %v8249_v16  ;;  %v2152_v37 = vadd.f32 %v2151_v29, %v8253_v17  ;;  %v7376_v23 = vld [vmem:[%s9616_s3 + $0x204] ss:$16 sps:$4 sm:$0x3f]   ;;  %v7378_v28 = vld [vmem:[%s9616_s3 + $0x200] ss:$16 sps:$4 sm:$0x3f]  }
 0x39f   : > { %v1960_v35 = vpop.f32.mrf.mxu1  ;;  %v2153_v36 = vpop.f32.mrf.mxu0  ;;  %v2284_v61 = vmax.f32 %v1957_v40, 0.0  ;;  %v2286_v62 = vmax.f32 %v2150_v41, 0.0  ;;  %6401 = vmatprep.subr.msk.bf16.mxu1 %vm3585_vm2, %v7376_v23  ;;  %v7379_v40 = vld [vmem:[%s9616_s3 + $0x20c] ss:$16 sps:$4 sm:$0x3f]  }
 0x3a0   : > { %v1961_v38 = vadd.f32 %v1960_v35, %v8256_v18  ;;  %v2154_v39 = vadd.f32 %v2153_v36, %v8260_v19  ;;  %2763 = vmatprep.mubr.bf16.mxu1 %v2425_v30  ;;  %2924 = vmatprep.mubr.bf16.mxu0 %v2427_v31  ;;  %v2285_v54 = vmax.f32 %v1959_v34, 0.0  ;;  %v2287_v5 = vmax.f32 %v2152_v37, 0.0  ;;  %v7381_v41 = vld [vmem:[%s9616_s3 + $0x208] ss:$16 sps:$4 sm:$0x3f]  }
 0x3a1   : > { %v1962_v42 = vpop.f32.mrf.mxu1  ;;  %v2155_v43 = vpop.f32.mrf.mxu0  ;;  %2764 = vmatmul.mubr.bf16.gmra.mxu1 %v2424_v32  ;;  %2925 = vmatmul.mubr.bf16.gmra.mxu0 %v2426_v33  ;;  %v3587_v37 = vsel %vm3585_vm2, %v7378_v28, 0  ;;  %v3593_v59 = vsel %vm3585_vm2, %v7381_v41, 0  ;;  %v8420_v41 = vld [vmem:[%s9621_s8 + $0x8] ss:$0 sm:$0xff] }
 0x3a2   : > { %v1963_v44 = vadd.f32 %v1962_v42, %v8249_v16  ;;  %v2156_v45 = vadd.f32 %v2155_v43, %v8253_v17  ;;  %v2288_v46 = vmax.f32 %v1961_v38, 0.0  ;;  %v2290_v47 = vmax.f32 %v2154_v39, 0.0  ;;  %3613 = vmatpush1.bf16.msra.mxu1 %v3587_v37  ;;  %6418 = vmatprep.subr.msk.bf16.mxu0 %vm3585_vm2, %v7379_v40 }
 0x3a3   : > { %v1966_v50 = vpop.f32.mrf.mxu1  ;;  %v2159_v51 = vpop.f32.mrf.mxu0  ;;  %3806 = vmatpush1.bf16.msra.mxu0 %v3593_v59 }
 0x3a4   : > { %v2289_v56 = vmax.f32 %v1963_v44, 0.0  ;;  %v2291_v57 = vmax.f32 %v2156_v45, 0.0  ;;  %v2428_v4 = vpack.c.bf16 %v2288_v46, %v2284_v61  ;;  %v2430_v6 = vpack.c.bf16 %v2290_v47, %v2286_v62 }
 0x3a5   : > { %v1968_v63 = vpop.f32.mrf.mxu1  ;;  %v2161_v0 = vpop.f32.mrf.mxu0  ;;  %v1967_v53 = vadd.f32 %v1966_v50, %v8256_v18  ;;  %v2160_v15 = vadd.f32 %v2159_v51, %v8260_v19 }
 0x3a6   : > { %v2429_v2 = vpack.c.bf16 %v2289_v56, %v2285_v54  ;;  %v2431_v3 = vpack.c.bf16 %v2291_v57, %v2287_v5  ;;  %v1969_v7 = vadd.f32 %v1968_v63, %v8249_v16  ;;  %v2162_v10 = vadd.f32 %v2161_v0, %v8253_v17 }
 0x3a7   : > { %v1970_v8 = vpop.f32.mrf.mxu1  ;;  %v2163_v9 = vpop.f32.mrf.mxu0  ;;  %v2292_v33 = vmax.f32 %v1967_v53, 0.0  ;;  %v2294_v34 = vmax.f32 %v2160_v15, 0.0 }
 0x3a8   : > { %v1971_v11 = vadd.f32 %v1970_v8, %v8256_v18  ;;  %v2164_v12 = vadd.f32 %v2163_v9, %v8260_v19  ;;  %2771 = vmatprep.mubr.bf16.mxu1 %v2429_v2  ;;  %2932 = vmatprep.mubr.bf16.mxu0 %v2431_v3  ;;  %v2293_v29 = vmax.f32 %v1969_v7, 0.0  ;;  %v2295_v30 = vmax.f32 %v2162_v10, 0.0 }
 0x3a9   : > { %v1972_v52 = vpop.f32.mrf.mxu1  ;;  %v2165_v20 = vpop.f32.mrf.mxu0  ;;  %2772 = vmatmul.mubr.bf16.gmra.mxu1 %v2428_v4  ;;  %2933 = vmatmul.mubr.bf16.gmra.mxu0 %v2430_v6 }
 0x3aa   : > { %v1973_v21 = vadd.f32 %v1972_v52, %v8249_v16  ;;  %v2166_v22 = vadd.f32 %v2165_v20, %v8253_v17  ;;  %v2296_v24 = vmax.f32 %v1971_v11, 0.0  ;;  %v2298_v25 = vmax.f32 %v2164_v12, 0.0 }
 0x3ab   : > { %v1976_v26 = vpop.f32.mrf.mxu1  ;;  %v2169_v27 = vpop.f32.mrf.mxu0 }
 0x3ac   : > { %v2297_v31 = vmax.f32 %v1973_v21, 0.0  ;;  %v2299_v32 = vmax.f32 %v2166_v22, 0.0  ;;  %v2432_v42 = vpack.c.bf16 %v2296_v24, %v2292_v33  ;;  %v2434_v43 = vpack.c.bf16 %v2298_v25, %v2294_v34 }
 0x3ad   : > { %v1978_v35 = vpop.f32.mrf.mxu1  ;;  %v2171_v36 = vpop.f32.mrf.mxu0  ;;  %v1977_v54 = vadd.f32 %v1976_v26, %v8256_v18  ;;  %v2170_v5 = vadd.f32 %v2169_v27, %v8260_v19 }
 0x3ae   : > { %v2433_v38 = vpack.c.bf16 %v2297_v31, %v2293_v29  ;;  %v2435_v39 = vpack.c.bf16 %v2299_v32, %v2295_v30  ;;  %v1979_v44 = vadd.f32 %v1978_v35, %v8249_v16  ;;  %v2172_v47 = vadd.f32 %v2171_v36, %v8253_v17 }
 0x3af   : > { %v1980_v45 = vpop.f32.mrf.mxu1  ;;  %v2173_v46 = vpop.f32.mrf.mxu0  ;;  %v2300_v7 = vmax.f32 %v1977_v54, 0.0  ;;  %v2302_v8 = vmax.f32 %v2170_v5, 0.0 }
 0x3b0   : > { %v1981_v50 = vadd.f32 %v1980_v45, %v8256_v18  ;;  %v2174_v51 = vadd.f32 %v2173_v46, %v8260_v19  ;;  %2779 = vmatprep.mubr.bf16.mxu1 %v2433_v38  ;;  %2940 = vmatprep.mubr.bf16.mxu0 %v2435_v39  ;;  %v2301_v2 = vmax.f32 %v1979_v44, 0.0  ;;  %v2303_v3 = vmax.f32 %v2172_v47, 0.0 }
 0x3b1   : > { %v1982_v56 = vpop.f32.mrf.mxu1  ;;  %v2175_v57 = vpop.f32.mrf.mxu0  ;;  %2780 = vmatmul.mubr.bf16.gmra.mxu1 %v2432_v42  ;;  %2941 = vmatmul.mubr.bf16.gmra.mxu0 %v2434_v43 }
 0x3b2   : > { %v1983_v60 = vadd.f32 %v1982_v56, %v8249_v16  ;;  %v2176_v61 = vadd.f32 %v2175_v57, %v8253_v17  ;;  %v2304_v62 = vmax.f32 %v1981_v50, 0.0  ;;  %v2306_v63 = vmax.f32 %v2174_v51, 0.0 }
 0x3b3   : > { %v1986_v0 = vpop.f32.mrf.mxu1  ;;  %v2179_v1 = vpop.f32.mrf.mxu0 }
 0x3b4   : > { %v2305_v4 = vmax.f32 %v1983_v60, 0.0  ;;  %v2307_v6 = vmax.f32 %v2176_v61, 0.0  ;;  %v2436_v53 = vpack.c.bf16 %v2304_v62, %v2300_v7  ;;  %v2438_v15 = vpack.c.bf16 %v2306_v63, %v2302_v8 }
 0x3b5   : > { %v1988_v9 = vpop.f32.mrf.mxu1  ;;  %v2181_v10 = vpop.f32.mrf.mxu0  ;;  %v1987_v25 = vadd.f32 %v1986_v0, %v8256_v18  ;;  %v2180_v26 = vadd.f32 %v2179_v1, %v8260_v19 }
 0x3b6   : > { %v2437_v11 = vpack.c.bf16 %v2305_v4, %v2301_v2  ;;  %v2439_v12 = vpack.c.bf16 %v2307_v6, %v2303_v3  ;;  %v1989_v52 = vadd.f32 %v1988_v9, %v8249_v16  ;;  %v2182_v22 = vadd.f32 %v2181_v10, %v8253_v17 }
 0x3b7   : > { %v1990_v20 = vpop.f32.mrf.mxu1  ;;  %v2183_v21 = vpop.f32.mrf.mxu0  ;;  %v2308_v37 = vmax.f32 %v1987_v25, 0.0  ;;  %v2310_v38 = vmax.f32 %v2180_v26, 0.0 }
 0x3b8   : > { %v1991_v23 = vadd.f32 %v1990_v20, %v8256_v18  ;;  %v2184_v24 = vadd.f32 %v2183_v21, %v8260_v19  ;;  %2787 = vmatprep.mubr.bf16.mxu1 %v2437_v11  ;;  %2948 = vmatprep.mubr.bf16.mxu0 %v2439_v12  ;;  %v2309_v33 = vmax.f32 %v1989_v52, 0.0  ;;  %v2311_v34 = vmax.f32 %v2182_v22, 0.0 }
 0x3b9   : > { %v1992_v27 = vpop.f32.mrf.mxu1  ;;  %v2185_v28 = vpop.f32.mrf.mxu0  ;;  %2788 = vmatmul.mubr.bf16.gmra.mxu1 %v2436_v53  ;;  %2949 = vmatmul.mubr.bf16.gmra.mxu0 %v2438_v15 }
 0x3ba   : > { %v1993_v29 = vadd.f32 %v1992_v27, %v8249_v16  ;;  %v2186_v30 = vadd.f32 %v2185_v28, %v8253_v17  ;;  %v2312_v31 = vmax.f32 %v1991_v23, 0.0  ;;  %v2314_v32 = vmax.f32 %v2184_v24, 0.0 }
 0x3bc   : > { %v2313_v35 = vmax.f32 %v1993_v29, 0.0  ;;  %v2315_v36 = vmax.f32 %v2186_v30, 0.0  ;;  %v2440_v40 = vpack.c.bf16 %v2312_v31, %v2308_v37  ;;  %v2442_v19 = vpack.c.bf16 %v2314_v32, %v2310_v38 }
 0x3be   : > { %v2441_v39 = vpack.c.bf16 %v2313_v35, %v2309_v33  ;;  %v2443_v18 = vpack.c.bf16 %v2315_v36, %v2311_v34 }
 0x3c0   : > { %2795 = vmatprep.mubr.bf16.mxu1 %v2441_v39  ;;  %2956 = vmatprep.mubr.bf16.mxu0 %v2443_v18 }
 0x3c1   : > { %2796 = vmatmul.mubr.bf16.gmra.mxu1 %v2440_v40  ;;  %2957 = vmatmul.mubr.bf16.gmra.mxu0 %v2442_v19 }
 0x3c2   : > { %3630 = vmatprep.mubr.bf16.mxu1 %v7578_v55  ;;  %3823 = vmatprep.mubr.bf16.mxu0 %v7578_v55 }
 0x409   : > { %v6601_v16 = vpop.f32.mrf.mxu1  ;;  %v6713_v17 = vpop.f32.mrf.mxu0 }
 0x40b   : > { %v6602_v42 = vpop.f32.mrf.mxu1  ;;  %v6714_v43 = vpop.f32.mrf.mxu0 }
 0x40c   : > { %v6603_v44 = vadd.f32 %v6602_v42, %v6601_v16  ;;  %v6715_v50 = vadd.f32 %v6714_v43, %v6713_v17 }
 0x40d   : > { %v6604_v45 = vpop.f32.mrf.mxu1  ;;  %v6716_v46 = vpop.f32.mrf.mxu0 }
 0x40e   : > { %v2678_v47 = vadd.f32 %v6603_v44, %v8420_v41 }
 0x40f   : > { %v6605_v51 = vpop.f32.mrf.mxu1  ;;  %v6717_v54 = vpop.f32.mrf.mxu0 }
 0x410   : > { %v8423_v5 = vadd.f32 %v6715_v50, %v2678_v47  ;;  %v6606_v56 = vadd.f32 %v6605_v51, %v6604_v45  ;;  %v6718_v62 = vadd.f32 %v6717_v54, %v6716_v46 }
 0x411   : > { %v6607_v57 = vpop.f32.mrf.mxu1  ;;  %v6719_v59 = vpop.f32.mrf.mxu0 }
 0x412   : > { %v2997_v60 = vmul.f32 0.5, %v8423_v5  ;;  %v2681_v61 = vadd.f32 %v6606_v56, %v8420_v41 }
 0x413   : > { %v6608_v63 = vpop.f32.mrf.mxu1  ;;  %v6720_v0 = vpop.f32.mrf.mxu0 }
 0x414   : > { %v3029_v1 = vmul.f32 1.442695, %v2997_v60  ;;  %v8427_v2 = vadd.f32 %v6718_v62, %v2681_v61  ;;  %v6609_v3 = vadd.f32 %v6608_v63, %v6607_v57  ;;  %v6721_v9 = vadd.f32 %v6720_v0, %v6719_v59 }
 0x415   : > { %v6610_v4 = vpop.f32.mrf.mxu1  ;;  %v6722_v6 = vpop.f32.mrf.mxu0 }
 0x416   : > { %7506 = vpow2.f32 %v3029_v1  ;;  %v2998_v7 = vmul.f32 0.5, %v8427_v2  ;;  %v2686_v8 = vadd.f32 %v6609_v3, %v8420_v41  ;;  %v3287_v3 = vld [vmem:[%s8370_s12 + $0x10] sm:$0xff] }
 0x417   : > { %v6611_v10 = vpop.f32.mrf.mxu1  ;;  %v6723_v11 = vpop.f32.mrf.mxu0 }
 0x418   : > { %v3031_v12 = vmul.f32 1.442695, %v2998_v7  ;;  %v8431_v53 = vadd.f32 %v6721_v9, %v2686_v8  ;;  %v6612_v15 = vadd.f32 %v6611_v10, %v6610_v4  ;;  %v6724_v23 = vadd.f32 %v6723_v11, %v6722_v6  ;;  %v3288_v4 = vld [vmem:[%s8370_s12 + $0x18] sm:$0xff] }
 0x419   : > { %v6613_v52 = vpop.f32.mrf.mxu1  ;;  %v6725_v20 = vpop.f32.mrf.mxu0 }
 0x41a   : > { %7508 = vpow2.f32 %v3031_v12  ;;  %v2999_v21 = vmul.f32 0.5, %v8431_v53  ;;  %v2689_v22 = vadd.f32 %v6612_v15, %v8420_v41 }
 0x41b   : > { %v6614_v24 = vpop.f32.mrf.mxu1  ;;  %v6726_v25 = vpop.f32.mrf.mxu0 }
 0x41c   : > { %v3033_v26 = vmul.f32 1.442695, %v2999_v21  ;;  %v8435_v27 = vadd.f32 %v6724_v23, %v2689_v22  ;;  %v6615_v28 = vadd.f32 %v6614_v24, %v6613_v52  ;;  %v6727_v33 = vadd.f32 %v6726_v25, %v6725_v20 }
 0x41d   : > { %v6616_v29 = vpop.f32.mrf.mxu1  ;;  %v6728_v30 = vpop.f32.mrf.mxu0  ;;  %v7144_v20 = vpack.i.bf16 %v3288_v4, %v3287_v3  ;;  %v3291_v3 = vld [vmem:[%s8370_s12 + $0x30] sm:$0xff]  ;;  %v3292_v4 = vld [vmem:[%s8370_s12 + $0x38] sm:$0xff] }
 0x41e   : > { %7510 = vpow2.f32 %v3033_v26  ;;  %v3000_v31 = vmul.f32 0.5, %v8435_v27  ;;  %v2694_v32 = vadd.f32 %v6615_v28, %v8420_v41 }
 0x41f   : > { %v6617_v34 = vpop.f32.mrf.mxu1  ;;  %v6729_v35 = vpop.f32.mrf.mxu0 }
 0x420   : > { %v3035_v36 = vmul.f32 1.442695, %v3000_v31  ;;  %v8439_v37 = vadd.f32 %v6727_v33, %v2694_v32  ;;  %v6618_v38 = vadd.f32 %v6617_v34, %v6616_v29  ;;  %v6730_v16 = vadd.f32 %v6729_v35, %v6728_v30  ;;  %v3289_v35 = vld [vmem:[%s8370_s12 + $0x20] sm:$0xff] }
 0x421   : > { %v6619_v39 = vpop.f32.mrf.mxu1  ;;  %v6731_v18 = vpop.f32.mrf.mxu0 }
 0x422   : > { %7512 = vpow2.f32 %v3035_v36  ;;  %v3001_v40 = vmul.f32 0.5, %v8439_v37  ;;  %v2697_v19 = vadd.f32 %v6618_v38, %v8420_v41  ;;  %v3290_v36 = vld [vmem:[%s8370_s12 + $0x28] sm:$0xff] }
 0x423   : > { %v7507_v17 = vpop.eup %7506  ;;  %v6620_v42 = vpop.f32.mrf.mxu1 }
 0x424   : > { %v6732_v43 = vpop.f32.mrf.mxu0  ;;  %v3037_v44 = vmul.f32 1.442695, %v3001_v40  ;;  %v8443_v45 = vadd.f32 %v6730_v16, %v2697_v19  ;;  %v6621_v46 = vadd.f32 %v6620_v42, %v6619_v39  ;;  %3125 = vrot.lane.b32.xlu0 %v7507_v17, %s7580_s25 }
 0x425   : > { %v6622_v47 = vpop.f32.mrf.mxu1  ;;  %v6733_v56 = vadd.f32 %v6732_v43, %v6731_v18 }
 0x426   : > { %v6734_v50 = vpop.f32.mrf.mxu0  ;;  %7514 = vpow2.f32 %v3037_v44  ;;  %v3002_v51 = vmul.f32 0.5, %v8443_v45  ;;  %v2702_v54 = vadd.f32 %v6621_v46, %v8420_v41  ;;  %v7149_v44 = vpack.i.bf16 %v3290_v36, %v3289_v35 }
 0x427   : > { %v7509_v57 = vpop.eup %7508  ;;  %v6623_v59 = vpop.f32.mrf.mxu1 }
 0x428   : > { %v6735_v60 = vpop.f32.mrf.mxu0  ;;  %v3039_v61 = vmul.f32 1.442695, %v3002_v51  ;;  %v8448_v62 = vadd.f32 %v6733_v56, %v2702_v54  ;;  %v6624_v63 = vadd.f32 %v6623_v59, %v6622_v47  ;;  %3127 = vrot.lane.b32.xlu0 %v7509_v57, %s7580_s25 }
 0x429   : > { %v6625_v0 = vpop.f32.mrf.mxu1  ;;  %v6736_v8 = vadd.f32 %v6735_v60, %v6734_v50 }
 0x42a   : > { %v6737_v1 = vpop.f32.mrf.mxu0  ;;  %7516 = vpow2.f32 %v3039_v61  ;;  %v3003_v6 = vmul.f32 0.5, %v8448_v62  ;;  %v2705_v7 = vadd.f32 %v6624_v63, %v8420_v41 }
 0x42b   : > { %v7511_v9 = vpop.eup %7510  ;;  %v6626_v10 = vpop.f32.mrf.mxu1 }
 0x42c   : > { %v6738_v11 = vpop.f32.mrf.mxu0  ;;  %v3041_v12 = vmul.f32 1.442695, %v3003_v6  ;;  %v8455_v15 = vadd.f32 %v6736_v8, %v2705_v7  ;;  %v6627_v52 = vadd.f32 %v6626_v10, %v6625_v0  ;;  %3129 = vrot.lane.b32.xlu1 %v7511_v9, %s7580_s25 }
 0x42d   : > { %v6628_v21 = vpop.f32.mrf.mxu1  ;;  %v6739_v25 = vadd.f32 %v6738_v11, %v6737_v1 }
 0x42e   : > { %v6740_v22 = vpop.f32.mrf.mxu0  ;;  %7518 = vpow2.f32 %v3041_v12  ;;  %v3004_v23 = vmul.f32 0.5, %v8455_v15  ;;  %v2710_v24 = vadd.f32 %v6627_v52, %v8420_v41 }
 0x42f   : > { %v7513_v26 = vpop.eup %7512  ;;  %v6629_v28 = vpop.f32.mrf.mxu1 }
 0x430   : > { %v6741_v29 = vpop.f32.mrf.mxu0  ;;  %v3043_v30 = vmul.f32 1.442695, %v3004_v23  ;;  %v8460_v31 = vadd.f32 %v6739_v25, %v2710_v24  ;;  %v6630_v32 = vadd.f32 %v6629_v28, %v6628_v21  ;;  %7145 = vrot.lane.b32.xlu1 %v7144_v20, %s7579_s13  ;;  %3131 = vrot.lane.b32.xlu0 %v7513_v26, %s7580_s25  ;;  %v7154_v21 = vpack.i.bf16 %v3292_v4, %v3291_v3 }
 0x431   : > { %v6631_v33 = vpop.f32.mrf.mxu1  ;;  %v6742_v18 = vadd.f32 %v6741_v29, %v6740_v22 }
 0x432   : > { %v6743_v34 = vpop.f32.mrf.mxu0  ;;  %7520 = vpow2.f32 %v3043_v30  ;;  %v3005_v38 = vmul.f32 0.5, %v8460_v31  ;;  %v2713_v39 = vadd.f32 %v6630_v32, %v8420_v41 }
 0x433   : > { %v7515_v40 = vpop.eup %7514  ;;  %v6632_v19 = vpop.f32.mrf.mxu1 }
 0x434   : > { %v6744_v16 = vpop.f32.mrf.mxu0  ;;  %v3045_v17 = vmul.f32 1.442695, %v3005_v38  ;;  %v8468_v42 = vadd.f32 %v6742_v18, %v2713_v39  ;;  %v6633_v43 = vadd.f32 %v6632_v19, %v6631_v33  ;;  %3133 = vrot.lane.b32.xlu0 %v7515_v40, %s7580_s25  ;;  %v3293_v38 = vld [vmem:[%s8370_s12 + $0x40] sm:$0xff]  ;;  %v3294_v39 = vld [vmem:[%s8370_s12 + $0x48] sm:$0xff] }
 0x435   : > { %v6634_v46 = vpop.f32.mrf.mxu1  ;;  %v6745_v54 = vadd.f32 %v6744_v16, %v6743_v34 }
 0x436   : > { %v6746_v47 = vpop.f32.mrf.mxu0  ;;  %7522 = vpow2.f32 %v3045_v17  ;;  %v3006_v50 = vmul.f32 0.5, %v8468_v42  ;;  %v2718_v51 = vadd.f32 %v6633_v43, %v8420_v41 }
 0x437   : > { %v7517_v56 = vpop.eup %7516  ;;  %v6635_v57 = vpop.f32.mrf.mxu1 }
 0x438   : > { %v6747_v59 = vpop.f32.mrf.mxu0  ;;  %v3047_v60 = vmul.f32 1.442695, %v3006_v50  ;;  %v8473_v61 = vadd.f32 %v6745_v54, %v2718_v51  ;;  %v6636_v63 = vadd.f32 %v6635_v57, %v6634_v46  ;;  %3135 = vrot.lane.b32.xlu1 %v7517_v56, %s7580_s25  ;;  %7150 = vrot.lane.b32.xlu0 %v7149_v44, %s7579_s13  ;;  %v7159_v50 = vpack.i.bf16 %v3294_v39, %v3293_v38 }
 0x439   : > { %v6637_v0 = vpop.f32.mrf.mxu1  ;;  %v6748_v8 = vadd.f32 %v6747_v59, %v6746_v47 }
 0x43a   : > { %v6749_v1 = vpop.f32.mrf.mxu0  ;;  %7524 = vpow2.f32 %v3047_v60  ;;  %v3007_v6 = vmul.f32 0.5, %v8473_v61  ;;  %v2721_v7 = vadd.f32 %v6636_v63, %v8420_v41 }
 0x43b   : > { %v7519_v9 = vpop.eup %7518  ;;  %v6638_v10 = vpop.f32.mrf.mxu1 }
 0x43c   : > { %v6750_v11 = vpop.f32.mrf.mxu0  ;;  %v3049_v12 = vmul.f32 1.442695, %v3007_v6  ;;  %v8481_v52 = vadd.f32 %v6748_v8, %v2721_v7  ;;  %v6639_v20 = vadd.f32 %v6638_v10, %v6637_v0  ;;  %3137 = vrot.lane.b32.xlu1 %v7519_v9, %s7580_s25  ;;  %v3295_v8 = vld [vmem:[%s8370_s12 + $0x50] sm:$0xff]  ;;  %v3296_v9 = vld [vmem:[%s8370_s12 + $0x58] sm:$0xff] }
 0x43d   : > { %v6640_v22 = vpop.f32.mrf.mxu1  ;;  %v6751_v26 = vadd.f32 %v6750_v11, %v6749_v1 }
 0x43e   : > { %v6752_v23 = vpop.f32.mrf.mxu0  ;;  %7526 = vpow2.f32 %v3049_v12  ;;  %v3008_v24 = vmul.f32 0.5, %v8481_v52  ;;  %v2726_v25 = vadd.f32 %v6639_v20, %v8420_v41 }
 0x43f   : > { %v7521_v28 = vpop.eup %7520  ;;  %v6641_v29 = vpop.f32.mrf.mxu1 }
 0x440   : > { %v6753_v30 = vpop.f32.mrf.mxu0  ;;  %v3051_v32 = vmul.f32 1.442695, %v3008_v24  ;;  %v8486_v33 = vadd.f32 %v6751_v26, %v2726_v25  ;;  %v6642_v34 = vadd.f32 %v6641_v29, %v6640_v22  ;;  %7155 = vrot.lane.b32.xlu1 %v7154_v21, %s7579_s13  ;;  %3139 = vrot.lane.b32.xlu0 %v7521_v28, %s7580_s25  ;;  %v7164_v26 = vpack.i.bf16 %v3296_v9, %v3295_v8 }
 0x441   : > { %v6643_v35 = vpop.f32.mrf.mxu1  ;;  %v6754_v19 = vadd.f32 %v6753_v30, %v6752_v23 }
 0x442   : > { %v6755_v36 = vpop.f32.mrf.mxu0  ;;  %7528 = vpow2.f32 %v3051_v32  ;;  %v3009_v18 = vmul.f32 0.5, %v8486_v33  ;;  %v2729_v40 = vadd.f32 %v6642_v34, %v8420_v41 }
 0x443   : > { %v7523_v16 = vpop.eup %7522  ;;  %v6644_v17 = vpop.f32.mrf.mxu1 }
 0x444   : > { %v6756_v43 = vpop.f32.mrf.mxu0  ;;  %v3053_v44 = vmul.f32 1.442695, %v3009_v18  ;;  %v8494_v46 = vadd.f32 %v6754_v19, %v2729_v40  ;;  %v6645_v47 = vadd.f32 %v6644_v17, %v6643_v35  ;;  %3141 = vrot.lane.b32.xlu0 %v7523_v16, %s7580_s25  ;;  %v3297_v17 = vld [vmem:[%s8370_s12 + $0x60] sm:$0xff] }
 0x445   : > { %v6646_v51 = vpop.f32.mrf.mxu1  ;;  %v6757_v59 = vadd.f32 %v6756_v43, %v6755_v36  ;;  %v3298_v43 = vld [vmem:[%s8370_s12 + $0x68] sm:$0xff] }
 0x446   : > { %v6758_v54 = vpop.f32.mrf.mxu0  ;;  %7530 = vpow2.f32 %v3053_v44  ;;  %v3010_v56 = vmul.f32 0.5, %v8494_v46  ;;  %v2734_v57 = vadd.f32 %v6645_v47, %v8420_v41 }
 0x447   : > { %v7525_v60 = vpop.eup %7524  ;;  %v6647_v63 = vpop.f32.mrf.mxu1 }
 0x448   : > { %v6759_v0 = vpop.f32.mrf.mxu0  ;;  %v3055_v1 = vmul.f32 1.442695, %v3010_v56  ;;  %v8499_v3 = vadd.f32 %v6757_v59, %v2734_v57  ;;  %v6648_v4 = vadd.f32 %v6647_v63, %v6646_v51  ;;  %3143 = vrot.lane.b32.xlu1 %v7525_v60, %s7580_s25  ;;  %7160 = vrot.lane.b32.xlu0 %v7159_v50, %s7579_s13  ;;  %v7169_v63 = vpack.i.bf16 %v3298_v43, %v3297_v17 }
 0x449   : > { %v6649_v6 = vpop.f32.mrf.mxu1  ;;  %v6760_v12 = vadd.f32 %v6759_v0, %v6758_v54 }
 0x44a   : > { %v6761_v7 = vpop.f32.mrf.mxu0  ;;  %7532 = vpow2.f32 %v3055_v1  ;;  %v3011_v10 = vmul.f32 0.5, %v8499_v3  ;;  %v2737_v11 = vadd.f32 %v6648_v4, %v8420_v41 }
 0x44b   : > { %v7527_v20 = vpop.eup %7526  ;;  %v6650_v21 = vpop.f32.mrf.mxu1 }
 0x44c   : > { %v6762_v22 = vpop.f32.mrf.mxu0  ;;  %v3057_v23 = vmul.f32 1.442695, %v3011_v10  ;;  %v8507_v24 = vadd.f32 %v6760_v12, %v2737_v11  ;;  %v6651_v25 = vadd.f32 %v6650_v21, %v6649_v6  ;;  %3145 = vrot.lane.b32.xlu1 %v7527_v20, %s7580_s25 }
 0x44d   : > { %v6652_v28 = vpop.f32.mrf.mxu1  ;;  %v6763_v34 = vadd.f32 %v6762_v22, %v6761_v7 }
 0x44e   : > { %v6764_v29 = vpop.f32.mrf.mxu0  ;;  %7534 = vpow2.f32 %v3057_v23  ;;  %v3012_v30 = vmul.f32 0.5, %v8507_v24  ;;  %v2742_v32 = vadd.f32 %v6651_v25, %v8420_v41  ;;  %v3299_v23 = vld [vmem:[%s8370_s12 + $0x70] sm:$0xff]  ;;  %v3300_v25 = vld [vmem:[%s8370_s12 + $0x78] sm:$0xff] }
 0x44f   : > { %v7529_v35 = vpop.eup %7528  ;;  %v6653_v36 = vpop.f32.mrf.mxu1 }
 0x450   : > { %v6765_v38 = vpop.f32.mrf.mxu0  ;;  %v3059_v39 = vmul.f32 1.442695, %v3012_v30  ;;  %v8512_v18 = vadd.f32 %v6763_v34, %v2742_v32  ;;  %v6654_v40 = vadd.f32 %v6653_v36, %v6652_v28  ;;  %7165 = vrot.lane.b32.xlu1 %v7164_v26, %s7579_s13  ;;  %3147 = vrot.lane.b32.xlu0 %v7529_v35, %s7580_s25 }
 0x451   : > { %v6655_v19 = vpop.f32.mrf.mxu1  ;;  %v6766_v50 = vadd.f32 %v6765_v38, %v6764_v29 }
 0x452   : > { %v6767_v16 = vpop.f32.mrf.mxu0  ;;  %7536 = vpow2.f32 %v3059_v39  ;;  %v3013_v44 = vmul.f32 0.5, %v8512_v18  ;;  %v2745_v47 = vadd.f32 %v6654_v40, %v8420_v41  ;;  %v7174_v39 = vpack.i.bf16 %v3300_v25, %v3299_v23 }
 0x453   : > { %v7531_v51 = vpop.eup %7530  ;;  %v6656_v54 = vpop.f32.mrf.mxu1 }
 0x454   : > { %v6768_v56 = vpop.f32.mrf.mxu0  ;;  %v3061_v57 = vmul.f32 1.442695, %v3013_v44  ;;  %v8520_v59 = vadd.f32 %v6766_v50, %v2745_v47  ;;  %v6657_v60 = vadd.f32 %v6656_v54, %v6655_v19  ;;  %3149 = vrot.lane.b32.xlu0 %v7531_v51, %s7580_s25 }
 0x455   : > { %v6658_v0 = vpop.f32.mrf.mxu1  ;;  %v6769_v7 = vadd.f32 %v6768_v56, %v6767_v16 }
 0x456   : > { %v6770_v1 = vpop.f32.mrf.mxu0  ;;  %7538 = vpow2.f32 %v3061_v57  ;;  %v3014_v4 = vmul.f32 0.5, %v8520_v59  ;;  %v2750_v6 = vadd.f32 %v6657_v60, %v8420_v41 }
 0x457   : > { %v7533_v8 = vpop.eup %7532  ;;  %v6659_v9 = vpop.f32.mrf.mxu1 }
 0x458   : > { %v6771_v10 = vpop.f32.mrf.mxu0  ;;  %v3063_v11 = vmul.f32 1.442695, %v3014_v4  ;;  %v8525_v12 = vadd.f32 %v6769_v7, %v2750_v6  ;;  %v6660_v20 = vadd.f32 %v6659_v9, %v6658_v0  ;;  %3151 = vrot.lane.b32.xlu1 %v7533_v8, %s7580_s25  ;;  %7170 = vrot.lane.b32.xlu0 %v7169_v63, %s7579_s13  ;;  %v3301_v63 = vld [vmem:[%s8370_s12 + $0x80] sm:$0xff]  ;;  %v3302_v0 = vld [vmem:[%s8370_s12 + $0x88] sm:$0xff] }
 0x459   : > { %v6661_v21 = vpop.f32.mrf.mxu1  ;;  %v6772_v29 = vadd.f32 %v6771_v10, %v6770_v1 }
 0x45a   : > { %v6773_v22 = vpop.f32.mrf.mxu0  ;;  %7540 = vpow2.f32 %v3063_v11  ;;  %v3015_v26 = vmul.f32 0.5, %v8525_v12  ;;  %v2753_v28 = vadd.f32 %v6660_v20, %v8420_v41 }
 0x45b   : > { %v7535_v30 = vpop.eup %7534  ;;  %v6662_v32 = vpop.f32.mrf.mxu1 }
 0x45c   : > { %v6774_v34 = vpop.f32.mrf.mxu0  ;;  %v3065_v35 = vmul.f32 1.442695, %v3015_v26  ;;  %v8533_v36 = vadd.f32 %v6772_v29, %v2753_v28  ;;  %v6663_v38 = vadd.f32 %v6662_v32, %v6661_v21  ;;  %3153 = vrot.lane.b32.xlu1 %v7535_v30, %s7580_s25  ;;  %v7179_v21 = vpack.i.bf16 %v3302_v0, %v3301_v63 }
 0x45d   : > { %v6664_v40 = vpop.f32.mrf.mxu1  ;;  %v6775_v43 = vadd.f32 %v6774_v34, %v6773_v22 }
 0x45e   : > { %v6776_v19 = vpop.f32.mrf.mxu0  ;;  %7542 = vpow2.f32 %v3065_v35  ;;  %v3016_v16 = vmul.f32 0.5, %v8533_v36  ;;  %v2758_v17 = vadd.f32 %v6663_v38, %v8420_v41 }
 0x45f   : > { %v7537_v44 = vpop.eup %7536  ;;  %v6665_v47 = vpop.f32.mrf.mxu1 }
 0x460   : > { %v6777_v50 = vpop.f32.mrf.mxu0  ;;  %v3067_v51 = vmul.f32 1.442695, %v3016_v16  ;;  %v8538_v54 = vadd.f32 %v6775_v43, %v2758_v17  ;;  %v6666_v56 = vadd.f32 %v6665_v47, %v6664_v40  ;;  %7175 = vrot.lane.b32.xlu1 %v7174_v39, %s7579_s13  ;;  %3155 = vrot.lane.b32.xlu0 %v7537_v44, %s7580_s25  ;;  %v3304_v16 = vld [vmem:[%s8370_s12 + $0x98] sm:$0xff] }
 0x461   : > { %v6667_v57 = vpop.f32.mrf.mxu1  ;;  %v6778_v6 = vadd.f32 %v6777_v50, %v6776_v19  ;;  %v3303_v19 = vld [vmem:[%s8370_s12 + $0x90] sm:$0xff] }
 0x462   : > { %v6779_v60 = vpop.f32.mrf.mxu0  ;;  %7544 = vpow2.f32 %v3067_v51  ;;  %v3017_v1 = vmul.f32 0.5, %v8538_v54  ;;  %v2761_v4 = vadd.f32 %v6666_v56, %v8420_v41  ;;  %v7184_v63 = vpack.i.bf16 %v3304_v16, %v3303_v19 }
 0x463   : > { %v7539_v7 = vpop.eup %7538  ;;  %v6668_v8 = vpop.f32.mrf.mxu1 }
 0x464   : > { %v6780_v9 = vpop.f32.mrf.mxu0  ;;  %v3069_v10 = vmul.f32 1.442695, %v3017_v1  ;;  %v8546_v11 = vadd.f32 %v6778_v6, %v2761_v4  ;;  %v6669_v20 = vadd.f32 %v6668_v8, %v6667_v57  ;;  %3157 = vrot.lane.b32.xlu0 %v7539_v7, %s7580_s25 }
 0x465   : > { %v6670_v22 = vpop.f32.mrf.mxu1  ;;  %v6781_v28 = vadd.f32 %v6780_v9, %v6779_v60 }
 0x466   : > { %v6782_v23 = vpop.f32.mrf.mxu0  ;;  %7546 = vpow2.f32 %v3069_v10  ;;  %v3018_v25 = vmul.f32 0.5, %v8546_v11  ;;  %v2766_v26 = vadd.f32 %v6669_v20, %v8420_v41 }
 0x467   : > { %v7541_v29 = vpop.eup %7540  ;;  %v6671_v30 = vpop.f32.mrf.mxu1 }
 0x468   : > { %v6783_v32 = vpop.f32.mrf.mxu0  ;;  %v3071_v34 = vmul.f32 1.442695, %v3018_v25  ;;  %v8551_v35 = vadd.f32 %v6781_v28, %v2766_v26  ;;  %v6672_v38 = vadd.f32 %v6671_v30, %v6670_v22  ;;  %3159 = vrot.lane.b32.xlu1 %v7541_v29, %s7580_s25  ;;  %7180 = vrot.lane.b32.xlu0 %v7179_v21, %s7579_s13  ;;  %v3305_v26 = vld [vmem:[%s8370_s12 + $0xa0] sm:$0xff]  ;;  %v3306_v28 = vld [vmem:[%s8370_s12 + $0xa8] sm:$0xff] }
 0x469   : > { %v6673_v39 = vpop.f32.mrf.mxu1  ;;  %v6784_v44 = vadd.f32 %v6783_v32, %v6782_v23  ;;  %v7384_v29 = vld [vmem:[%s9617_s4 + $0xf4] ss:$8 sps:$4 sm:$0xff]  }
 0x46a   : > { %v6785_v40 = vpop.f32.mrf.mxu0  ;;  %7548 = vpow2.f32 %v3071_v34  ;;  %v3019_v17 = vmul.f32 0.5, %v8551_v35  ;;  %v2769_v43 = vadd.f32 %v6672_v38, %v8420_v41  ;;  %v7387_v38 = vld [vmem:[%s9617_s4 + $0x1f4] ss:$8 sps:$4 sm:$0xff]   ;;  %4572 = vmatprep.subr.bf16.mxu1 %v7384_v29 }
 0x46b   : > { %v7543_v47 = vpop.eup %7542  ;;  %v6674_v50 = vpop.f32.mrf.mxu1  ;;  %4765 = vmatprep.subr.bf16.mxu0 %v7387_v38 }
 0x46c   : > { %v6786_v51 = vpop.f32.mrf.mxu0  ;;  %v3073_v56 = vmul.f32 1.442695, %v3019_v17  ;;  %v8559_v57 = vadd.f32 %v6784_v44, %v2769_v43  ;;  %v6675_v60 = vadd.f32 %v6674_v50, %v6673_v39  ;;  %3161 = vrot.lane.b32.xlu1 %v7543_v47, %s7580_s25  ;;  %v7189_v44 = vpack.i.bf16 %v3306_v28, %v3305_v26 }
 0x46d   : > { %v6676_v0 = vpop.f32.mrf.mxu1  ;;  %v6787_v7 = vadd.f32 %v6786_v51, %v6785_v40 }
 0x46e   : > { %v6788_v1 = vpop.f32.mrf.mxu0  ;;  %7550 = vpow2.f32 %v3073_v56  ;;  %v3020_v4 = vmul.f32 0.5, %v8559_v57  ;;  %v2774_v6 = vadd.f32 %v6675_v60, %v8420_v41 }
 0x46f   : > { %v7545_v8 = vpop.eup %7544  ;;  %v6677_v9 = vpop.f32.mrf.mxu1 }
 0x470   : > { %v6789_v10 = vpop.f32.mrf.mxu0  ;;  %v3075_v20 = vmul.f32 1.442695, %v3020_v4  ;;  %v8564_v21 = vadd.f32 %v6787_v7, %v2774_v6  ;;  %v6678_v22 = vadd.f32 %v6677_v9, %v6676_v0  ;;  %7185 = vrot.lane.b32.xlu1 %v7184_v63, %s7579_s13  ;;  %3163 = vrot.lane.b32.xlu0 %v7545_v8, %s7580_s25 }
 0x471   : > { %v6679_v23 = vpop.f32.mrf.mxu1  ;;  %v6790_v34 = vadd.f32 %v6789_v10, %v6788_v1  ;;  %v3307_v10 = vld [vmem:[%s8370_s12 + $0xb0] sm:$0xff] }
 0x472   : > { %v6791_v25 = vpop.f32.mrf.mxu0  ;;  %7552 = vpow2.f32 %v3075_v20  ;;  %v3021_v30 = vmul.f32 0.5, %v8564_v21  ;;  %v2777_v32 = vadd.f32 %v6678_v22, %v8420_v41  ;;  %v3308_v20 = vld [vmem:[%s8370_s12 + $0xb8] sm:$0xff] }
 0x473   : > { %v7547_v39 = vpop.eup %7546  ;;  %v6680_v40 = vpop.f32.mrf.mxu1  ;;  %v7194_v38 = vpack.i.bf16 %v3308_v20, %v3307_v10 }
 0x474   : > { %v6792_v19 = vpop.f32.mrf.mxu0  ;;  %v3077_v16 = vmul.f32 1.442695, %v3021_v30  ;;  %v8578_v17 = vadd.f32 %v6790_v34, %v2777_v32  ;;  %v6681_v43 = vadd.f32 %v6680_v40, %v6679_v23  ;;  %3165 = vrot.lane.b32.xlu0 %v7547_v39, %s7580_s25 }
 0x475   : > { %v6682_v47 = vpop.f32.mrf.mxu1  ;;  %v6793_v60 = vadd.f32 %v6792_v19, %v6791_v25 }
 0x476   : > { %v6794_v50 = vpop.f32.mrf.mxu0  ;;  %7554 = vpow2.f32 %v3077_v16  ;;  %v3022_v51 = vmul.f32 0.5, %v8578_v17  ;;  %v2782_v56 = vadd.f32 %v6681_v43, %v8420_v41 }
 0x477   : > { %v7549_v63 = vpop.eup %7548  ;;  %v6683_v0 = vpop.f32.mrf.mxu1 }
 0x478   : > { %v6795_v1 = vpop.f32.mrf.mxu0  ;;  %v3079_v4 = vmul.f32 1.442695, %v3022_v51  ;;  %v8583_v6 = vadd.f32 %v6793_v60, %v2782_v56  ;;  %v6684_v7 = vadd.f32 %v6683_v0, %v6682_v47  ;;  %3167 = vrot.lane.b32.xlu1 %v7549_v63, %s7580_s25  ;;  %7190 = vrot.lane.b32.xlu0 %v7189_v44, %s7579_s13 }
 0x479   : > { %v6685_v8 = vpop.f32.mrf.mxu1  ;;  %v6796_v25 = vadd.f32 %v6795_v1, %v6794_v50  ;;  %v3309_v1 = vld [vmem:[%s8370_s12 + $0xc0] sm:$0xff] }
 0x47a   : > { %v6797_v9 = vpop.f32.mrf.mxu0  ;;  %7556 = vpow2.f32 %v3079_v4  ;;  %v3023_v22 = vmul.f32 0.5, %v8583_v6  ;;  %v2785_v23 = vadd.f32 %v6684_v7, %v8420_v41  ;;  %v3310_v4 = vld [vmem:[%s8370_s12 + $0xc8] sm:$0xff] }
 0x47b   : > { %v7551_v26 = vpop.eup %7550  ;;  %v6686_v28 = vpop.f32.mrf.mxu1 }
 0x47c   : > { %v6798_v29 = vpop.f32.mrf.mxu0  ;;  %v3081_v30 = vmul.f32 1.442695, %v3023_v22  ;;  %v8591_v32 = vadd.f32 %v6796_v25, %v2785_v23  ;;  %v6687_v34 = vadd.f32 %v6686_v28, %v6685_v8  ;;  %3169 = vrot.lane.b32.xlu1 %v7551_v26, %s7580_s25  ;;  %v7199_v28 = vpack.i.bf16 %v3310_v4, %v3309_v1 }
 0x47d   : > { %v6688_v39 = vpop.f32.mrf.mxu1  ;;  %v6799_v43 = vadd.f32 %v6798_v29, %v6797_v9 }
 0x47e   : > { %v6800_v40 = vpop.f32.mrf.mxu0  ;;  %7558 = vpow2.f32 %v3081_v30  ;;  %v3024_v19 = vmul.f32 0.5, %v8591_v32  ;;  %v2790_v16 = vadd.f32 %v6687_v34, %v8420_v41 }
 0x47f   : > { %v7553_v44 = vpop.eup %7552  ;;  %v6689_v47 = vpop.f32.mrf.mxu1 }
 0x480   : > { %v6801_v50 = vpop.f32.mrf.mxu0  ;;  %v3083_v51 = vmul.f32 1.442695, %v3024_v19  ;;  %v8596_v56 = vadd.f32 %v6799_v43, %v2790_v16  ;;  %v6690_v60 = vadd.f32 %v6689_v47, %v6688_v39  ;;  %7195 = vrot.lane.b32.xlu1 %v7194_v38, %s7579_s13  ;;  %3171 = vrot.lane.b32.xlu0 %v7553_v44, %s7580_s25 }
 0x481   : > { %v6691_v63 = vpop.f32.mrf.mxu1  ;;  %v6802_v9 = vadd.f32 %v6801_v50, %v6800_v40  ;;  %v3311_v50 = vld [vmem:[%s8370_s12 + $0xd0] sm:$0xff] }
 0x482   : > { %v6803_v0 = vpop.f32.mrf.mxu0  ;;  %7560 = vpow2.f32 %v3083_v51  ;;  %v3025_v7 = vmul.f32 0.5, %v8596_v56  ;;  %v2793_v8 = vadd.f32 %v6690_v60, %v8420_v41  ;;  %v3312_v51 = vld [vmem:[%s8370_s12 + $0xd8] sm:$0xff] }
 0x483   : > { %v7555_v10 = vpop.eup %7554  ;;  %v6692_v20 = vpop.f32.mrf.mxu1 }
 0x484   : > { %v6804_v22 = vpop.f32.mrf.mxu0  ;;  %v3085_v23 = vmul.f32 1.442695, %v3025_v7  ;;  %v8604_v25 = vadd.f32 %v6802_v9, %v2793_v8  ;;  %v6693_v26 = vadd.f32 %v6692_v20, %v6691_v63  ;;  %3173 = vrot.lane.b32.xlu0 %v7555_v10, %s7580_s25  ;;  %v7204_v8 = vpack.i.bf16 %v3312_v51, %v3311_v50 }
 0x485   : > { %v6694_v29 = vpop.f32.mrf.mxu1  ;;  %v6805_v39 = vadd.f32 %v6804_v22, %v6803_v0  ;;  %v3314_v22 = vld [vmem:[%s8370_s12 + $0xe8] sm:$0xff] }
 0x486   : > { %v6806_v30 = vpop.f32.mrf.mxu0  ;;  %7562 = vpow2.f32 %v3085_v23  ;;  %v3026_v34 = vmul.f32 0.5, %v8604_v25  ;;  %v2798_v38 = vadd.f32 %v6693_v26, %v8420_v41  ;;  %v2965_v26 = vld [vmem:[%s8627_s14] sm:$0xff] }
 0x487   : > { %v7557_v40 = vpop.eup %7556  ;;  %v6695_v19 = vpop.f32.mrf.mxu1 }
 0x488   : > { %v6807_v16 = vpop.f32.mrf.mxu0  ;;  %v3087_v43 = vmul.f32 1.442695, %v3026_v34  ;;  %v8609_v44 = vadd.f32 %v6805_v39, %v2798_v38  ;;  %v6696_v47 = vadd.f32 %v6695_v19, %v6694_v29  ;;  %3175 = vrot.lane.b32.xlu1 %v7557_v40, %s7580_s25  ;;  %7200 = vrot.lane.b32.xlu0 %v7199_v28, %s7579_s13  ;;  %v7141_v38 = vpop.permute.xlu1 %7140  ;;  %v2966_v39 = vld [vmem:[%s8627_s14 + $0x8] sm:$0xff]  ;;  %v3315_v40 = vld [vmem:[%s8370_s12 + $0xf0] sm:$0xff] }
 0x489   : > { %v6808_v0 = vadd.f32 %v6807_v16, %v6806_v30  ;;  %v3316_v19 = vld [vmem:[%s8370_s12 + $0xf8] sm:$0xff]  ;;  %v7143_v50 = vunpack.i.h.bf16 %v7141_v38  ;;  %v7142_v51 = vunpack.i.l.bf16 %v7141_v38 }
 0x48a   : > { %7564 = vpow2.f32 %v3087_v43  ;;  %v3027_v60 = vmul.f32 0.5, %v8609_v44  ;;  %v2801_v63 = vadd.f32 %v6696_v47, %v8420_v41  ;;  %v3313_v41 = vld [vmem:[%s8370_s12 + $0xe0] sm:$0xff] }
 0x48b   : > { %v7559_v1 = vpop.eup %7558  ;;  %v7209_v28 = vpack.i.bf16 %v3314_v22, %v3313_v41  ;;  %v2968_v41 = vld [vmem:[%s8627_s14 + $0x18] sm:$0xff] }
 0x48c   : > { %v3089_v4 = vmul.f32 1.442695, %v3027_v60  ;;  %v8617_v7 = vadd.f32 %v6808_v0, %v2801_v63  ;;  %3177 = vrot.lane.b32.xlu1 %v7559_v1, %s7580_s25  ;;  %v7214_v63 = vpack.i.bf16 %v3316_v19, %v3315_v40  ;;  %v2967_v1 = vld [vmem:[%s8627_s14 + $0x10] sm:$0xff] }
 0x48e   : > { %7566 = vpow2.f32 %v3089_v4  ;;  %v3028_v9 = vmul.f32 0.5, %v8617_v7 }
 0x48f   : > { %v7561_v10 = vpop.eup %7560 }
 0x490   : > { %v3091_v20 = vmul.f32 1.442695, %v3028_v9  ;;  %7205 = vrot.lane.b32.xlu1 %v7204_v8, %s7579_s13  ;;  %3179 = vrot.lane.b32.xlu0 %v7561_v10, %s7580_s25 }
 0x492   : > { %7568 = vpow2.f32 %v3091_v20 }
 0x493   : > { %v7563_v23 = vpop.eup %7562 }
 0x494   : > { %3181 = vrot.lane.b32.xlu0 %v7563_v23, %s7580_s25  ;;  %v7382_v23 = vld [vmem:[%s9617_s4 + $0xf0] ss:$8 sps:$4 sm:$0xff]  }
 0x496   : > { %v3126_v29 = vpop.permute.xlu0 %3125 }
 0x497   : > { %v7565_v30 = vpop.eup %7564  ;;  %v3221_v34 = vmul.f32 %v3126_v29, %v2965_v26  ;;  %v7385_v26 = vld [vmem:[%s9617_s4 + $0x1f0] ss:$8 sps:$4 sm:$0xff]  }
 0x498   : > { %3183 = vrot.lane.b32.xlu1 %v7565_v30, %s7580_s25  ;;  %7210 = vrot.lane.b32.xlu0 %v7209_v28, %s7579_s13  ;;  %v7390_v30 = vld [vmem:[%s9617_s4 + $0xe4] ss:$8 sps:$4 sm:$0xff]  }
 0x499   : > { %v3253_v47 = vadd.f32 %v3221_v34, %v8423_v5  ;;  %v7393_v34 = vld [vmem:[%s9617_s4 + $0x1e4] ss:$8 sps:$4 sm:$0xff]  }
 0x49a   : > { %v3128_v16 = vpop.permute.xlu0 %3127 }
 0x49b   : > { %v7567_v43 = vpop.eup %7566  ;;  %v3222_v60 = vmul.f32 %v3128_v16, %v2966_v39  ;;  %v3446_v9 = vsel %vm3445_vm3, %v3253_v47, %v7142_v51  ;;  %v7391_v47 = vld [vmem:[%s9617_s4 + $0x1e0] ss:$8 sps:$4 sm:$0xff]  }
 0x49c   : > { %3185 = vrot.lane.b32.xlu1 %v7567_v43, %s7580_s25  ;;  %v7388_v43 = vld [vmem:[%s9617_s4 + $0xe0] ss:$8 sps:$4 sm:$0xff]  }
 0x49d   : > { %v3254_v0 = vadd.f32 %v3222_v60, %v8427_v2 }
 0x49e   : > { %v3130_v4 = vpop.permute.xlu1 %3129 }
 0x49f   : > { %v7569_v8 = vpop.eup %7568  ;;  %v3447_v10 = vsel %vm3445_vm3, %v3254_v0, %v7143_v50  ;;  %v3223_v22 = vmul.f32 %v3130_v4, %v2967_v1  ;;  %v2969_v50 = vld [vmem:[%s8627_s14 + $0x20] sm:$0xff]  ;;  %v7396_v1 = vld [vmem:[%s9617_s4 + $0xd4] ss:$8 sps:$4 sm:$0xff]  }
 0x4a0   : > { %v3482_v20 = vpack.c.bf16 %v3447_v10, %v3446_v9  ;;  %7215 = vrot.lane.b32.xlu1 %v7214_v63, %s7579_s13  ;;  %3187 = vrot.lane.b32.xlu0 %v7569_v8, %s7580_s25  ;;  %v2970_v63 = vld [vmem:[%s8627_s14 + $0x28] sm:$0xff]  ;;  %v7399_v4 = vld [vmem:[%s9617_s4 + $0x1d4] ss:$8 sps:$4 sm:$0xff]  }
 0x4a1   : > { %v3255_v19 = vadd.f32 %v3223_v22, %v8431_v53  ;;  %v7397_v9 = vld [vmem:[%s9617_s4 + $0x1d0] ss:$8 sps:$4 sm:$0xff]   ;;  %v7402_v22 = vld [vmem:[%s9617_s4 + $0xc4] ss:$8 sps:$4 sm:$0xff]  }
 0x4a2   : > { %v7146_v28 = vpop.permute.xlu1 %7145  ;;  %6402 = vmatmul.mubr.msk.bf16.vlgmr.msra.gmra.mxu1 %vm3536_vm4, %v3482_v20  ;;  %6419 = vmatmul.mubr.msk.bf16.vlgmr.msra.gmra.mxu0 %vm3536_vm4, %v3482_v20  ;;  %v3132_v29 = vpop.permute.xlu0 %3131 }
 0x4a3   : > { %v7148_v38 = vunpack.i.h.bf16 %v7146_v28  ;;  %v7147_v39 = vunpack.i.l.bf16 %v7146_v28  ;;  %v3224_v40 = vmul.f32 %v3132_v29, %v2968_v41  ;;  %3640 = vmatprep.mubr.bf16.mxu1 %v7578_v55  ;;  %3833 = vmatprep.mubr.bf16.mxu0 %v7578_v55  ;;  %v2971_v29 = vld [vmem:[%s8627_s14 + $0x30] sm:$0xff] }
 0x4a4   : > { %5960 = vrot.lane.b32.xlu1 %v8427_v2, %s7581_s22  ;;  %5958 = vrot.lane.b32.xlu0 %v8423_v5, %s7581_s22 }
 0x4a5   : > { %v3256_v16 = vadd.f32 %v3224_v40, %v8435_v27  ;;  %4573 = vmatpush1.bf16.msra.mxu1 %v7382_v23  ;;  %4766 = vmatpush1.bf16.msra.mxu0 %v7385_v26  ;;  %v3448_v5 = vsel %vm3445_vm3, %v3255_v19, %v7147_v39  ;;  %v7405_v23 = vld [vmem:[%s9617_s4 + $0x1c4] ss:$8 sps:$4 sm:$0xff]   ;;  %v7400_v40 = vld [vmem:[%s9617_s4 + $0xc0] ss:$8 sps:$4 sm:$0xff]  }
 0x4a6   : > { %v3134_v2 = vpop.permute.xlu0 %3133  ;;  %4574 = vmatprep.subr.bf16.mxu1 %v7390_v30  ;;  %4767 = vmatprep.subr.bf16.mxu0 %v7393_v34  ;;  %v7403_v19 = vld [vmem:[%s9617_s4 + $0x1c0] ss:$8 sps:$4 sm:$0xff]  }
 0x4a7   : > { %v3449_v51 = vsel %vm3445_vm3, %v3256_v16, %v7148_v38  ;;  %v3225_v0 = vmul.f32 %v3134_v2, %v2969_v50  ;;  %v7411_v50 = vld [vmem:[%s9617_s4 + $0x1b4] ss:$8 sps:$4 sm:$0xff]  }
 0x4a8   : > { %v3483_v60 = vpack.c.bf16 %v3449_v51, %v3448_v5  ;;  %5964 = vrot.lane.b32.xlu1 %v8435_v27, %s7581_s22  ;;  %5962 = vrot.lane.b32.xlu0 %v8431_v53, %s7581_s22  ;;  %v7394_v53 = vld [vmem:[%s9617_s4 + $0xd0] ss:$8 sps:$4 sm:$0xff]  }
 0x4a9   : > { %4575 = vmatpush1.bf16.msra.mxu1 %v7388_v43  ;;  %4768 = vmatpush1.bf16.msra.mxu0 %v7391_v47  ;;  %v3257_v26 = vadd.f32 %v3225_v0, %v8439_v37  ;;  %v7408_v47 = vld [vmem:[%s9617_s4 + $0xb4] ss:$8 sps:$4 sm:$0xff]   ;;  %v7406_v0 = vld [vmem:[%s9617_s4 + $0xb0] ss:$8 sps:$4 sm:$0xff]  }
 0x4aa   : > { %v3136_v8 = vpop.permute.xlu1 %3135  ;;  %6403 = vmatmul.mubr.msk.bf16.gmra.mxu1 %vm3536_vm4, %v3483_v60  ;;  %6420 = vmatmul.mubr.msk.bf16.gmra.mxu0 %vm3536_vm4, %v3483_v60  ;;  %v7151_v27 = vpop.permute.xlu0 %7150 }
 0x4ab   : > { %v3226_v10 = vmul.f32 %v3136_v8, %v2970_v63  ;;  %v7153_v20 = vunpack.i.h.bf16 %v7151_v27  ;;  %v7152_v41 = vunpack.i.l.bf16 %v7151_v27  ;;  %3650 = vmatprep.mubr.bf16.mxu1 %v7578_v55  ;;  %3843 = vmatprep.mubr.bf16.mxu0 %v7578_v55 }
 0x4ac   : > { %5968 = vrot.lane.b32.xlu1 %v8443_v45, %s7581_s22  ;;  %5966 = vrot.lane.b32.xlu0 %v8439_v37, %s7581_s22  ;;  %v2972_v37 = vld [vmem:[%s8627_s14 + $0x38] sm:$0xff] }
 0x4ad   : > { %v3258_v28 = vadd.f32 %v3226_v10, %v8443_v45  ;;  %4576 = vmatprep.subr.bf16.mxu1 %v7396_v1  ;;  %4769 = vmatprep.subr.bf16.mxu0 %v7399_v4  ;;  %v3450_v38 = vsel %vm3445_vm3, %v3257_v26, %v7152_v41  ;;  %v7409_v1 = vld [vmem:[%s9617_s4 + $0x1b0] ss:$8 sps:$4 sm:$0xff]   ;;  %v2973_v4 = vld [vmem:[%s8627_s14 + $0x40] sm:$0xff] }
 0x4ae   : > { %v3138_v30 = vpop.permute.xlu1 %3137  ;;  %4577 = vmatpush1.bf16.msra.mxu1 %v7394_v53  ;;  %4770 = vmatpush1.bf16.msra.mxu0 %v7397_v9  ;;  %v7414_v10 = vld [vmem:[%s9617_s4 + $0xa4] ss:$8 sps:$4 sm:$0xff]   ;;  %v7415_v26 = vld [vmem:[%s9617_s4 + $0x1a0] ss:$8 sps:$4 sm:$0xff]  }
 0x4af   : > { %v3451_v34 = vsel %vm3445_vm3, %v3258_v28, %v7153_v20  ;;  %4578 = vmatprep.subr.bf16.mxu1 %v7402_v22  ;;  %4771 = vmatprep.subr.bf16.mxu0 %v7405_v23  ;;  %v3227_v45 = vmul.f32 %v3138_v30, %v2971_v29  ;;  %v7417_v20 = vld [vmem:[%s9617_s4 + $0x1a4] ss:$8 sps:$4 sm:$0xff]   ;;  %v7412_v23 = vld [vmem:[%s9617_s4 + $0xa0] ss:$8 sps:$4 sm:$0xff]  }
 0x4b0   : > { %v3484_v39 = vpack.c.bf16 %v3451_v34, %v3450_v38  ;;  %5972 = vrot.lane.b32.xlu1 %v8455_v15, %s7581_s22  ;;  %5970 = vrot.lane.b32.xlu0 %v8448_v62, %s7581_s22  ;;  %v7420_v34 = vld [vmem:[%s9617_s4 + $0x94] ss:$8 sps:$4 sm:$0xff]  }
 0x4b1   : > { %v3259_v60 = vadd.f32 %v3227_v45, %v8448_v62  ;;  %v7423_v38 = vld [vmem:[%s9617_s4 + $0x194] ss:$8 sps:$4 sm:$0xff]  }
 0x4b2   : > { %v7156_v16 = vpop.permute.xlu1 %7155  ;;  %v3140_v43 = vpop.permute.xlu0 %3139  ;;  %6404 = vmatmul.mubr.msk.bf16.gmra.mxu1 %vm3536_vm4, %v3484_v39  ;;  %6421 = vmatmul.mubr.msk.bf16.gmra.mxu0 %vm3536_vm4, %v3484_v39  ;;  %v2975_v45 = vld [vmem:[%s8627_s14 + $0x50] sm:$0xff] }
 0x4b3   : > { %v7158_v2 = vunpack.i.h.bf16 %v7156_v16  ;;  %v7157_v5 = vunpack.i.l.bf16 %v7156_v16  ;;  %v3228_v51 = vmul.f32 %v3140_v43, %v2972_v37  ;;  %3660 = vmatprep.mubr.bf16.mxu1 %v7578_v55  ;;  %3853 = vmatprep.mubr.bf16.mxu0 %v7578_v55 }
 0x4b4   : > { %5976 = vrot.lane.b32.xlu1 %v8468_v42, %s7581_s22  ;;  %5974 = vrot.lane.b32.xlu0 %v8460_v31, %s7581_s22 }
 0x4b5   : > { %v3260_v63 = vadd.f32 %v3228_v51, %v8455_v15  ;;  %4579 = vmatpush1.bf16.msra.mxu1 %v7400_v40  ;;  %4772 = vmatpush1.bf16.msra.mxu0 %v7403_v19  ;;  %v3452_v27 = vsel %vm3445_vm3, %v3259_v60, %v7157_v5  ;;  %v2974_v15 = vld [vmem:[%s8627_s14 + $0x48] sm:$0xff] }
 0x4b6   : > { %v3142_v8 = vpop.permute.xlu0 %3141  ;;  %4580 = vmatprep.subr.bf16.mxu1 %v7408_v47  ;;  %4773 = vmatprep.subr.bf16.mxu0 %v7411_v50  ;;  %v7418_v47 = vld [vmem:[%s9617_s4 + $0x90] ss:$8 sps:$4 sm:$0xff]   ;;  %v7426_v51 = vld [vmem:[%s9617_s4 + $0x84] ss:$8 sps:$4 sm:$0xff]  }
 0x4b7   : > { %v3453_v62 = vsel %vm3445_vm3, %v3260_v63, %v7158_v2  ;;  %v3229_v9 = vmul.f32 %v3142_v8, %v2973_v4  ;;  %v7421_v50 = vld [vmem:[%s9617_s4 + $0x190] ss:$8 sps:$4 sm:$0xff]   ;;  %v7429_v60 = vld [vmem:[%s9617_s4 + $0x184] ss:$8 sps:$4 sm:$0xff]  }
 0x4b8   : > { %v3485_v53 = vpack.c.bf16 %v3453_v62, %v3452_v27  ;;  %5980 = vrot.lane.b32.xlu1 %v8481_v52, %s7581_s22  ;;  %5978 = vrot.lane.b32.xlu0 %v8473_v61, %s7581_s22  ;;  %v7424_v27 = vld [vmem:[%s9617_s4 + $0x80] ss:$8 sps:$4 sm:$0xff]  }
 0x4b9   : > { %4581 = vmatpush1.bf16.msra.mxu1 %v7406_v0  ;;  %4774 = vmatpush1.bf16.msra.mxu0 %v7409_v1  ;;  %v3261_v39 = vadd.f32 %v3229_v9, %v8460_v31  ;;  %v2976_v31 = vld [vmem:[%s8627_s14 + $0x58] sm:$0xff]  ;;  %v7427_v62 = vld [vmem:[%s9617_s4 + $0x180] ss:$8 sps:$4 sm:$0xff]  }
 0x4ba   : > { %v3144_v41 = vpop.permute.xlu1 %3143  ;;  %v7161_v22 = vpop.permute.xlu0 %7160  ;;  %6405 = vmatmul.mubr.msk.bf16.gmra.mxu1 %vm3536_vm4, %v3485_v53  ;;  %6422 = vmatmul.mubr.msk.bf16.gmra.mxu0 %vm3536_vm4, %v3485_v53  ;;  %v2977_v53 = vld [vmem:[%s8627_s14 + $0x60] sm:$0xff] }
 0x4bb   : > { %v3230_v28 = vmul.f32 %v3144_v41, %v2974_v15  ;;  %v7163_v29 = vunpack.i.h.bf16 %v7161_v22  ;;  %v7162_v30 = vunpack.i.l.bf16 %v7161_v22  ;;  %3670 = vmatprep.mubr.bf16.mxu1 %v7578_v55  ;;  %3863 = vmatprep.mubr.bf16.mxu0 %v7578_v55  ;;  %v7432_v41 = vld [vmem:[%s9617_s4 + $0x174] ss:$8 sps:$4 sm:$0xff]  }
 0x4bc   : > { %5984 = vrot.lane.b32.xlu1 %v8494_v46, %s7581_s22  ;;  %5982 = vrot.lane.b32.xlu0 %v8486_v33, %s7581_s22  ;;  %v7435_v22 = vld [vmem:[%s9617_s4 + $0x274] ss:$8 sps:$4 sm:$0xff]  }
 0x4bd   : > { %v3262_v37 = vadd.f32 %v3230_v28, %v8468_v42  ;;  %4582 = vmatprep.subr.bf16.mxu1 %v7414_v10  ;;  %4775 = vmatprep.subr.bf16.mxu0 %v7417_v20  ;;  %v3454_v16 = vsel %vm3445_vm3, %v3261_v39, %v7162_v30  ;;  %v7430_v28 = vld [vmem:[%s9617_s4 + $0x170] ss:$8 sps:$4 sm:$0xff]   ;;  %v7438_v39 = vld [vmem:[%s9617_s4 + $0x164] ss:$8 sps:$4 sm:$0xff]  }
 0x4be   : > { %v3146_v40 = vpop.permute.xlu1 %3145  ;;  %4583 = vmatpush1.bf16.msra.mxu1 %v7412_v23  ;;  %4776 = vmatpush1.bf16.msra.mxu0 %v7415_v26 }
 0x4bf   : > { %v3455_v19 = vsel %vm3445_vm3, %v3262_v37, %v7163_v29  ;;  %4584 = vmatprep.subr.bf16.mxu1 %v7420_v34  ;;  %4777 = vmatprep.subr.bf16.mxu0 %v7423_v38  ;;  %v3231_v42 = vmul.f32 %v3146_v40, %v2975_v45  ;;  %v7433_v29 = vld [vmem:[%s9617_s4 + $0x270] ss:$8 sps:$4 sm:$0xff]   ;;  %v7441_v37 = vld [vmem:[%s9617_s4 + $0x264] ss:$8 sps:$4 sm:$0xff]  }
 0x4c0   : > { %v3486_v43 = vpack.c.bf16 %v3455_v19, %v3454_v16  ;;  %5988 = vrot.lane.b32.xlu1 %v8507_v24, %s7581_s22  ;;  %5986 = vrot.lane.b32.xlu0 %v8499_v3, %s7581_s22  ;;  %v2979_v19 = vld [vmem:[%s8627_s14 + $0x70] sm:$0xff] }
 0x4c1   : > { %v3263_v4 = vadd.f32 %v3231_v42, %v8473_v61 }
 0x4c2   : > { %v7166_v2 = vpop.permute.xlu1 %7165  ;;  %v3148_v5 = vpop.permute.xlu0 %3147  ;;  %6406 = vmatmul.mubr.msk.bf16.gmra.mxu1 %vm3536_vm4, %v3486_v43  ;;  %6423 = vmatmul.mubr.msk.bf16.gmra.mxu0 %vm3536_vm4, %v3486_v43 }
 0x4c3   : > { %v7168_v63 = vunpack.i.h.bf16 %v7166_v2  ;;  %v7167_v0 = vunpack.i.l.bf16 %v7166_v2  ;;  %v3232_v1 = vmul.f32 %v3148_v5, %v2976_v31  ;;  %3680 = vmatprep.mubr.bf16.mxu1 %v7578_v55  ;;  %3873 = vmatprep.mubr.bf16.mxu0 %v7578_v55 }
 0x4c4   : > { %5992 = vrot.lane.b32.xlu1 %v8520_v59, %s7581_s22  ;;  %5990 = vrot.lane.b32.xlu0 %v8512_v18, %s7581_s22 }
 0x4c5   : > { %v3264_v8 = vadd.f32 %v3232_v1, %v8481_v52  ;;  %4585 = vmatpush1.bf16.msra.mxu1 %v7418_v47  ;;  %4778 = vmatpush1.bf16.msra.mxu0 %v7421_v50  ;;  %v3456_v9 = vsel %vm3445_vm3, %v3263_v4, %v7167_v0  ;;  %v2978_v52 = vld [vmem:[%s8627_s14 + $0x68] sm:$0xff] }
 0x4c6   : > { %v3150_v15 = vpop.permute.xlu0 %3149  ;;  %4586 = vmatprep.subr.bf16.mxu1 %v7426_v51  ;;  %4779 = vmatprep.subr.bf16.mxu0 %v7429_v60  ;;  %v7436_v47 = vld [vmem:[%s9617_s4 + $0x160] ss:$8 sps:$4 sm:$0xff]   ;;  %v7444_v51 = vld [vmem:[%s9617_s4 + $0x154] ss:$8 sps:$4 sm:$0xff]  }
 0x4c7   : > { %v3457_v61 = vsel %vm3445_vm3, %v3264_v8, %v7168_v63  ;;  %v3233_v20 = vmul.f32 %v3150_v15, %v2977_v53  ;;  %v7439_v50 = vld [vmem:[%s9617_s4 + $0x260] ss:$8 sps:$4 sm:$0xff]   ;;  %v7447_v60 = vld [vmem:[%s9617_s4 + $0x254] ss:$8 sps:$4 sm:$0xff]  }
 0x4c8   : > { %v3487_v10 = vpack.c.bf16 %v3457_v61, %v3456_v9  ;;  %5996 = vrot.lane.b32.xlu1 %v8533_v36, %s7581_s22  ;;  %5994 = vrot.lane.b32.xlu0 %v8525_v12, %s7581_s22  ;;  %v2981_v53 = vld [vmem:[%s8627_s14 + $0x80] sm:$0xff] }
 0x4c9   : > { %4587 = vmatpush1.bf16.msra.mxu1 %v7424_v27  ;;  %4780 = vmatpush1.bf16.msra.mxu0 %v7427_v62  ;;  %v3265_v45 = vadd.f32 %v3233_v20, %v8486_v33  ;;  %v2980_v33 = vld [vmem:[%s8627_s14 + $0x78] sm:$0xff]  ;;  %v7453_v20 = vld [vmem:[%s9617_s4 + $0x244] ss:$8 sps:$4 sm:$0xff]  }
 0x4ca   : > { %v3152_v23 = vpop.permute.xlu1 %3151  ;;  %v7171_v26 = vpop.permute.xlu0 %7170  ;;  %6407 = vmatmul.mubr.msk.bf16.gmra.mxu1 %vm3536_vm4, %v3487_v10  ;;  %6424 = vmatmul.mubr.msk.bf16.gmra.mxu0 %vm3536_vm4, %v3487_v10  ;;  %v7442_v27 = vld [vmem:[%s9617_s4 + $0x150] ss:$8 sps:$4 sm:$0xff]  }
 0x4cb   : > { %v3234_v30 = vmul.f32 %v3152_v23, %v2978_v52  ;;  %v7173_v34 = vunpack.i.h.bf16 %v7171_v26  ;;  %v7172_v38 = vunpack.i.l.bf16 %v7171_v26  ;;  %3690 = vmatprep.mubr.bf16.mxu1 %v7578_v55  ;;  %3883 = vmatprep.mubr.bf16.mxu0 %v7578_v55  ;;  %v7445_v62 = vld [vmem:[%s9617_s4 + $0x250] ss:$8 sps:$4 sm:$0xff]   ;;  %v7450_v52 = vld [vmem:[%s9617_s4 + $0x144] ss:$8 sps:$4 sm:$0xff]   ;;  %v7448_v23 = vld [vmem:[%s9617_s4 + $0x140] ss:$8 sps:$4 sm:$0xff]  }
 0x4cc   : > { %6000 = vrot.lane.b32.xlu1 %v8546_v11, %s7581_s22  ;;  %5998 = vrot.lane.b32.xlu0 %v8538_v54, %s7581_s22  ;;  %v7451_v26 = vld [vmem:[%s9617_s4 + $0x240] ss:$8 sps:$4 sm:$0xff]  }
 0x4cd   : > { %v3266_v40 = vadd.f32 %v3234_v30, %v8494_v46  ;;  %4588 = vmatprep.subr.bf16.mxu1 %v7432_v41  ;;  %4781 = vmatprep.subr.bf16.mxu0 %v7435_v22  ;;  %v3458_v31 = vsel %vm3445_vm3, %v3265_v45, %v7172_v38  ;;  %v7459_v38 = vld [vmem:[%s9617_s4 + $0x234] ss:$8 sps:$4 sm:$0xff]  }
 0x4ce   : > { %v3154_v16 = vpop.permute.xlu1 %3153  ;;  %4589 = vmatpush2.bf16.msra.mxu1 %v7430_v28  ;;  %4782 = vmatpush2.bf16.msra.mxu0 %v7433_v29  ;;  %v2983_v45 = vld [vmem:[%s8627_s14 + $0x90] sm:$0xff] }
 0x4cf   : > { %v3459_v43 = vsel %vm3445_vm3, %v3266_v40, %v7173_v34  ;;  %4590 = vmatprep.subr.bf16.mxu1 %v7438_v39  ;;  %4783 = vmatprep.subr.bf16.mxu0 %v7441_v37  ;;  %v3235_v46 = vmul.f32 %v3154_v16, %v2979_v19  ;;  %v7456_v34 = vld [vmem:[%s9617_s4 + $0x134] ss:$8 sps:$4 sm:$0xff]  }
 0x4d0   : > { %v3488_v42 = vpack.c.bf16 %v3459_v43, %v3458_v31  ;;  %6004 = vrot.lane.b32.xlu1 %v8559_v57, %s7581_s22  ;;  %6002 = vrot.lane.b32.xlu0 %v8551_v35, %s7581_s22  ;;  %v2984_v43 = vld [vmem:[%s8627_s14 + $0x98] sm:$0xff] }
 0x4d1   : > { %v3267_v4 = vadd.f32 %v3235_v46, %v8499_v3  ;;  %v7465_v46 = vld [vmem:[%s9617_s4 + $0x224] ss:$8 sps:$4 sm:$0xff]  }
 0x4d2   : > { %v7176_v2 = vpop.permute.xlu1 %7175  ;;  %v3156_v5 = vpop.permute.xlu0 %3155  ;;  %6408 = vmatmul.mubr.msk.bf16.gmra.mxu1 %vm3536_vm4, %v3488_v42  ;;  %6425 = vmatmul.mubr.msk.bf16.gmra.mxu0 %vm3536_vm4, %v3488_v42 }
 0x4d3   : > { %v7178_v63 = vunpack.i.h.bf16 %v7176_v2  ;;  %v7177_v0 = vunpack.i.l.bf16 %v7176_v2  ;;  %v3236_v1 = vmul.f32 %v3156_v5, %v2980_v33  ;;  %3700 = vmatprep.mubr.bf16.mxu1 %v7578_v55  ;;  %3893 = vmatprep.mubr.bf16.mxu0 %v7578_v55  ;;  %v7462_v33 = vld [vmem:[%s9617_s4 + $0x124] ss:$8 sps:$4 sm:$0xff]  }
 0x4d4   : > { %6008 = vrot.lane.b32.xlu1 %v8578_v17, %s7581_s22  ;;  %6006 = vrot.lane.b32.xlu0 %v8564_v21, %s7581_s22 }
 0x4d5   : > { %v3268_v8 = vadd.f32 %v3236_v1, %v8507_v24  ;;  %4591 = vmatpush2.bf16.msra.mxu1 %v7436_v47  ;;  %4784 = vmatpush2.bf16.msra.mxu0 %v7439_v50  ;;  %v3460_v9 = vsel %vm3445_vm3, %v3267_v4, %v7177_v0  ;;  %v2982_v24 = vld [vmem:[%s8627_s14 + $0x88] sm:$0xff]  ;;  %v7468_v4 = vld [vmem:[%s9617_s4 + $0x114] ss:$8 sps:$4 sm:$0xff]  }
 0x4d6   : > { %v3158_v15 = vpop.permute.xlu0 %3157  ;;  %4592 = vmatprep.subr.bf16.mxu1 %v7444_v51  ;;  %4785 = vmatprep.subr.bf16.mxu0 %v7447_v60  ;;  %v7460_v60 = vld [vmem:[%s9617_s4 + $0x120] ss:$8 sps:$4 sm:$0xff]  }
 0x4d7   : > { %v3461_v3 = vsel %vm3445_vm3, %v3268_v8, %v7178_v63  ;;  %v3237_v10 = vmul.f32 %v3158_v15, %v2981_v53  ;;  %v7463_v63 = vld [vmem:[%s9617_s4 + $0x220] ss:$8 sps:$4 sm:$0xff]   ;;  %v7471_v8 = vld [vmem:[%s9617_s4 + $0x214] ss:$8 sps:$4 sm:$0xff]  }
 0x4d8   : > { %v3489_v61 = vpack.c.bf16 %v3461_v3, %v3460_v9  ;;  %6012 = vrot.lane.b32.xlu1 %v8591_v32, %s7581_s22  ;;  %6010 = vrot.lane.b32.xlu0 %v8583_v6, %s7581_s22  ;;  %v7469_v3 = vld [vmem:[%s9617_s4 + $0x210] ss:$8 sps:$4 sm:$0xff]  }
 0x4d9   : > { %4593 = vmatpush2.bf16.msra.mxu1 %v7442_v27  ;;  %4786 = vmatpush2.bf16.msra.mxu0 %v7445_v62  ;;  %v3269_v39 = vadd.f32 %v3237_v10, %v8512_v18  ;;  %v7454_v18 = vld [vmem:[%s9617_s4 + $0x130] ss:$8 sps:$4 sm:$0xff]   ;;  %v2985_v27 = vld [vmem:[%s8627_s14 + $0xa0] sm:$0xff] }
 0x4da   : > { %v3160_v41 = vpop.permute.xlu1 %3159  ;;  %v7181_v22 = vpop.permute.xlu0 %7180  ;;  %6409 = vmatmul.mubr.msk.bf16.gmra.mxu1 %vm3536_vm4, %v3489_v61  ;;  %6426 = vmatmul.mubr.msk.bf16.gmra.mxu0 %vm3536_vm4, %v3489_v61 }
 0x4db   : > { %v3238_v28 = vmul.f32 %v3160_v41, %v2982_v24  ;;  %v7183_v29 = vunpack.i.h.bf16 %v7181_v22  ;;  %v7182_v30 = vunpack.i.l.bf16 %v7181_v22  ;;  %3710 = vmatprep.mubr.bf16.mxu1 %v7578_v55  ;;  %3903 = vmatprep.mubr.bf16.mxu0 %v7578_v55  ;;  %v7474_v22 = vld [vmem:[%s9617_s4 + $0x104] ss:$8 sps:$4 sm:$0xff]  }
 0x4dc   : > { %6016 = vrot.lane.b32.xlu1 %v8604_v25, %s7581_s22  ;;  %6014 = vrot.lane.b32.xlu0 %v8596_v56, %s7581_s22 }
 0x4dd   : > { %v3270_v37 = vadd.f32 %v3238_v28, %v8520_v59  ;;  %4594 = vmatprep.subr.bf16.mxu1 %v7450_v52  ;;  %4787 = vmatprep.subr.bf16.mxu0 %v7453_v20  ;;  %v3462_v16 = vsel %vm3445_vm3, %v3269_v39, %v7182_v30  ;;  %v7457_v59 = vld [vmem:[%s9617_s4 + $0x230] ss:$8 sps:$4 sm:$0xff]   ;;  %v7477_v28 = vld [vmem:[%s9617_s4 + $0x204] ss:$8 sps:$4 sm:$0xff]  }
 0x4de   : > { %v3162_v40 = vpop.permute.xlu1 %3161  ;;  %4595 = vmatpush2.bf16.msra.mxu1 %v7448_v23  ;;  %4788 = vmatpush2.bf16.msra.mxu0 %v7451_v26  ;;  %v7472_v23 = vld [vmem:[%s9617_s4 + $0x100] ss:$8 sps:$4 sm:$0xff]  }
 0x4df   : > { %v3463_v19 = vsel %vm3445_vm3, %v3270_v37, %v7183_v29  ;;  %4596 = vmatprep.subr.bf16.mxu1 %v7456_v34  ;;  %4789 = vmatprep.subr.bf16.mxu0 %v7459_v38  ;;  %v3239_v42 = vmul.f32 %v3162_v40, %v2983_v45  ;;  %v7475_v26 = vld [vmem:[%s9617_s4 + $0x200] ss:$8 sps:$4 sm:$0xff]   ;;  %v2987_v34 = vld [vmem:[%s8627_s14 + $0xb0] sm:$0xff]  ;;  %v2988_v40 = vld [vmem:[%s8627_s14 + $0xb8] sm:$0xff] }
 0x4e0   : > { %v3490_v31 = vpack.c.bf16 %v3463_v19, %v3462_v16  ;;  %6020 = vrot.lane.b32.xlu1 %v8617_v7, %s7581_s22  ;;  %6018 = vrot.lane.b32.xlu0 %v8609_v44, %s7581_s22 }
 0x4e1   : > { %v3271_v0 = vadd.f32 %v3239_v42, %v8525_v12  ;;  %v2986_v12 = vld [vmem:[%s8627_s14 + $0xa8] sm:$0xff]  ;;  %v2989_v42 = vld [vmem:[%s8627_s14 + $0xc0] sm:$0xff] }
 0x4e2   : > { %v7186_v47 = vpop.permute.xlu1 %7185  ;;  %v3164_v50 = vpop.permute.xlu0 %3163  ;;  %6410 = vmatmul.mubr.msk.bf16.gmra.mxu1 %vm3536_vm4, %v3490_v31  ;;  %6427 = vmatmul.mubr.msk.bf16.gmra.mxu0 %vm3536_vm4, %v3490_v31 }
 0x4e3   : > { %v7188_v2 = vunpack.i.h.bf16 %v7186_v47  ;;  %v7187_v5 = vunpack.i.l.bf16 %v7186_v47  ;;  %v3240_v51 = vmul.f32 %v3164_v50, %v2984_v43  ;;  %3720 = vmatprep.mubr.bf16.mxu1 %v7578_v55  ;;  %3913 = vmatprep.mubr.bf16.mxu0 %v7578_v55 }
 0x4e4   : > { %4597 = vmatpush2.bf16.msra.mxu1 %v7454_v18  ;;  %4790 = vmatpush2.bf16.msra.mxu0 %v7457_v59 }
 0x4e5   : > { %v3272_v1 = vadd.f32 %v3240_v51, %v8533_v36  ;;  %4598 = vmatprep.subr.bf16.mxu1 %v7462_v33  ;;  %4791 = vmatprep.subr.bf16.mxu0 %v7465_v46  ;;  %v3464_v53 = vsel %vm3445_vm3, %v3271_v0, %v7187_v5  ;;  %v7466_v36 = vld [vmem:[%s9617_s4 + $0x110] ss:$8 sps:$4 sm:$0xff]  }
 0x4e6   : > { %v3166_v62 = vpop.permute.xlu0 %3165 }
 0x4e7   : > { %v3465_v15 = vsel %vm3445_vm3, %v3272_v1, %v7188_v2  ;;  %v3241_v61 = vmul.f32 %v3166_v62, %v2985_v27  ;;  %v2990_v2 = vld [vmem:[%s8627_s14 + $0xc8] sm:$0xff] }
 0x4e8   : > { %v3491_v9 = vpack.c.bf16 %v3465_v15, %v3464_v53  ;;  %4599 = vmatpush2.bf16.msra.mxu1 %v7460_v60  ;;  %4792 = vmatpush2.bf16.msra.mxu0 %v7463_v63  ;;  %v2992_v15 = vld [vmem:[%s8627_s14 + $0xd8] sm:$0xff] }
 0x4e9   : > { %4600 = vmatprep.subr.bf16.mxu1 %v7468_v4  ;;  %4793 = vmatprep.subr.bf16.mxu0 %v7471_v8  ;;  %v3273_v29 = vadd.f32 %v3241_v61, %v8538_v54  ;;  %v2991_v4 = vld [vmem:[%s8627_s14 + $0xd0] sm:$0xff] }
 0x4ea   : > { %v3168_v24 = vpop.permute.xlu1 %3167  ;;  %v7191_v10 = vpop.permute.xlu0 %7190  ;;  %6411 = vmatmul.mubr.msk.bf16.gmra.mxu1 %vm3536_vm4, %v3491_v9  ;;  %6428 = vmatmul.mubr.msk.bf16.gmra.mxu0 %vm3536_vm4, %v3491_v9 }
 0x4eb   : > { %v3242_v52 = vmul.f32 %v3168_v24, %v2986_v12  ;;  %v7193_v20 = vunpack.i.h.bf16 %v7191_v10  ;;  %v7192_v41 = vunpack.i.l.bf16 %v7191_v10  ;;  %3730 = vmatprep.mubr.bf16.mxu1 %v7578_v55  ;;  %3923 = vmatprep.mubr.bf16.mxu0 %v7578_v55  ;;  %v2993_v10 = vld [vmem:[%s8627_s14 + $0xe0] sm:$0xff] }
 0x4ec   : > { %4601 = vmatpush2.bf16.msra.mxu1 %v7466_v36  ;;  %4794 = vmatpush2.bf16.msra.mxu0 %v7469_v3 }
 0x4ed   : > { %v3274_v30 = vadd.f32 %v3242_v52, %v8546_v11  ;;  %4602 = vmatprep.subr.bf16.mxu1 %v7474_v22  ;;  %4795 = vmatprep.subr.bf16.mxu0 %v7477_v28  ;;  %v3466_v37 = vsel %vm3445_vm3, %v3273_v29, %v7192_v41 }
 0x4ee   : > { %v3170_v38 = vpop.permute.xlu1 %3169 }
 0x4ef   : > { %v3467_v39 = vsel %vm3445_vm3, %v3274_v30, %v7193_v20  ;;  %v3243_v19 = vmul.f32 %v3170_v38, %v2987_v34 }
 0x4f0   : > { %v3492_v45 = vpack.c.bf16 %v3467_v39, %v3466_v37  ;;  %4603 = vmatpush2.bf16.msra.mxu1 %v7472_v23  ;;  %4796 = vmatpush2.bf16.msra.mxu0 %v7475_v26  ;;  %v2994_v23 = vld [vmem:[%s8627_s14 + $0xe8] sm:$0xff]  ;;  %v2995_v39 = vld [vmem:[%s8627_s14 + $0xf0] sm:$0xff] }
 0x4f1   : > { %v3275_v18 = vadd.f32 %v3243_v19, %v8551_v35 }
 0x4f2   : > { %v7196_v16 = vpop.permute.xlu1 %7195  ;;  %v3172_v43 = vpop.permute.xlu0 %3171  ;;  %6412 = vmatmul.mubr.msk.bf16.gmra.mxu1 %vm3536_vm4, %v3492_v45  ;;  %6429 = vmatmul.mubr.msk.bf16.gmra.mxu0 %vm3536_vm4, %v3492_v45 }
 0x4f3   : > { %v7198_v54 = vunpack.i.h.bf16 %v7196_v16  ;;  %v7197_v11 = vunpack.i.l.bf16 %v7196_v16  ;;  %v3244_v31 = vmul.f32 %v3172_v43, %v2988_v40  ;;  %3740 = vmatprep.mubr.bf16.mxu1 %v7578_v55  ;;  %3933 = vmatprep.mubr.bf16.mxu0 %v7578_v55  ;;  %v2996_v16 = vld [vmem:[%s8627_s14 + $0xf8] sm:$0xff] }
 0x4f5   : > { %v3276_v59 = vadd.f32 %v3244_v31, %v8559_v57  ;;  %v3468_v46 = vsel %vm3445_vm3, %v3275_v18, %v7197_v11 }
 0x4f6   : > { %v3174_v33 = vpop.permute.xlu0 %3173 }
 0x4f7   : > { %v3469_v47 = vsel %vm3445_vm3, %v3276_v59, %v7198_v54  ;;  %v3245_v5 = vmul.f32 %v3174_v33, %v2989_v42 }
 0x4f8   : > { %v3493_v50 = vpack.c.bf16 %v3469_v47, %v3468_v46  ;;  %v7478_v47 = vld [vmem:[%s9618_s5 + $0x98] sm:$0xff]  }
 0x4f9   : > { %v3277_v0 = vadd.f32 %v3245_v5, %v8564_v21  ;;  %6809 = vmatprep.subr.bf16.mxu1 %v7478_v47 }
 0x4fa   : > { %v3176_v51 = vpop.permute.xlu1 %3175  ;;  %v7201_v60 = vpop.permute.xlu0 %7200  ;;  %6413 = vmatmul.mubr.msk.bf16.gmra.mxu1 %vm3536_vm4, %v3493_v50  ;;  %6430 = vmatmul.mubr.msk.bf16.gmra.mxu0 %vm3536_vm4, %v3493_v50 }
 0x4fb   : > { %v3246_v35 = vmul.f32 %v3176_v51, %v2990_v2  ;;  %v7203_v63 = vunpack.i.h.bf16 %v7201_v60  ;;  %v7202_v57 = vunpack.i.l.bf16 %v7201_v60  ;;  %3750 = vmatprep.mubr.bf16.mxu1 %v7578_v55  ;;  %3943 = vmatprep.mubr.bf16.mxu0 %v7578_v55 }
 0x4fd   : > { %v3278_v1 = vadd.f32 %v3246_v35, %v8578_v17  ;;  %v3470_v62 = vsel %vm3445_vm3, %v3277_v0, %v7202_v57 }
 0x4fe   : > { %v3178_v8 = vpop.permute.xlu1 %3177 }
 0x4ff   : > { %v3471_v27 = vsel %vm3445_vm3, %v3278_v1, %v7203_v63  ;;  %v3247_v9 = vmul.f32 %v3178_v8, %v2991_v4 }
 0x500   : > { %v3494_v53 = vpack.c.bf16 %v3471_v27, %v3470_v62 }
 0x501   : > { %v3279_v61 = vadd.f32 %v3247_v9, %v8583_v6 }
 0x502   : > { %v7206_v12 = vpop.permute.xlu1 %7205  ;;  %v3180_v36 = vpop.permute.xlu0 %3179  ;;  %6414 = vmatmul.mubr.msk.bf16.gmra.mxu1 %vm3536_vm4, %v3494_v53  ;;  %6431 = vmatmul.mubr.msk.bf16.gmra.mxu0 %vm3536_vm4, %v3494_v53 }
 0x503   : > { %v7208_v21 = vunpack.i.h.bf16 %v7206_v12  ;;  %v7207_v3 = vunpack.i.l.bf16 %v7206_v12  ;;  %v3248_v17 = vmul.f32 %v3180_v36, %v2992_v15  ;;  %3760 = vmatprep.mubr.bf16.mxu1 %v7578_v55  ;;  %3953 = vmatprep.mubr.bf16.mxu0 %v7578_v55 }
 0x505   : > { %v3280_v24 = vadd.f32 %v3248_v17, %v8591_v32  ;;  %v3472_v20 = vsel %vm3445_vm3, %v3279_v61, %v7207_v3 }
 0x506   : > { %v3182_v52 = vpop.permute.xlu0 %3181 }
 0x507   : > { %v3473_v41 = vsel %vm3445_vm3, %v3280_v24, %v7208_v21  ;;  %v3249_v26 = vmul.f32 %v3182_v52, %v2993_v10 }
 0x508   : > { %v3495_v22 = vpack.c.bf16 %v3473_v41, %v3472_v20 }
 0x509   : > { %v3281_v34 = vadd.f32 %v3249_v26, %v8596_v56 }
 0x50a   : > { %v3184_v28 = vpop.permute.xlu1 %3183  ;;  %v7211_v29 = vpop.permute.xlu0 %7210  ;;  %6415 = vmatmul.mubr.msk.bf16.gmra.mxu1 %vm3536_vm4, %v3495_v22  ;;  %6432 = vmatmul.mubr.msk.bf16.gmra.mxu0 %vm3536_vm4, %v3495_v22 }
 0x50b   : > { %v3250_v6 = vmul.f32 %v3184_v28, %v2994_v23  ;;  %v7213_v30 = vunpack.i.h.bf16 %v7211_v29  ;;  %v7212_v32 = vunpack.i.l.bf16 %v7211_v29  ;;  %3770 = vmatprep.mubr.bf16.mxu1 %v7578_v55  ;;  %3963 = vmatprep.mubr.bf16.mxu0 %v7578_v55  ;;  %v7479_v23 = vld [vmem:[%s9618_s5 + $0x58] sm:$0xff]  }
 0x50d   : > { %v3282_v38 = vadd.f32 %v3250_v6, %v8604_v25  ;;  %v3474_v40 = vsel %vm3445_vm3, %v3281_v34, %v7212_v32  ;;  %v7480_v32 = vld [vmem:[%s9618_s5 + $0x90] sm:$0xff]  }
 0x50e   : > { %v3186_v37 = vpop.permute.xlu1 %3185 }
 0x50f   : > { %v3475_v45 = vsel %vm3445_vm3, %v3282_v38, %v7213_v30  ;;  %v3251_v43 = vmul.f32 %v3186_v37, %v2995_v39 }
 0x510   : > { %v3496_v19 = vpack.c.bf16 %v3475_v45, %v3474_v40 }
 0x511   : > { %v3283_v25 = vadd.f32 %v3251_v43, %v8609_v44 }
 0x512   : > { %v7216_v54 = vpop.permute.xlu1 %7215  ;;  %v3188_v11 = vpop.permute.xlu0 %3187  ;;  %6416 = vmatmul.mubr.msk.bf16.gmra.mxu1 %vm3536_vm4, %v3496_v19  ;;  %6433 = vmatmul.mubr.msk.bf16.gmra.mxu0 %vm3536_vm4, %v3496_v19 }
 0x513   : > { %v7218_v31 = vunpack.i.h.bf16 %v7216_v54  ;;  %v7217_v18 = vunpack.i.l.bf16 %v7216_v54  ;;  %v3252_v56 = vmul.f32 %v3188_v11, %v2996_v16  ;;  %3780 = vmatprep.mubr.bf16.mxu1 %v7578_v55  ;;  %3973 = vmatprep.mubr.bf16.mxu0 %v7578_v55  ;;  %v3498_v55 = vld [vmem:[%s9621_s8 + $0x9] sm:$0xf]  ;;  %v7481_v54 = vld [vmem:[%s9618_s5 + $0x50] sm:$0xff]  }
 0x514   : > { %v9054_v50 = vrot.slane %v3498_v55, %v8075_v48  ;;  %v9058_v2 = vrot.slane %v3498_v55, %v1476_v13  ;;  %v9061_v5 = vrot.slane %v3498_v55, %v8078_v49  ;;  %v9065_v51 = vrot.slane %v3498_v55, %v1472_v14 }
 0x515   : > { %v3284_v59 = vadd.f32 %v3252_v56, %v8617_v7  ;;  %v3476_v42 = vsel %vm3445_vm3, %v3283_v25, %v7217_v18  ;;  %v7482_v25 = vld [vmem:[%s9618_s5 + $0x88] sm:$0xff]  }
 0x517   : > { %v3477_v33 = vsel %vm3445_vm3, %v3284_v59, %v7218_v31 }
 0x518   : > { %v3497_v46 = vpack.c.bf16 %v3477_v33, %v3476_v42 }
 0x51a   : > { %6417 = vmatmul.mubr.msk.bf16.gmra.mxu1 %vm3536_vm4, %v3497_v46  ;;  %6434 = vmatmul.mubr.msk.bf16.gmra.mxu0 %vm3536_vm4, %v3497_v46 }
 0x562   : > { %v3632_v44 = vpop.f32.mrf.mxu1  ;;  %v3825_v7 = vpop.f32.mrf.mxu0 }
 0x563   : > { %v3633_v8 = vadd.f32 %v3632_v44, %v9061_v5  ;;  %v3826_v27 = vadd.f32 %v3825_v7, %v9065_v51 }
 0x564   : > { %v3634_v60 = vpop.f32.mrf.mxu1  ;;  %v3827_v35 = vpop.f32.mrf.mxu0 }
 0x565   : > { %v3635_v0 = vadd.f32 %v3634_v60, %v9054_v50  ;;  %v3828_v1 = vadd.f32 %v3827_v35, %v9058_v2  ;;  %v3984_v24 = vmax.f32 %v3633_v8, 0.0  ;;  %v3986_v10 = vmax.f32 %v3826_v27, 0.0  ;;  %v7484_v8 = vld [vmem:[%s9618_s5 + $0x80] sm:$0xff]  }
 0x566   : > { %v3636_v63 = vpop.f32.mrf.mxu1  ;;  %v3829_v57 = vpop.f32.mrf.mxu0 }
 0x567   : > { %v3637_v4 = vadd.f32 %v3636_v63, %v9061_v5  ;;  %v3830_v13 = vadd.f32 %v3829_v57, %v9065_v51  ;;  %v3985_v21 = vmax.f32 %v3635_v0, 0.0  ;;  %v3987_v3 = vmax.f32 %v3828_v1, 0.0  ;;  %v7483_v63 = vld [vmem:[%s9618_s5 + $0x48] sm:$0xff]  }
 0x568   : > { %v3638_v62 = vpop.f32.mrf.mxu1  ;;  %v3831_v58 = vpop.f32.mrf.mxu0 }
 0x569   : > { %v3639_v14 = vadd.f32 %v3638_v62, %v9054_v50  ;;  %v3832_v53 = vadd.f32 %v3831_v58, %v9058_v2  ;;  %v3988_v15 = vmax.f32 %v3637_v4, 0.0  ;;  %v3990_v9 = vmax.f32 %v3830_v13, 0.0 }
 0x56a   : > { %v3642_v12 = vpop.f32.mrf.mxu1  ;;  %v3835_v36 = vpop.f32.mrf.mxu0 }
 0x56b   : > { %v3989_v17 = vmax.f32 %v3639_v14, 0.0  ;;  %v3991_v61 = vmax.f32 %v3832_v53, 0.0  ;;  %v4176_v26 = vpack.c.bf16 %v3988_v15, %v3984_v24  ;;  %v4178_v28 = vpack.c.bf16 %v3990_v9, %v3986_v10  ;;  %v7486_v10 = vld [vmem:[%s9618_s5 + $0x78] sm:$0xff]  }
 0x56c   : > { %v3644_v52 = vpop.f32.mrf.mxu1  ;;  %v3837_v20 = vpop.f32.mrf.mxu0  ;;  %v3643_v37 = vadd.f32 %v3642_v12, %v9061_v5  ;;  %v3836_v45 = vadd.f32 %v3835_v36, %v9065_v51 }
 0x56d   : > { %v4177_v41 = vpack.c.bf16 %v3989_v17, %v3985_v21  ;;  %v4179_v22 = vpack.c.bf16 %v3991_v61, %v3987_v3  ;;  %v3645_v29 = vadd.f32 %v3644_v52, %v9054_v50  ;;  %v3838_v34 = vadd.f32 %v3837_v20, %v9058_v2  ;;  %v7485_v21 = vld [vmem:[%s9618_s5 + $0x40] sm:$0xff]  }
 0x56e   : > { %v3646_v6 = vpop.f32.mrf.mxu1  ;;  %v3839_v30 = vpop.f32.mrf.mxu0  ;;  %v3992_v47 = vmax.f32 %v3643_v37, 0.0  ;;  %v3994_v55 = vmax.f32 %v3836_v45, 0.0 }
 0x56f   : > { %v3647_v38 = vadd.f32 %v3646_v6, %v9061_v5  ;;  %v3840_v39 = vadd.f32 %v3839_v30, %v9065_v51  ;;  %4604 = vmatprep.mubr.bf16.mxu1 %v4177_v41  ;;  %4797 = vmatprep.mubr.bf16.mxu0 %v4179_v22  ;;  %v3993_v59 = vmax.f32 %v3645_v29, 0.0  ;;  %v3995_v42 = vmax.f32 %v3838_v34, 0.0 }
 0x570   : > { %v3648_v40 = vpop.f32.mrf.mxu1  ;;  %v3841_v19 = vpop.f32.mrf.mxu0  ;;  %4605 = vmatmul.mubr.bf16.vlgmr.msra.gmra.mxu1 %v4176_v26  ;;  %4798 = vmatmul.mubr.bf16.vlgmr.msra.gmra.mxu0 %v4178_v28 }
 0x571   : > { %v3649_v16 = vadd.f32 %v3648_v40, %v9054_v50  ;;  %v3842_v43 = vadd.f32 %v3841_v19, %v9058_v2  ;;  %6810 = vmatpush3.bf16.msra.mxu1 %v7479_v23  ;;  %v3996_v11 = vmax.f32 %v3647_v38, 0.0  ;;  %v3998_v31 = vmax.f32 %v3840_v39, 0.0  ;;  %v7488_v40 = vld [vmem:[%s9618_s5 + $0x70] sm:$0xff]  }
 0x572   : > { %v3652_v18 = vpop.f32.mrf.mxu1  ;;  %v3845_v56 = vpop.f32.mrf.mxu0  ;;  %6811 = vmatprep.subr.bf16.mxu1 %v7480_v32  ;;  %v7487_v32 = vld [vmem:[%s9618_s5 + $0x38] sm:$0xff]  }
 0x573   : > { %v3997_v33 = vmax.f32 %v3649_v16, 0.0  ;;  %v3999_v46 = vmax.f32 %v3842_v43, 0.0  ;;  %v4180_v57 = vpack.c.bf16 %v3996_v11, %v3992_v47  ;;  %v4182_v0 = vpack.c.bf16 %v3998_v31, %v3994_v55  ;;  %v7490_v55 = vld [vmem:[%s9618_s5 + $0x68] sm:$0xff]  }
 0x574   : > { %v3654_v44 = vpop.f32.mrf.mxu1  ;;  %v3847_v7 = vpop.f32.mrf.mxu0  ;;  %v3653_v14 = vadd.f32 %v3652_v18, %v9061_v5  ;;  %v3846_v53 = vadd.f32 %v3845_v56, %v9065_v51 }
 0x575   : > { %v4181_v60 = vpack.c.bf16 %v3997_v33, %v3993_v59  ;;  %v4183_v35 = vpack.c.bf16 %v3999_v46, %v3995_v42  ;;  %6812 = vmatpush3.bf16.msra.mxu1 %v7481_v54  ;;  %v3655_v1 = vadd.f32 %v3654_v44, %v9054_v50  ;;  %v3848_v27 = vadd.f32 %v3847_v7, %v9058_v2  ;;  %v7489_v59 = vld [vmem:[%s9618_s5 + $0x30] sm:$0xff]  }
 0x576   : > { %v3656_v4 = vpop.f32.mrf.mxu1  ;;  %v3849_v13 = vpop.f32.mrf.mxu0  ;;  %6813 = vmatprep.subr.bf16.mxu1 %v7482_v25  ;;  %v4000_v23 = vmax.f32 %v3653_v14, 0.0  ;;  %v4002_v26 = vmax.f32 %v3846_v53, 0.0 }
 0x577   : > { %v3657_v62 = vadd.f32 %v3656_v4, %v9061_v5  ;;  %v3850_v58 = vadd.f32 %v3849_v13, %v9065_v51  ;;  %4614 = vmatprep.mubr.bf16.mxu1 %v4181_v60  ;;  %4807 = vmatprep.mubr.bf16.mxu0 %v4183_v35  ;;  %v4001_v52 = vmax.f32 %v3655_v1, 0.0  ;;  %v4003_v20 = vmax.f32 %v3848_v27, 0.0 }
 0x578   : > { %v3658_v15 = vpop.f32.mrf.mxu1  ;;  %v3851_v9 = vpop.f32.mrf.mxu0  ;;  %4615 = vmatmul.mubr.bf16.gmra.mxu1 %v4180_v57  ;;  %4808 = vmatmul.mubr.bf16.gmra.mxu0 %v4182_v0 }
 0x579   : > { %v3659_v12 = vadd.f32 %v3658_v15, %v9054_v50  ;;  %v3852_v36 = vadd.f32 %v3851_v9, %v9058_v2  ;;  %6814 = vmatpush3.bf16.msra.mxu1 %v7483_v63  ;;  %v4004_v3 = vmax.f32 %v3657_v62, 0.0  ;;  %v4006_v17 = vmax.f32 %v3850_v58, 0.0  ;;  %v7492_v15 = vld [vmem:[%s9618_s5 + $0x60] sm:$0xff]  }
 0x57a   : > { %v3662_v61 = vpop.f32.mrf.mxu1  ;;  %v3855_v24 = vpop.f32.mrf.mxu0  ;;  %6815 = vmatprep.subr.bf16.mxu1 %v7484_v8  ;;  %v7491_v8 = vld [vmem:[%s9618_s5 + $0x28] sm:$0xff]  }
 0x57b   : > { %v4005_v41 = vmax.f32 %v3659_v12, 0.0  ;;  %v4007_v22 = vmax.f32 %v3852_v36, 0.0  ;;  %v4184_v34 = vpack.c.bf16 %v4004_v3, %v4000_v23  ;;  %v4186_v38 = vpack.c.bf16 %v4006_v17, %v4002_v26 }
 0x57c   : > { %v3664_v28 = vpop.f32.mrf.mxu1  ;;  %v3857_v29 = vpop.f32.mrf.mxu0  ;;  %v3663_v54 = vadd.f32 %v3662_v61, %v9061_v5  ;;  %v3856_v11 = vadd.f32 %v3855_v24, %v9065_v51 }
 0x57d   : > { %v4185_v6 = vpack.c.bf16 %v4005_v41, %v4001_v52  ;;  %v4187_v30 = vpack.c.bf16 %v4007_v22, %v4003_v20  ;;  %6816 = vmatpush3.bf16.msra.mxu1 %v7485_v21  ;;  %v3665_v39 = vadd.f32 %v3664_v28, %v9054_v50  ;;  %v3858_v19 = vadd.f32 %v3857_v29, %v9058_v2 }
 0x57e   : > { %v3666_v37 = vpop.f32.mrf.mxu1  ;;  %v3859_v45 = vpop.f32.mrf.mxu0  ;;  %6817 = vmatprep.subr.bf16.mxu1 %v7486_v10  ;;  %v4008_v63 = vmax.f32 %v3663_v54, 0.0  ;;  %v4010_v57 = vmax.f32 %v3856_v11, 0.0 }
 0x57f   : > { %v3667_v16 = vadd.f32 %v3666_v37, %v9061_v5  ;;  %v3860_v43 = vadd.f32 %v3859_v45, %v9065_v51  ;;  %4624 = vmatprep.mubr.bf16.mxu1 %v4185_v6  ;;  %4817 = vmatprep.mubr.bf16.mxu0 %v4187_v30  ;;  %v4009_v44 = vmax.f32 %v3665_v39, 0.0  ;;  %v4011_v7 = vmax.f32 %v3858_v19, 0.0 }
 0x580   : > { %v3668_v31 = vpop.f32.mrf.mxu1  ;;  %v3861_v18 = vpop.f32.mrf.mxu0  ;;  %4625 = vmatmul.mubr.bf16.gmra.mxu1 %v4184_v34  ;;  %4818 = vmatmul.mubr.bf16.gmra.mxu0 %v4186_v38 }
 0x581   : > { %v3669_v56 = vadd.f32 %v3668_v31, %v9054_v50  ;;  %v3862_v25 = vadd.f32 %v3861_v18, %v9058_v2  ;;  %6818 = vmatpush3.bf16.msra.mxu1 %v7487_v32  ;;  %v4012_v42 = vmax.f32 %v3667_v16, 0.0  ;;  %v4014_v33 = vmax.f32 %v3860_v43, 0.0 }
 0x582   : > { %v3672_v46 = vpop.f32.mrf.mxu1  ;;  %v3865_v47 = vpop.f32.mrf.mxu0  ;;  %6819 = vmatprep.subr.bf16.mxu1 %v7488_v40 }
 0x583   : > { %v4013_v60 = vmax.f32 %v3669_v56, 0.0  ;;  %v4015_v35 = vmax.f32 %v3862_v25, 0.0  ;;  %v4188_v27 = vpack.c.bf16 %v4012_v42, %v4008_v63  ;;  %v4190_v62 = vpack.c.bf16 %v4014_v33, %v4010_v57 }
 0x584   : > { %v3674_v0 = vpop.f32.mrf.mxu1  ;;  %v3867_v1 = vpop.f32.mrf.mxu0  ;;  %v3673_v21 = vadd.f32 %v3672_v46, %v9061_v5  ;;  %v3866_v3 = vadd.f32 %v3865_v47, %v9065_v51 }
 0x585   : > { %v4189_v4 = vpack.c.bf16 %v4013_v60, %v4009_v44  ;;  %v4191_v13 = vpack.c.bf16 %v4015_v35, %v4011_v7  ;;  %6820 = vmatpush3.bf16.msra.mxu1 %v7489_v59  ;;  %v3675_v58 = vadd.f32 %v3674_v0, %v9054_v50  ;;  %v3868_v9 = vadd.f32 %v3867_v1, %v9058_v2 }
 0x586   : > { %v3676_v14 = vpop.f32.mrf.mxu1  ;;  %v3869_v53 = vpop.f32.mrf.mxu0  ;;  %6821 = vmatprep.subr.bf16.mxu1 %v7490_v55  ;;  %v4016_v6 = vmax.f32 %v3673_v21, 0.0  ;;  %v4018_v30 = vmax.f32 %v3866_v3, 0.0 }
 0x587   : > { %v3677_v12 = vadd.f32 %v3676_v14, %v9061_v5  ;;  %v3870_v36 = vadd.f32 %v3869_v53, %v9065_v51  ;;  %4634 = vmatprep.mubr.bf16.mxu1 %v4189_v4  ;;  %4827 = vmatprep.mubr.bf16.mxu0 %v4191_v13  ;;  %v4017_v23 = vmax.f32 %v3675_v58, 0.0  ;;  %v4019_v26 = vmax.f32 %v3868_v9, 0.0 }
 0x588   : > { %v3678_v17 = vpop.f32.mrf.mxu1  ;;  %v3871_v61 = vpop.f32.mrf.mxu0  ;;  %4635 = vmatmul.mubr.bf16.gmra.mxu1 %v4188_v27  ;;  %4828 = vmatmul.mubr.bf16.gmra.mxu0 %v4190_v62 }
 0x589   : > { %v3679_v24 = vadd.f32 %v3678_v17, %v9054_v50  ;;  %v3872_v10 = vadd.f32 %v3871_v61, %v9058_v2  ;;  %6822 = vmatpush3.bf16.msra.mxu1 %v7491_v8  ;;  %v4020_v52 = vmax.f32 %v3677_v12, 0.0  ;;  %v4022_v20 = vmax.f32 %v3870_v36, 0.0 }
 0x58a   : > { %v3682_v41 = vpop.f32.mrf.mxu1  ;;  %v3875_v22 = vpop.f32.mrf.mxu0  ;;  %6823 = vmatprep.subr.bf16.mxu1 %v7492_v15 }
 0x58b   : > { %v4021_v28 = vmax.f32 %v3679_v24, 0.0  ;;  %v4023_v29 = vmax.f32 %v3872_v10, 0.0  ;;  %v4192_v37 = vpack.c.bf16 %v4020_v52, %v4016_v6  ;;  %v4194_v45 = vpack.c.bf16 %v4022_v20, %v4018_v30 }
 0x58c   : > { %v3684_v32 = vpop.f32.mrf.mxu1  ;;  %v3877_v34 = vpop.f32.mrf.mxu0  ;;  %v3683_v31 = vadd.f32 %v3682_v41, %v9061_v5  ;;  %v3876_v18 = vadd.f32 %v3875_v22, %v9065_v51 }
 0x58d   : > { %v4193_v38 = vpack.c.bf16 %v4021_v28, %v4017_v23  ;;  %v4195_v39 = vpack.c.bf16 %v4023_v29, %v4019_v26  ;;  %v3685_v40 = vadd.f32 %v3684_v32, %v9054_v50  ;;  %v3878_v43 = vadd.f32 %v3877_v34, %v9058_v2 }
 0x58e   : > { %v3686_v19 = vpop.f32.mrf.mxu1  ;;  %v3879_v16 = vpop.f32.mrf.mxu0  ;;  %v4024_v63 = vmax.f32 %v3683_v31, 0.0  ;;  %v4026_v57 = vmax.f32 %v3876_v18, 0.0 }
 0x58f   : > { %v3687_v54 = vadd.f32 %v3686_v19, %v9061_v5  ;;  %v3880_v11 = vadd.f32 %v3879_v16, %v9065_v51  ;;  %4644 = vmatprep.mubr.bf16.mxu1 %v4193_v38  ;;  %4837 = vmatprep.mubr.bf16.mxu0 %v4195_v39  ;;  %v4025_v44 = vmax.f32 %v3685_v40, 0.0  ;;  %v4027_v7 = vmax.f32 %v3878_v43, 0.0 }
 0x590   : > { %v3688_v56 = vpop.f32.mrf.mxu1  ;;  %v3881_v25 = vpop.f32.mrf.mxu0  ;;  %4645 = vmatmul.mubr.bf16.gmra.mxu1 %v4192_v37  ;;  %4838 = vmatmul.mubr.bf16.gmra.mxu0 %v4194_v45 }
 0x591   : > { %v3689_v59 = vadd.f32 %v3688_v56, %v9054_v50  ;;  %v3882_v42 = vadd.f32 %v3881_v25, %v9058_v2  ;;  %v4028_v33 = vmax.f32 %v3687_v54, 0.0  ;;  %v4030_v46 = vmax.f32 %v3880_v11, 0.0 }
 0x592   : > { %v3692_v47 = vpop.f32.mrf.mxu1  ;;  %v3885_v55 = vpop.f32.mrf.mxu0 }
 0x593   : > { %v4029_v60 = vmax.f32 %v3689_v59, 0.0  ;;  %v4031_v35 = vmax.f32 %v3882_v42, 0.0  ;;  %v4196_v8 = vpack.c.bf16 %v4028_v33, %v4024_v63  ;;  %v4198_v27 = vpack.c.bf16 %v4030_v46, %v4026_v57 }
 0x594   : > { %v3694_v0 = vpop.f32.mrf.mxu1  ;;  %v3887_v1 = vpop.f32.mrf.mxu0  ;;  %v3693_v12 = vadd.f32 %v3692_v47, %v9061_v5  ;;  %v3886_v36 = vadd.f32 %v3885_v55, %v9065_v51 }
 0x595   : > { %v4197_v4 = vpack.c.bf16 %v4029_v60, %v4025_v44  ;;  %v4199_v13 = vpack.c.bf16 %v4031_v35, %v4027_v7  ;;  %v3695_v62 = vadd.f32 %v3694_v0, %v9054_v50  ;;  %v3888_v53 = vadd.f32 %v3887_v1, %v9058_v2 }
 0x596   : > { %v3696_v58 = vpop.f32.mrf.mxu1  ;;  %v3889_v14 = vpop.f32.mrf.mxu0  ;;  %v4032_v28 = vmax.f32 %v3693_v12, 0.0  ;;  %v4034_v29 = vmax.f32 %v3886_v36, 0.0 }
 0x597   : > { %v3697_v15 = vadd.f32 %v3696_v58, %v9061_v5  ;;  %v3890_v9 = vadd.f32 %v3889_v14, %v9065_v51  ;;  %4654 = vmatprep.mubr.bf16.mxu1 %v4197_v4  ;;  %4847 = vmatprep.mubr.bf16.mxu0 %v4199_v13  ;;  %v4033_v41 = vmax.f32 %v3695_v62, 0.0  ;;  %v4035_v22 = vmax.f32 %v3888_v53, 0.0 }
 0x598   : > { %v3698_v21 = vpop.f32.mrf.mxu1  ;;  %v3891_v3 = vpop.f32.mrf.mxu0  ;;  %4655 = vmatmul.mubr.bf16.gmra.mxu1 %v4196_v8  ;;  %4848 = vmatmul.mubr.bf16.gmra.mxu0 %v4198_v27 }
 0x599   : > { %v3699_v17 = vadd.f32 %v3698_v21, %v9054_v50  ;;  %v3892_v61 = vadd.f32 %v3891_v3, %v9058_v2  ;;  %v4036_v24 = vmax.f32 %v3697_v15, 0.0  ;;  %v4038_v10 = vmax.f32 %v3890_v9, 0.0 }
 0x59a   : > { %v3702_v52 = vpop.f32.mrf.mxu1  ;;  %v3895_v20 = vpop.f32.mrf.mxu0 }
 0x59b   : > { %v4037_v23 = vmax.f32 %v3699_v17, 0.0  ;;  %v4039_v26 = vmax.f32 %v3892_v61, 0.0  ;;  %v4200_v38 = vpack.c.bf16 %v4036_v24, %v4032_v28  ;;  %v4202_v39 = vpack.c.bf16 %v4038_v10, %v4034_v29 }
 0x59c   : > { %v3704_v6 = vpop.f32.mrf.mxu1  ;;  %v3897_v30 = vpop.f32.mrf.mxu0  ;;  %v3703_v54 = vadd.f32 %v3702_v52, %v9061_v5  ;;  %v3896_v11 = vadd.f32 %v3895_v20, %v9065_v51 }
 0x59d   : > { %v4201_v32 = vpack.c.bf16 %v4037_v23, %v4033_v41  ;;  %v4203_v34 = vpack.c.bf16 %v4039_v26, %v4035_v22  ;;  %v3705_v37 = vadd.f32 %v3704_v6, %v9054_v50  ;;  %v3898_v19 = vadd.f32 %v3897_v30, %v9058_v2 }
 0x59e   : > { %v3706_v45 = vpop.f32.mrf.mxu1  ;;  %v3899_v40 = vpop.f32.mrf.mxu0  ;;  %v4040_v60 = vmax.f32 %v3703_v54, 0.0  ;;  %v4042_v35 = vmax.f32 %v3896_v11, 0.0 }
 0x59f   : > { %v3707_v16 = vadd.f32 %v3706_v45, %v9061_v5  ;;  %v3900_v43 = vadd.f32 %v3899_v40, %v9065_v51  ;;  %4664 = vmatprep.mubr.bf16.mxu1 %v4201_v32  ;;  %4857 = vmatprep.mubr.bf16.mxu0 %v4203_v34  ;;  %v4041_v47 = vmax.f32 %v3705_v37, 0.0  ;;  %v4043_v55 = vmax.f32 %v3898_v19, 0.0 }
 0x5a0   : > { %v3708_v31 = vpop.f32.mrf.mxu1  ;;  %v3901_v18 = vpop.f32.mrf.mxu0  ;;  %4665 = vmatmul.mubr.bf16.gmra.mxu1 %v4200_v38  ;;  %4858 = vmatmul.mubr.bf16.gmra.mxu0 %v4202_v39 }
 0x5a1   : > { %v3709_v56 = vadd.f32 %v3708_v31, %v9054_v50  ;;  %v3902_v25 = vadd.f32 %v3901_v18, %v9058_v2  ;;  %v4044_v59 = vmax.f32 %v3707_v16, 0.0  ;;  %v4046_v42 = vmax.f32 %v3900_v43, 0.0 }
 0x5a2   : > { %v3712_v33 = vpop.f32.mrf.mxu1  ;;  %v3905_v46 = vpop.f32.mrf.mxu0 }
 0x5a3   : > { %v4045_v44 = vmax.f32 %v3709_v56, 0.0  ;;  %v4047_v7 = vmax.f32 %v3902_v25, 0.0  ;;  %v4204_v4 = vpack.c.bf16 %v4044_v59, %v4040_v60  ;;  %v4206_v13 = vpack.c.bf16 %v4046_v42, %v4042_v35 }
 0x5a4   : > { %v3714_v63 = vpop.f32.mrf.mxu1  ;;  %v3907_v57 = vpop.f32.mrf.mxu0  ;;  %v3713_v15 = vadd.f32 %v3712_v33, %v9061_v5  ;;  %v3906_v9 = vadd.f32 %v3905_v46, %v9065_v51 }
 0x5a5   : > { %v4205_v0 = vpack.c.bf16 %v4045_v44, %v4041_v47  ;;  %v4207_v1 = vpack.c.bf16 %v4047_v7, %v4043_v55  ;;  %v3715_v8 = vadd.f32 %v3714_v63, %v9054_v50  ;;  %v3908_v58 = vadd.f32 %v3907_v57, %v9058_v2 }
 0x5a6   : > { %v3716_v27 = vpop.f32.mrf.mxu1  ;;  %v3909_v62 = vpop.f32.mrf.mxu0  ;;  %v4048_v23 = vmax.f32 %v3713_v15, 0.0  ;;  %v4050_v26 = vmax.f32 %v3906_v9, 0.0 }
 0x5a7   : > { %v3717_v14 = vadd.f32 %v3716_v27, %v9061_v5  ;;  %v3910_v53 = vadd.f32 %v3909_v62, %v9065_v51  ;;  %4674 = vmatprep.mubr.bf16.mxu1 %v4205_v0  ;;  %4867 = vmatprep.mubr.bf16.mxu0 %v4207_v1  ;;  %v4049_v52 = vmax.f32 %v3715_v8, 0.0  ;;  %v4051_v20 = vmax.f32 %v3908_v58, 0.0  ;;  %v7493_v0 = vld [vmem:[%s9618_s5 + $0x20] sm:$0xff]  }
 0x5a8   : > { %v3718_v12 = vpop.f32.mrf.mxu1  ;;  %v3911_v36 = vpop.f32.mrf.mxu0  ;;  %4675 = vmatmul.mubr.bf16.gmra.mxu1 %v4204_v4  ;;  %4868 = vmatmul.mubr.bf16.gmra.mxu0 %v4206_v13 }
 0x5a9   : > { %v3719_v21 = vadd.f32 %v3718_v12, %v9054_v50  ;;  %v3912_v3 = vadd.f32 %v3911_v36, %v9058_v2  ;;  %v4052_v17 = vmax.f32 %v3717_v14, 0.0  ;;  %v4054_v61 = vmax.f32 %v3910_v53, 0.0  ;;  %6824 = vmatpush3.bf16.msra.mxu1 %v7493_v0 }
 0x5aa   : > { %v3722_v24 = vpop.f32.mrf.mxu1  ;;  %v3915_v10 = vpop.f32.mrf.mxu0 }
 0x5ab   : > { %v4053_v41 = vmax.f32 %v3719_v21, 0.0  ;;  %v4055_v22 = vmax.f32 %v3912_v3, 0.0  ;;  %v4208_v32 = vpack.c.bf16 %v4052_v17, %v4048_v23  ;;  %v4210_v34 = vpack.c.bf16 %v4054_v61, %v4050_v26 }
 0x5ac   : > { %v3724_v28 = vpop.f32.mrf.mxu1  ;;  %v3917_v29 = vpop.f32.mrf.mxu0  ;;  %v3723_v16 = vadd.f32 %v3722_v24, %v9061_v5  ;;  %v3916_v43 = vadd.f32 %v3915_v10, %v9065_v51 }
 0x5ad   : > { %v4209_v6 = vpack.c.bf16 %v4053_v41, %v4049_v52  ;;  %v4211_v30 = vpack.c.bf16 %v4055_v22, %v4051_v20  ;;  %v3725_v38 = vadd.f32 %v3724_v28, %v9054_v50  ;;  %v3918_v45 = vadd.f32 %v3917_v29, %v9058_v2 }
 0x5ae   : > { %v3726_v39 = vpop.f32.mrf.mxu1  ;;  %v3919_v37 = vpop.f32.mrf.mxu0  ;;  %v4056_v44 = vmax.f32 %v3723_v16, 0.0  ;;  %v4058_v7 = vmax.f32 %v3916_v43, 0.0 }
 0x5af   : > { %v3727_v40 = vadd.f32 %v3726_v39, %v9061_v5  ;;  %v3920_v19 = vadd.f32 %v3919_v37, %v9065_v51  ;;  %4684 = vmatprep.mubr.bf16.mxu1 %v4209_v6  ;;  %4877 = vmatprep.mubr.bf16.mxu0 %v4211_v30  ;;  %v4057_v33 = vmax.f32 %v3725_v38, 0.0  ;;  %v4059_v46 = vmax.f32 %v3918_v45, 0.0 }
 0x5b0   : > { %v3728_v54 = vpop.f32.mrf.mxu1  ;;  %v3921_v11 = vpop.f32.mrf.mxu0  ;;  %4685 = vmatmul.mubr.bf16.gmra.mxu1 %v4208_v32  ;;  %4878 = vmatmul.mubr.bf16.gmra.mxu0 %v4210_v34 }
 0x5b1   : > { %v3729_v31 = vadd.f32 %v3728_v54, %v9054_v50  ;;  %v3922_v18 = vadd.f32 %v3921_v11, %v9058_v2  ;;  %v4060_v56 = vmax.f32 %v3727_v40, 0.0  ;;  %v4062_v25 = vmax.f32 %v3920_v19, 0.0 }
 0x5b2   : > { %v3732_v59 = vpop.f32.mrf.mxu1  ;;  %v3925_v42 = vpop.f32.mrf.mxu0 }
 0x5b3   : > { %v4061_v47 = vmax.f32 %v3729_v31, 0.0  ;;  %v4063_v55 = vmax.f32 %v3922_v18, 0.0  ;;  %v4212_v1 = vpack.c.bf16 %v4060_v56, %v4056_v44  ;;  %v4214_v4 = vpack.c.bf16 %v4062_v25, %v4058_v7 }
 0x5b4   : > { %v3734_v60 = vpop.f32.mrf.mxu1  ;;  %v3927_v35 = vpop.f32.mrf.mxu0  ;;  %v3733_v53 = vadd.f32 %v3732_v59, %v9061_v5  ;;  %v3926_v15 = vadd.f32 %v3925_v42, %v9065_v51 }
 0x5b5   : > { %v4213_v63 = vpack.c.bf16 %v4061_v47, %v4057_v33  ;;  %v4215_v57 = vpack.c.bf16 %v4063_v55, %v4059_v46  ;;  %v3735_v13 = vadd.f32 %v3734_v60, %v9054_v50  ;;  %v3928_v62 = vadd.f32 %v3927_v35, %v9058_v2 }
 0x5b6   : > { %v3736_v8 = vpop.f32.mrf.mxu1  ;;  %v3929_v27 = vpop.f32.mrf.mxu0  ;;  %v4064_v22 = vmax.f32 %v3733_v53, 0.0  ;;  %v4066_v23 = vmax.f32 %v3926_v15, 0.0 }
 0x5b7   : > { %v3737_v58 = vadd.f32 %v3736_v8, %v9061_v5  ;;  %v3930_v14 = vadd.f32 %v3929_v27, %v9065_v51  ;;  %4694 = vmatprep.mubr.bf16.mxu1 %v4213_v63  ;;  %4887 = vmatprep.mubr.bf16.mxu0 %v4215_v57  ;;  %v4065_v10 = vmax.f32 %v3735_v13, 0.0  ;;  %v4067_v52 = vmax.f32 %v3928_v62, 0.0 }
 0x5b8   : > { %v3738_v9 = vpop.f32.mrf.mxu1  ;;  %v3931_v12 = vpop.f32.mrf.mxu0  ;;  %4695 = vmatmul.mubr.bf16.gmra.mxu1 %v4212_v1  ;;  %4888 = vmatmul.mubr.bf16.gmra.mxu0 %v4214_v4 }
 0x5b9   : > { %v3739_v36 = vadd.f32 %v3738_v9, %v9054_v50  ;;  %v3932_v21 = vadd.f32 %v3931_v12, %v9058_v2  ;;  %v4068_v3 = vmax.f32 %v3737_v58, 0.0  ;;  %v4070_v17 = vmax.f32 %v3930_v14, 0.0 }
 0x5ba   : > { %v3742_v61 = vpop.f32.mrf.mxu1  ;;  %v3935_v24 = vpop.f32.mrf.mxu0 }
 0x5bb   : > { %v4069_v20 = vmax.f32 %v3739_v36, 0.0  ;;  %v4071_v41 = vmax.f32 %v3932_v21, 0.0  ;;  %v4216_v30 = vpack.c.bf16 %v4068_v3, %v4064_v22  ;;  %v4218_v32 = vpack.c.bf16 %v4070_v17, %v4066_v23 }
 0x5bc   : > { %v3744_v26 = vpop.f32.mrf.mxu1  ;;  %v3937_v28 = vpop.f32.mrf.mxu0  ;;  %v3743_v19 = vadd.f32 %v3742_v61, %v9061_v5  ;;  %v3936_v16 = vadd.f32 %v3935_v24, %v9065_v51 }
 0x5bd   : > { %v4217_v29 = vpack.c.bf16 %v4069_v20, %v4065_v10  ;;  %v4219_v6 = vpack.c.bf16 %v4071_v41, %v4067_v52  ;;  %v3745_v34 = vadd.f32 %v3744_v26, %v9054_v50  ;;  %v3938_v37 = vadd.f32 %v3937_v28, %v9058_v2 }
 0x5be   : > { %v3746_v38 = vpop.f32.mrf.mxu1  ;;  %v3939_v39 = vpop.f32.mrf.mxu0  ;;  %v4072_v55 = vmax.f32 %v3743_v19, 0.0  ;;  %v4074_v44 = vmax.f32 %v3936_v16, 0.0 }
 0x5bf   : > { %v3747_v45 = vadd.f32 %v3746_v38, %v9061_v5  ;;  %v3940_v40 = vadd.f32 %v3939_v39, %v9065_v51  ;;  %4704 = vmatprep.mubr.bf16.mxu1 %v4217_v29  ;;  %4897 = vmatprep.mubr.bf16.mxu0 %v4219_v6  ;;  %v4073_v42 = vmax.f32 %v3745_v34, 0.0  ;;  %v4075_v33 = vmax.f32 %v3938_v37, 0.0 }
 0x5c0   : > { %v3748_v43 = vpop.f32.mrf.mxu1  ;;  %v3941_v54 = vpop.f32.mrf.mxu0  ;;  %4705 = vmatmul.mubr.bf16.gmra.mxu1 %v4216_v30  ;;  %4898 = vmatmul.mubr.bf16.gmra.mxu0 %v4218_v32 }
 0x5c1   : > { %v3749_v11 = vadd.f32 %v3748_v43, %v9054_v50  ;;  %v3942_v31 = vadd.f32 %v3941_v54, %v9058_v2  ;;  %v4076_v18 = vmax.f32 %v3747_v45, 0.0  ;;  %v4078_v56 = vmax.f32 %v3940_v40, 0.0 }
 0x5c2   : > { %v3752_v25 = vpop.f32.mrf.mxu1  ;;  %v3945_v59 = vpop.f32.mrf.mxu0 }
 0x5c3   : > { %v4077_v46 = vmax.f32 %v3749_v11, 0.0  ;;  %v4079_v47 = vmax.f32 %v3942_v31, 0.0  ;;  %v4220_v57 = vpack.c.bf16 %v4076_v18, %v4072_v55  ;;  %v4222_v0 = vpack.c.bf16 %v4078_v56, %v4074_v44 }
 0x5c4   : > { %v3754_v7 = vpop.f32.mrf.mxu1  ;;  %v3947_v60 = vpop.f32.mrf.mxu0  ;;  %v3753_v58 = vadd.f32 %v3752_v25, %v9061_v5  ;;  %v3946_v14 = vadd.f32 %v3945_v59, %v9065_v51 }
 0x5c5   : > { %v4221_v35 = vpack.c.bf16 %v4077_v46, %v4073_v42  ;;  %v4223_v63 = vpack.c.bf16 %v4079_v47, %v4075_v33  ;;  %v3755_v1 = vadd.f32 %v3754_v7, %v9054_v50  ;;  %v3948_v8 = vadd.f32 %v3947_v60, %v9058_v2 }
 0x5c6   : > { %v3756_v4 = vpop.f32.mrf.mxu1  ;;  %v3949_v13 = vpop.f32.mrf.mxu0  ;;  %v4080_v20 = vmax.f32 %v3753_v58, 0.0  ;;  %v4082_v41 = vmax.f32 %v3946_v14, 0.0 }
 0x5c7   : > { %v3757_v27 = vadd.f32 %v3756_v4, %v9061_v5  ;;  %v3950_v62 = vadd.f32 %v3949_v13, %v9065_v51  ;;  %4714 = vmatprep.mubr.bf16.mxu1 %v4221_v35  ;;  %4907 = vmatprep.mubr.bf16.mxu0 %v4223_v63  ;;  %v4081_v61 = vmax.f32 %v3755_v1, 0.0  ;;  %v4083_v24 = vmax.f32 %v3948_v8, 0.0 }
 0x5c8   : > { %v3758_v53 = vpop.f32.mrf.mxu1  ;;  %v3951_v15 = vpop.f32.mrf.mxu0  ;;  %4715 = vmatmul.mubr.bf16.gmra.mxu1 %v4220_v57  ;;  %4908 = vmatmul.mubr.bf16.gmra.mxu0 %v4222_v0 }
 0x5c9   : > { %v3759_v9 = vadd.f32 %v3758_v53, %v9054_v50  ;;  %v3952_v12 = vadd.f32 %v3951_v15, %v9058_v2  ;;  %v4084_v36 = vmax.f32 %v3757_v27, 0.0  ;;  %v4086_v21 = vmax.f32 %v3950_v62, 0.0 }
 0x5ca   : > { %v3762_v3 = vpop.f32.mrf.mxu1  ;;  %v3955_v17 = vpop.f32.mrf.mxu0 }
 0x5cb   : > { %v4085_v10 = vmax.f32 %v3759_v9, 0.0  ;;  %v4087_v52 = vmax.f32 %v3952_v12, 0.0  ;;  %v4224_v29 = vpack.c.bf16 %v4084_v36, %v4080_v20  ;;  %v4226_v6 = vpack.c.bf16 %v4086_v21, %v4082_v41 }
 0x5cc   : > { %v3764_v22 = vpop.f32.mrf.mxu1  ;;  %v3957_v23 = vpop.f32.mrf.mxu0  ;;  %v3763_v45 = vadd.f32 %v3762_v3, %v9061_v5  ;;  %v3956_v40 = vadd.f32 %v3955_v17, %v9065_v51 }
 0x5cd   : > { %v4227_v26 = vpack.c.bf16 %v4087_v52, %v4083_v24  ;;  %v4225_v28 = vpack.c.bf16 %v4085_v10, %v4081_v61  ;;  %v3765_v30 = vadd.f32 %v3764_v22, %v9054_v50  ;;  %v3958_v38 = vadd.f32 %v3957_v23, %v9058_v2 }
 0x5ce   : > { %v3766_v32 = vpop.f32.mrf.mxu1  ;;  %v3959_v34 = vpop.f32.mrf.mxu0  ;;  %v4088_v46 = vmax.f32 %v3763_v45, 0.0  ;;  %v4090_v47 = vmax.f32 %v3956_v40, 0.0 }
 0x5cf   : > { %v3767_v39 = vadd.f32 %v3766_v32, %v9061_v5  ;;  %v3960_v37 = vadd.f32 %v3959_v34, %v9065_v51  ;;  %4724 = vmatprep.mubr.bf16.mxu1 %v4225_v28  ;;  %4917 = vmatprep.mubr.bf16.mxu0 %v4227_v26  ;;  %v4089_v25 = vmax.f32 %v3765_v30, 0.0  ;;  %v4091_v59 = vmax.f32 %v3958_v38, 0.0 }
 0x5d0   : > { %v3768_v19 = vpop.f32.mrf.mxu1  ;;  %v3961_v16 = vpop.f32.mrf.mxu0  ;;  %4725 = vmatmul.mubr.bf16.gmra.mxu1 %v4224_v29  ;;  %4918 = vmatmul.mubr.bf16.gmra.mxu0 %v4226_v6 }
 0x5d1   : > { %v3769_v43 = vadd.f32 %v3768_v19, %v9054_v50  ;;  %v3962_v54 = vadd.f32 %v3961_v16, %v9058_v2  ;;  %v4092_v11 = vmax.f32 %v3767_v39, 0.0  ;;  %v4094_v31 = vmax.f32 %v3960_v37, 0.0 }
 0x5d2   : > { %v3772_v18 = vpop.f32.mrf.mxu1  ;;  %v3965_v56 = vpop.f32.mrf.mxu0 }
 0x5d3   : > { %v4093_v42 = vmax.f32 %v3769_v43, 0.0  ;;  %v4095_v33 = vmax.f32 %v3962_v54, 0.0  ;;  %v4228_v35 = vpack.c.bf16 %v4092_v11, %v4088_v46  ;;  %v4230_v63 = vpack.c.bf16 %v4094_v31, %v4090_v47 }
 0x5d4   : > { %v3774_v55 = vpop.f32.mrf.mxu1  ;;  %v3967_v44 = vpop.f32.mrf.mxu0  ;;  %v3773_v27 = vadd.f32 %v3772_v18, %v9061_v5  ;;  %v3966_v62 = vadd.f32 %v3965_v56, %v9065_v51 }
 0x5d5   : > { %v4231_v7 = vpack.c.bf16 %v4095_v33, %v4091_v59  ;;  %v4229_v60 = vpack.c.bf16 %v4093_v42, %v4089_v25  ;;  %v3775_v57 = vadd.f32 %v3774_v55, %v9054_v50  ;;  %v3968_v4 = vadd.f32 %v3967_v44, %v9058_v2 }
 0x5d6   : > { %v3776_v0 = vpop.f32.mrf.mxu1  ;;  %v3969_v1 = vpop.f32.mrf.mxu0  ;;  %v4096_v10 = vmax.f32 %v3773_v27, 0.0  ;;  %v4098_v52 = vmax.f32 %v3966_v62, 0.0 }
 0x5d7   : > { %v3777_v13 = vadd.f32 %v3776_v0, %v9061_v5  ;;  %v3970_v8 = vadd.f32 %v3969_v1, %v9065_v51  ;;  %4734 = vmatprep.mubr.bf16.mxu1 %v4229_v60  ;;  %4927 = vmatprep.mubr.bf16.mxu0 %v4231_v7  ;;  %v4097_v3 = vmax.f32 %v3775_v57, 0.0  ;;  %v4099_v17 = vmax.f32 %v3968_v4, 0.0 }
 0x5d8   : > { %v3778_v58 = vpop.f32.mrf.mxu1  ;;  %v3971_v14 = vpop.f32.mrf.mxu0  ;;  %4735 = vmatmul.mubr.bf16.gmra.mxu1 %v4228_v35  ;;  %4928 = vmatmul.mubr.bf16.gmra.mxu0 %v4230_v63 }
 0x5d9   : > { %v3779_v53 = vadd.f32 %v3778_v58, %v9054_v50  ;;  %v3972_v15 = vadd.f32 %v3971_v14, %v9058_v2  ;;  %v4100_v9 = vmax.f32 %v3777_v13, 0.0  ;;  %v4102_v12 = vmax.f32 %v3970_v8, 0.0  ;;  %v7494_v58 = vld [vmem:[%s9619_s6 + $0x40] sm:$0xff]   ;;  %v7495_v14 = vld [vmem:[%s9619_s6 + $0x38] sm:$0xff]  }
 0x5da   : > { %v3782_v36 = vpop.f32.mrf.mxu1  ;;  %v3975_v21 = vpop.f32.mrf.mxu0  ;;  %7039 = vmatprep.subr.bf16.mxu0 %v7494_v58 }
 0x5db   : > { %v4101_v61 = vmax.f32 %v3779_v53, 0.0  ;;  %v4103_v24 = vmax.f32 %v3972_v15, 0.0  ;;  %v4232_v26 = vpack.c.bf16 %v4100_v9, %v4096_v10  ;;  %v4234_v28 = vpack.c.bf16 %v4102_v12, %v4098_v52  ;;  %7040 = vmatpush3.bf16.msra.mxu0 %v7494_v58  ;;  %v7496_v52 = vld [vmem:[%s9619_s6 + $0x30] sm:$0xff]  }
 0x5dc   : > { %v3784_v20 = vpop.f32.mrf.mxu1  ;;  %v3977_v41 = vpop.f32.mrf.mxu0  ;;  %v3783_v39 = vadd.f32 %v3782_v36, %v9061_v5  ;;  %v3976_v37 = vadd.f32 %v3975_v21, %v9065_v51  ;;  %7041 = vmatprep.subr.bf16.mxu0 %v7495_v14 }
 0x5dd   : > { %v4235_v22 = vpack.c.bf16 %v4103_v24, %v4099_v17  ;;  %v4233_v23 = vpack.c.bf16 %v4101_v61, %v4097_v3  ;;  %v3785_v29 = vadd.f32 %v3784_v20, %v9054_v50  ;;  %v3978_v32 = vadd.f32 %v3977_v41, %v9058_v2 }
 0x5de   : > { %v3786_v6 = vpop.f32.mrf.mxu1  ;;  %v3979_v30 = vpop.f32.mrf.mxu0  ;;  %v4104_v25 = vmax.f32 %v3783_v39, 0.0  ;;  %v4106_v59 = vmax.f32 %v3976_v37, 0.0 }
 0x5df   : > { %v3787_v34 = vadd.f32 %v3786_v6, %v9061_v5  ;;  %v3980_v38 = vadd.f32 %v3979_v30, %v9065_v51  ;;  %4744 = vmatprep.mubr.bf16.mxu1 %v4233_v23  ;;  %4937 = vmatprep.mubr.bf16.mxu0 %v4235_v22  ;;  %v4105_v11 = vmax.f32 %v3785_v29, 0.0  ;;  %v4107_v31 = vmax.f32 %v3978_v32, 0.0 }
 0x5e0   : > { %v3788_v45 = vpop.f32.mrf.mxu1  ;;  %v3981_v40 = vpop.f32.mrf.mxu0  ;;  %4745 = vmatmul.mubr.bf16.gmra.mxu1 %v4232_v26  ;;  %4938 = vmatmul.mubr.bf16.gmra.mxu0 %v4234_v28 }
 0x5e1   : > { %v3789_v19 = vadd.f32 %v3788_v45, %v9054_v50  ;;  %v3982_v16 = vadd.f32 %v3981_v40, %v9058_v2  ;;  %v4108_v43 = vmax.f32 %v3787_v34, 0.0  ;;  %v4110_v54 = vmax.f32 %v3980_v38, 0.0  ;;  %v4240_v50 = vld [vmem:[%s9621_s8 + $0xd] sm:$0x3]  ;;  %7042 = vmatpush3.bf16.msra.mxu0 %v7495_v14 }
 0x5e2   : > { %v9244_v2 = vrot.slane %v4240_v50, %v8075_v48  ;;  %v9247_v46 = vrot.slane %v4240_v50, %v8078_v49  ;;  %7043 = vmatprep.subr.bf16.mxu0 %v7496_v52  ;;  %v7497_v38 = vld [vmem:[%s9619_s6 + $0x28] sm:$0xff]  }
 0x5e3   : > { %v4109_v18 = vmax.f32 %v3789_v19, 0.0  ;;  %v4111_v56 = vmax.f32 %v3982_v16, 0.0  ;;  %v4236_v33 = vpack.c.bf16 %v4108_v43, %v4104_v25  ;;  %v4238_v51 = vpack.c.bf16 %v4110_v54, %v4106_v59 }
 0x5e5   : > { %v4239_v42 = vpack.c.bf16 %v4111_v56, %v4107_v31  ;;  %v4237_v5 = vpack.c.bf16 %v4109_v18, %v4105_v11  ;;  %7044 = vmatpush3.bf16.msra.mxu0 %v7496_v52 }
 0x5e6   : > { %7045 = vmatprep.subr.bf16.mxu0 %v7497_v38 }
 0x5e7   : > { %4754 = vmatprep.mubr.bf16.mxu1 %v4237_v5  ;;  %4947 = vmatprep.mubr.bf16.mxu0 %v4239_v42 }
 0x5e8   : > { %4755 = vmatmul.mubr.bf16.gmra.mxu1 %v4236_v33  ;;  %4948 = vmatmul.mubr.bf16.gmra.mxu0 %v4238_v51 }
 0x5e9   : > { %7046 = vmatpush3.bf16.msra.mxu0 %v7497_v38 }
 0x630   : > { %v4606_v47 = vpop.f32.mrf.mxu1  ;;  %v4799_v55 = vpop.f32.mrf.mxu0 }
 0x631   : > { %v4607_v35 = vadd.f32 %v4606_v47, %v9247_v46 }
 0x632   : > { %v4608_v44 = vpop.f32.mrf.mxu1  ;;  %v4801_v7 = vpop.f32.mrf.mxu0 }
 0x633   : > { %v4609_v60 = vadd.f32 %v4608_v44, %v9244_v2  ;;  %v4800_v49 = vadd.f32 %v4799_v55, %v4607_v35 }
 0x634   : > { %v4610_v63 = vpop.f32.mrf.mxu1  ;;  %v4803_v57 = vpop.f32.mrf.mxu0 }
 0x635   : > { %v4611_v0 = vadd.f32 %v4610_v63, %v9247_v46  ;;  %v4802_v13 = vadd.f32 %v4801_v7, %v4609_v60  ;;  %v4958_v17 = vmax.f32 %v4800_v49, 0.0 }
 0x636   : > { %v4612_v1 = vpop.f32.mrf.mxu1  ;;  %v4805_v4 = vpop.f32.mrf.mxu0 }
 0x637   : > { %v4804_v48 = vadd.f32 %v4803_v57, %v4611_v0  ;;  %v4613_v8 = vadd.f32 %v4612_v1, %v9244_v2  ;;  %v4959_v36 = vmax.f32 %v4802_v13, 0.0 }
 0x638   : > { %v4616_v27 = vpop.f32.mrf.mxu1  ;;  %v4809_v62 = vpop.f32.mrf.mxu0 }
 0x639   : > { %v4806_v53 = vadd.f32 %v4805_v4, %v4613_v8  ;;  %v4960_v15 = vmax.f32 %v4804_v48, 0.0  ;;  %v4617_v61 = vadd.f32 %v4616_v27, %v9247_v46 }
 0x63a   : > { %v4618_v9 = vpop.f32.mrf.mxu1  ;;  %v4811_v12 = vpop.f32.mrf.mxu0 }
 0x63b   : > { %v4961_v21 = vmax.f32 %v4806_v53, 0.0  ;;  %v4619_v3 = vadd.f32 %v4618_v9, %v9244_v2  ;;  %v5054_v22 = vpack.c.bf16 %v4960_v15, %v4958_v17  ;;  %v4810_v30 = vadd.f32 %v4809_v62, %v4617_v61 }
 0x63c   : > { %v4620_v24 = vpop.f32.mrf.mxu1  ;;  %v4813_v10 = vpop.f32.mrf.mxu0 }
 0x63d   : > { %v5055_v20 = vpack.c.bf16 %v4961_v21, %v4959_v36  ;;  %v4621_v41 = vadd.f32 %v4620_v24, %v9247_v46  ;;  %v4812_v28 = vadd.f32 %v4811_v12, %v4619_v3  ;;  %v4962_v54 = vmax.f32 %v4810_v30, 0.0 }
 0x63e   : > { %v4622_v23 = vpop.f32.mrf.mxu1  ;;  %v4815_v26 = vpop.f32.mrf.mxu0 }
 0x63f   : > { %v4814_v29 = vadd.f32 %v4813_v10, %v4621_v41  ;;  %v4623_v6 = vadd.f32 %v4622_v23, %v9244_v2  ;;  %5221 = vmatprep.mubr.bf16.mxu1 %v5055_v20  ;;  %v4963_v19 = vmax.f32 %v4812_v28, 0.0 }
 0x640   : > { %v4626_v32 = vpop.f32.mrf.mxu1  ;;  %v4819_v34 = vpop.f32.mrf.mxu0  ;;  %5222 = vmatmul.mubr.bf16.vlgmr.msra.gmra.mxu1 %v5054_v22 }
 0x641   : > { %v4816_v39 = vadd.f32 %v4815_v26, %v4623_v6  ;;  %v4964_v37 = vmax.f32 %v4814_v29, 0.0  ;;  %v4627_v11 = vadd.f32 %v4626_v32, %v9247_v46 }
 0x642   : > { %v4628_v45 = vpop.f32.mrf.mxu1  ;;  %v4821_v40 = vpop.f32.mrf.mxu0 }
 0x643   : > { %v4965_v16 = vmax.f32 %v4816_v39, 0.0  ;;  %v4629_v43 = vadd.f32 %v4628_v45, %v9244_v2  ;;  %v5056_v59 = vpack.c.bf16 %v4964_v37, %v4962_v54  ;;  %v4820_v47 = vadd.f32 %v4819_v34, %v4627_v11 }
 0x644   : > { %v4630_v31 = vpop.f32.mrf.mxu1  ;;  %v4823_v18 = vpop.f32.mrf.mxu0 }
 0x645   : > { %v5057_v56 = vpack.c.bf16 %v4965_v16, %v4963_v19  ;;  %v4631_v25 = vadd.f32 %v4630_v31, %v9247_v46  ;;  %v4822_v33 = vadd.f32 %v4821_v40, %v4629_v43  ;;  %v4966_v4 = vmax.f32 %v4820_v47, 0.0 }
 0x646   : > { %v4632_v42 = vpop.f32.mrf.mxu1  ;;  %v4825_v5 = vpop.f32.mrf.mxu0 }
 0x647   : > { %v4824_v51 = vadd.f32 %v4823_v18, %v4631_v25  ;;  %v4633_v50 = vadd.f32 %v4632_v42, %v9244_v2  ;;  %5229 = vmatprep.mubr.bf16.mxu1 %v5057_v56  ;;  %v4967_v57 = vmax.f32 %v4822_v33, 0.0 }
 0x648   : > { %v4636_v55 = vpop.f32.mrf.mxu1  ;;  %v4829_v44 = vpop.f32.mrf.mxu0  ;;  %5230 = vmatmul.mubr.bf16.gmra.mxu1 %v5056_v59 }
 0x649   : > { %v4826_v7 = vadd.f32 %v4825_v5, %v4633_v50  ;;  %v4968_v60 = vmax.f32 %v4824_v51, 0.0  ;;  %v4637_v13 = vadd.f32 %v4636_v55, %v9247_v46 }
 0x64a   : > { %v4638_v35 = vpop.f32.mrf.mxu1  ;;  %v4831_v63 = vpop.f32.mrf.mxu0 }
 0x64b   : > { %v4969_v0 = vmax.f32 %v4826_v7, 0.0  ;;  %v4639_v1 = vadd.f32 %v4638_v35, %v9244_v2  ;;  %v5058_v62 = vpack.c.bf16 %v4968_v60, %v4966_v4  ;;  %v4830_v12 = vadd.f32 %v4829_v44, %v4637_v13 }
 0x64c   : > { %v4640_v48 = vpop.f32.mrf.mxu1  ;;  %v4833_v8 = vpop.f32.mrf.mxu0 }
 0x64d   : > { %v5059_v49 = vpack.c.bf16 %v4969_v0, %v4967_v57  ;;  %v4641_v27 = vadd.f32 %v4640_v48, %v9247_v46  ;;  %v4832_v53 = vadd.f32 %v4831_v63, %v4639_v1  ;;  %v4970_v41 = vmax.f32 %v4830_v12, 0.0 }
 0x64e   : > { %v4642_v58 = vpop.f32.mrf.mxu1  ;;  %v4835_v14 = vpop.f32.mrf.mxu0 }
 0x64f   : > { %v4834_v15 = vadd.f32 %v4833_v8, %v4641_v27  ;;  %v4643_v9 = vadd.f32 %v4642_v58, %v9244_v2  ;;  %5237 = vmatprep.mubr.bf16.mxu1 %v5059_v49  ;;  %v4971_v10 = vmax.f32 %v4832_v53, 0.0 }
 0x650   : > { %v4646_v36 = vpop.f32.mrf.mxu1  ;;  %v4839_v21 = vpop.f32.mrf.mxu0  ;;  %5238 = vmatmul.mubr.bf16.gmra.mxu1 %v5058_v62 }
 0x651   : > { %v4836_v3 = vadd.f32 %v4835_v14, %v4643_v9  ;;  %v4972_v17 = vmax.f32 %v4834_v15, 0.0  ;;  %v4647_v22 = vadd.f32 %v4646_v36, %v9247_v46 }
 0x652   : > { %v4648_v61 = vpop.f32.mrf.mxu1  ;;  %v4841_v24 = vpop.f32.mrf.mxu0 }
 0x653   : > { %v4973_v52 = vmax.f32 %v4836_v3, 0.0  ;;  %v4649_v20 = vadd.f32 %v4648_v61, %v9244_v2  ;;  %v5060_v6 = vpack.c.bf16 %v4972_v17, %v4970_v41  ;;  %v4840_v37 = vadd.f32 %v4839_v21, %v4647_v22 }
 0x654   : > { %v4650_v23 = vpop.f32.mrf.mxu1  ;;  %v4843_v26 = vpop.f32.mrf.mxu0 }
 0x655   : > { %v5061_v28 = vpack.c.bf16 %v4973_v52, %v4971_v10  ;;  %v4651_v29 = vadd.f32 %v4650_v23, %v9247_v46  ;;  %v4842_v34 = vadd.f32 %v4841_v24, %v4649_v20  ;;  %v4974_v56 = vmax.f32 %v4840_v37, 0.0 }
 0x656   : > { %v4652_v30 = vpop.f32.mrf.mxu1  ;;  %v4845_v32 = vpop.f32.mrf.mxu0 }
 0x657   : > { %v4844_v38 = vadd.f32 %v4843_v26, %v4651_v29  ;;  %v4653_v39 = vadd.f32 %v4652_v30, %v9244_v2  ;;  %5245 = vmatprep.mubr.bf16.mxu1 %v5061_v28  ;;  %v4975_v11 = vmax.f32 %v4842_v34, 0.0 }
 0x658   : > { %v4656_v45 = vpop.f32.mrf.mxu1  ;;  %v4849_v40 = vpop.f32.mrf.mxu0  ;;  %5246 = vmatmul.mubr.bf16.gmra.mxu1 %v5060_v6 }
 0x659   : > { %v4846_v19 = vadd.f32 %v4845_v32, %v4653_v39  ;;  %v4976_v16 = vmax.f32 %v4844_v38, 0.0  ;;  %v4657_v25 = vadd.f32 %v4656_v45, %v9247_v46 }
 0x65a   : > { %v4658_v43 = vpop.f32.mrf.mxu1  ;;  %v4851_v54 = vpop.f32.mrf.mxu0 }
 0x65b   : > { %v4977_v31 = vmax.f32 %v4846_v19, 0.0  ;;  %v4659_v18 = vadd.f32 %v4658_v43, %v9244_v2  ;;  %v5062_v51 = vpack.c.bf16 %v4976_v16, %v4974_v56  ;;  %v4850_v60 = vadd.f32 %v4849_v40, %v4657_v25 }
 0x65c   : > { %v4660_v59 = vpop.f32.mrf.mxu1  ;;  %v4853_v42 = vpop.f32.mrf.mxu0 }
 0x65d   : > { %v5063_v5 = vpack.c.bf16 %v4977_v31, %v4975_v11  ;;  %v4661_v33 = vadd.f32 %v4660_v59, %v9247_v46  ;;  %v4852_v55 = vadd.f32 %v4851_v54, %v4659_v18  ;;  %v4978_v49 = vmax.f32 %v4850_v60, 0.0 }
 0x65e   : > { %v4662_v50 = vpop.f32.mrf.mxu1  ;;  %v4855_v47 = vpop.f32.mrf.mxu0 }
 0x65f   : > { %v4854_v44 = vadd.f32 %v4853_v42, %v4661_v33  ;;  %v4663_v7 = vadd.f32 %v4662_v50, %v9244_v2  ;;  %5253 = vmatprep.mubr.bf16.mxu1 %v5063_v5  ;;  %v4979_v13 = vmax.f32 %v4852_v55, 0.0 }
 0x660   : > { %v4666_v35 = vpop.f32.mrf.mxu1  ;;  %v4859_v63 = vpop.f32.mrf.mxu0  ;;  %5254 = vmatmul.mubr.bf16.gmra.mxu1 %v5062_v51 }
 0x661   : > { %v4856_v57 = vadd.f32 %v4855_v47, %v4663_v7  ;;  %v4980_v0 = vmax.f32 %v4854_v44, 0.0  ;;  %v4667_v27 = vadd.f32 %v4666_v35, %v9247_v46 }
 0x662   : > { %v4668_v1 = vpop.f32.mrf.mxu1  ;;  %v4861_v4 = vpop.f32.mrf.mxu0 }
 0x663   : > { %v4981_v48 = vmax.f32 %v4856_v57, 0.0  ;;  %v4669_v8 = vadd.f32 %v4668_v1, %v9244_v2  ;;  %v5064_v15 = vpack.c.bf16 %v4980_v0, %v4978_v49  ;;  %v4860_v17 = vadd.f32 %v4859_v63, %v4667_v27 }
 0x664   : > { %v4670_v62 = vpop.f32.mrf.mxu1  ;;  %v4863_v58 = vpop.f32.mrf.mxu0 }
 0x665   : > { %v5065_v14 = vpack.c.bf16 %v4981_v48, %v4979_v13  ;;  %v4671_v53 = vadd.f32 %v4670_v62, %v9247_v46  ;;  %v4862_v36 = vadd.f32 %v4861_v4, %v4669_v8  ;;  %v4982_v28 = vmax.f32 %v4860_v17, 0.0 }
 0x666   : > { %v4672_v9 = vpop.f32.mrf.mxu1  ;;  %v4865_v12 = vpop.f32.mrf.mxu0 }
 0x667   : > { %v4864_v21 = vadd.f32 %v4863_v58, %v4671_v53  ;;  %v4673_v3 = vadd.f32 %v4672_v9, %v9244_v2  ;;  %5261 = vmatprep.mubr.bf16.mxu1 %v5065_v14  ;;  %v4983_v22 = vmax.f32 %v4862_v36, 0.0 }
 0x668   : > { %v4676_v61 = vpop.f32.mrf.mxu1  ;;  %v4869_v24 = vpop.f32.mrf.mxu0  ;;  %5262 = vmatmul.mubr.bf16.gmra.mxu1 %v5064_v15 }
 0x669   : > { %v4866_v10 = vadd.f32 %v4865_v12, %v4673_v3  ;;  %v4984_v52 = vmax.f32 %v4864_v21, 0.0  ;;  %v4677_v29 = vadd.f32 %v4676_v61, %v9247_v46 }
 0x66a   : > { %v4678_v20 = vpop.f32.mrf.mxu1  ;;  %v4871_v41 = vpop.f32.mrf.mxu0 }
 0x66b   : > { %v4985_v23 = vmax.f32 %v4866_v10, 0.0  ;;  %v4679_v26 = vadd.f32 %v4678_v20, %v9244_v2  ;;  %v5066_v38 = vpack.c.bf16 %v4984_v52, %v4982_v28  ;;  %v4870_v16 = vadd.f32 %v4869_v24, %v4677_v29 }
 0x66c   : > { %v4680_v6 = vpop.f32.mrf.mxu1  ;;  %v4873_v30 = vpop.f32.mrf.mxu0 }
 0x66d   : > { %v5067_v32 = vpack.c.bf16 %v4985_v23, %v4983_v22  ;;  %v4681_v34 = vadd.f32 %v4680_v6, %v9247_v46  ;;  %v4872_v45 = vadd.f32 %v4871_v41, %v4679_v26  ;;  %v4986_v5 = vmax.f32 %v4870_v16, 0.0 }
 0x66e   : > { %v4682_v39 = vpop.f32.mrf.mxu1  ;;  %v4875_v37 = vpop.f32.mrf.mxu0 }
 0x66f   : > { %v4874_v40 = vadd.f32 %v4873_v30, %v4681_v34  ;;  %v4683_v19 = vadd.f32 %v4682_v39, %v9244_v2  ;;  %5269 = vmatprep.mubr.bf16.mxu1 %v5067_v32  ;;  %v4987_v25 = vmax.f32 %v4872_v45, 0.0 }
 0x670   : > { %v4686_v43 = vpop.f32.mrf.mxu1  ;;  %v4879_v54 = vpop.f32.mrf.mxu0  ;;  %5270 = vmatmul.mubr.bf16.gmra.mxu1 %v5066_v38 }
 0x671   : > { %v4876_v11 = vadd.f32 %v4875_v37, %v4683_v19  ;;  %v4988_v31 = vmax.f32 %v4874_v40, 0.0  ;;  %v4687_v33 = vadd.f32 %v4686_v43, %v9247_v46  ;;  %v7498_v43 = vld [vmem:[%s9619_s6 + $0x20] sm:$0xff]  }
 0x672   : > { %v4688_v18 = vpop.f32.mrf.mxu1  ;;  %v4881_v56 = vpop.f32.mrf.mxu0  ;;  %7047 = vmatprep.subr.bf16.mxu0 %v7498_v43 }
 0x673   : > { %v4989_v59 = vmax.f32 %v4876_v11, 0.0  ;;  %v4689_v42 = vadd.f32 %v4688_v18, %v9244_v2  ;;  %v5068_v44 = vpack.c.bf16 %v4988_v31, %v4986_v5  ;;  %v4880_v0 = vadd.f32 %v4879_v54, %v4687_v33  ;;  %7048 = vmatpush3.bf16.msra.mxu0 %v7498_v43 }
 0x674   : > { %v4690_v51 = vpop.f32.mrf.mxu1  ;;  %v4883_v50 = vpop.f32.mrf.mxu0 }
 0x675   : > { %v5069_v47 = vpack.c.bf16 %v4989_v59, %v4987_v25  ;;  %v4691_v55 = vadd.f32 %v4690_v51, %v9247_v46  ;;  %v4882_v35 = vadd.f32 %v4881_v56, %v4689_v42  ;;  %v4990_v14 = vmax.f32 %v4880_v0, 0.0  ;;  %v7499_v51 = vld [vmem:[%s9619_s6 + $0x18] sm:$0xff]  }
 0x676   : > { %v4692_v7 = vpop.f32.mrf.mxu1  ;;  %v4885_v60 = vpop.f32.mrf.mxu0  ;;  %7049 = vmatprep.subr.bf16.mxu0 %v7499_v51 }
 0x677   : > { %v4884_v63 = vadd.f32 %v4883_v50, %v4691_v55  ;;  %v4693_v57 = vadd.f32 %v4692_v7, %v9244_v2  ;;  %5277 = vmatprep.mubr.bf16.mxu1 %v5069_v47  ;;  %v4991_v27 = vmax.f32 %v4882_v35, 0.0  ;;  %7050 = vmatpush3.bf16.msra.mxu0 %v7499_v51 }
 0x678   : > { %v4696_v1 = vpop.f32.mrf.mxu1  ;;  %v4889_v4 = vpop.f32.mrf.mxu0  ;;  %5278 = vmatmul.mubr.bf16.gmra.mxu1 %v5068_v44 }
 0x679   : > { %v4886_v13 = vadd.f32 %v4885_v60, %v4693_v57  ;;  %v4992_v48 = vmax.f32 %v4884_v63, 0.0  ;;  %v4697_v53 = vadd.f32 %v4696_v1, %v9247_v46 }
 0x67a   : > { %v4698_v8 = vpop.f32.mrf.mxu1  ;;  %v4891_v49 = vpop.f32.mrf.mxu0 }
 0x67b   : > { %v4993_v62 = vmax.f32 %v4886_v13, 0.0  ;;  %v4699_v58 = vadd.f32 %v4698_v8, %v9244_v2  ;;  %v5070_v21 = vpack.c.bf16 %v4992_v48, %v4990_v14  ;;  %v4890_v52 = vadd.f32 %v4889_v4, %v4697_v53  ;;  %v7500_v13 = vld [vmem:[%s9619_s6 + $0x10] sm:$0xff]  }
 0x67c   : > { %v4700_v15 = vpop.f32.mrf.mxu1  ;;  %v4893_v9 = vpop.f32.mrf.mxu0  ;;  %7051 = vmatprep.subr.bf16.mxu0 %v7500_v13 }
 0x67d   : > { %v5071_v12 = vpack.c.bf16 %v4993_v62, %v4991_v27  ;;  %v4701_v36 = vadd.f32 %v4700_v15, %v9247_v46  ;;  %v4892_v61 = vadd.f32 %v4891_v49, %v4699_v58  ;;  %v4994_v32 = vmax.f32 %v4890_v52, 0.0  ;;  %7052 = vmatpush3.bf16.msra.mxu0 %v7500_v13 }
 0x67e   : > { %v4702_v3 = vpop.f32.mrf.mxu1  ;;  %v4895_v17 = vpop.f32.mrf.mxu0 }
 0x67f   : > { %v4894_v24 = vadd.f32 %v4893_v9, %v4701_v36  ;;  %v4703_v10 = vadd.f32 %v4702_v3, %v9244_v2  ;;  %5285 = vmatprep.mubr.bf16.mxu1 %v5071_v12  ;;  %v4995_v29 = vmax.f32 %v4892_v61, 0.0  ;;  %v7501_v12 = vld [vmem:[%s9619_s6 + $0x8] sm:$0xff]  }
 0x680   : > { %v4706_v20 = vpop.f32.mrf.mxu1  ;;  %v4899_v41 = vpop.f32.mrf.mxu0  ;;  %5286 = vmatmul.mubr.bf16.gmra.mxu1 %v5070_v21  ;;  %7053 = vmatprep.subr.bf16.mxu0 %v7501_v12 }
 0x681   : > { %v4896_v22 = vadd.f32 %v4895_v17, %v4703_v10  ;;  %v4996_v23 = vmax.f32 %v4894_v24, 0.0  ;;  %v4707_v34 = vadd.f32 %v4706_v20, %v9247_v46  ;;  %7054 = vmatpush3.bf16.msra.mxu0 %v7501_v12 }
 0x682   : > { %v4708_v26 = vpop.f32.mrf.mxu1  ;;  %v4901_v28 = vpop.f32.mrf.mxu0 }
 0x683   : > { %v4997_v6 = vmax.f32 %v4896_v22, 0.0  ;;  %v4709_v30 = vadd.f32 %v4708_v26, %v9244_v2  ;;  %v5072_v40 = vpack.c.bf16 %v4996_v23, %v4994_v32  ;;  %v4900_v18 = vadd.f32 %v4899_v41, %v4707_v34 }
 0x684   : > { %v4710_v38 = vpop.f32.mrf.mxu1  ;;  %v4903_v39 = vpop.f32.mrf.mxu0 }
 0x685   : > { %v5073_v37 = vpack.c.bf16 %v4997_v6, %v4995_v29  ;;  %v4711_v45 = vadd.f32 %v4710_v38, %v9247_v46  ;;  %v4902_v54 = vadd.f32 %v4901_v28, %v4709_v30  ;;  %v4998_v44 = vmax.f32 %v4900_v18, 0.0 }
 0x686   : > { %v4712_v19 = vpop.f32.mrf.mxu1  ;;  %v4905_v16 = vpop.f32.mrf.mxu0 }
 0x687   : > { %v4904_v11 = vadd.f32 %v4903_v39, %v4711_v45  ;;  %v4713_v31 = vadd.f32 %v4712_v19, %v9244_v2  ;;  %5293 = vmatprep.mubr.bf16.mxu1 %v5073_v37  ;;  %v4999_v50 = vmax.f32 %v4902_v54, 0.0 }
 0x688   : > { %v4716_v56 = vpop.f32.mrf.mxu1  ;;  %v4909_v25 = vpop.f32.mrf.mxu0  ;;  %5294 = vmatmul.mubr.bf16.gmra.mxu1 %v5072_v40 }
 0x689   : > { %v4906_v59 = vadd.f32 %v4905_v16, %v4713_v31  ;;  %v5000_v42 = vmax.f32 %v4904_v11, 0.0  ;;  %v4717_v7 = vadd.f32 %v4716_v56, %v9247_v46 }
 0x68a   : > { %v4718_v5 = vpop.f32.mrf.mxu1  ;;  %v4911_v33 = vpop.f32.mrf.mxu0 }
 0x68b   : > { %v5001_v47 = vmax.f32 %v4906_v59, 0.0  ;;  %v4719_v55 = vadd.f32 %v4718_v5, %v9244_v2  ;;  %v5074_v0 = vpack.c.bf16 %v5000_v42, %v4998_v44  ;;  %v4910_v27 = vadd.f32 %v4909_v25, %v4717_v7 }
 0x68c   : > { %v4720_v60 = vpop.f32.mrf.mxu1  ;;  %v4913_v35 = vpop.f32.mrf.mxu0 }
 0x68d   : > { %v5075_v63 = vpack.c.bf16 %v5001_v47, %v4999_v50  ;;  %v4721_v57 = vadd.f32 %v4720_v60, %v9247_v46  ;;  %v4912_v48 = vadd.f32 %v4911_v33, %v4719_v55  ;;  %v5002_v17 = vmax.f32 %v4910_v27, 0.0 }
 0x68e   : > { %v4722_v1 = vpop.f32.mrf.mxu1  ;;  %v4915_v4 = vpop.f32.mrf.mxu0 }
 0x68f   : > { %v4914_v8 = vadd.f32 %v4913_v35, %v4721_v57  ;;  %v4723_v49 = vadd.f32 %v4722_v1, %v9244_v2  ;;  %5301 = vmatprep.mubr.bf16.mxu1 %v5075_v63  ;;  %v5003_v36 = vmax.f32 %v4912_v48, 0.0 }
 0x690   : > { %v4726_v62 = vpop.f32.mrf.mxu1  ;;  %v4919_v58 = vpop.f32.mrf.mxu0  ;;  %5302 = vmatmul.mubr.bf16.gmra.mxu1 %v5074_v0 }
 0x691   : > { %v4916_v14 = vadd.f32 %v4915_v4, %v4723_v49  ;;  %v5004_v53 = vmax.f32 %v4914_v8, 0.0  ;;  %v4727_v61 = vadd.f32 %v4726_v62, %v9247_v46 }
 0x692   : > { %v4728_v15 = vpop.f32.mrf.mxu1  ;;  %v4921_v9 = vpop.f32.mrf.mxu0 }
 0x693   : > { %v5005_v21 = vmax.f32 %v4916_v14, 0.0  ;;  %v4729_v3 = vadd.f32 %v4728_v15, %v9244_v2  ;;  %v5076_v41 = vpack.c.bf16 %v5004_v53, %v5002_v17  ;;  %v4920_v6 = vadd.f32 %v4919_v58, %v4727_v61 }
 0x694   : > { %v4730_v24 = vpop.f32.mrf.mxu1  ;;  %v4923_v10 = vpop.f32.mrf.mxu0 }
 0x695   : > { %v5077_v52 = vpack.c.bf16 %v5005_v21, %v5003_v36  ;;  %v4731_v20 = vadd.f32 %v4730_v24, %v9247_v46  ;;  %v4922_v26 = vadd.f32 %v4921_v9, %v4729_v3  ;;  %v5006_v16 = vmax.f32 %v4920_v6, 0.0 }
 0x696   : > { %v4732_v22 = vpop.f32.mrf.mxu1  ;;  %v4925_v23 = vpop.f32.mrf.mxu0 }
 0x697   : > { %v4924_v28 = vadd.f32 %v4923_v10, %v4731_v20  ;;  %v4733_v29 = vadd.f32 %v4732_v22, %v9244_v2  ;;  %5309 = vmatprep.mubr.bf16.mxu1 %v5077_v52  ;;  %v5007_v45 = vmax.f32 %v4922_v26, 0.0 }
 0x698   : > { %v4736_v30 = vpop.f32.mrf.mxu1  ;;  %v4929_v32 = vpop.f32.mrf.mxu0  ;;  %5310 = vmatmul.mubr.bf16.gmra.mxu1 %v5076_v41 }
 0x699   : > { %v4926_v34 = vadd.f32 %v4925_v23, %v4733_v29  ;;  %v5008_v38 = vmax.f32 %v4924_v28, 0.0  ;;  %v4737_v43 = vadd.f32 %v4736_v30, %v9247_v46 }
 0x69a   : > { %v4738_v39 = vpop.f32.mrf.mxu1  ;;  %v4931_v37 = vpop.f32.mrf.mxu0 }
 0x69b   : > { %v5009_v40 = vmax.f32 %v4926_v34, 0.0  ;;  %v4739_v19 = vadd.f32 %v4738_v39, %v9244_v2  ;;  %v5078_v56 = vpack.c.bf16 %v5008_v38, %v5006_v16  ;;  %v4930_v51 = vadd.f32 %v4929_v32, %v4737_v43 }
 0x69c   : > { %v4740_v54 = vpop.f32.mrf.mxu1  ;;  %v4933_v11 = vpop.f32.mrf.mxu0 }
 0x69d   : > { %v5079_v31 = vpack.c.bf16 %v5009_v40, %v5007_v45  ;;  %v4741_v18 = vadd.f32 %v4740_v54, %v9247_v46  ;;  %v4932_v42 = vadd.f32 %v4931_v37, %v4739_v19  ;;  %v5010_v0 = vmax.f32 %v4930_v51, 0.0 }
 0x69e   : > { %v4742_v25 = vpop.f32.mrf.mxu1  ;;  %v4935_v59 = vpop.f32.mrf.mxu0 }
 0x69f   : > { %v4934_v5 = vadd.f32 %v4933_v11, %v4741_v18  ;;  %v4743_v33 = vadd.f32 %v4742_v25, %v9244_v2  ;;  %5317 = vmatprep.mubr.bf16.mxu1 %v5079_v31  ;;  %v5011_v35 = vmax.f32 %v4932_v42, 0.0  ;;  %v7503_v42 = vld [vmem:[%s9620_s7 + $0x110] sm:$0xff]  }
 0x6a0   : > { %v4746_v50 = vpop.f32.mrf.mxu1  ;;  %v4939_v47 = vpop.f32.mrf.mxu0  ;;  %5318 = vmatmul.mubr.bf16.gmra.mxu1 %v5078_v56 }
 0x6a1   : > { %v4936_v55 = vadd.f32 %v4935_v59, %v4743_v33  ;;  %v5012_v44 = vmax.f32 %v4934_v5, 0.0  ;;  %v4747_v1 = vadd.f32 %v4746_v50, %v9247_v46  ;;  %v7502_v59 = vld [vmem:[%s9620_s7 + $0x118] sm:$0xff]  }
 0x6a2   : > { %v4748_v7 = vpop.f32.mrf.mxu1  ;;  %v4941_v60 = vpop.f32.mrf.mxu0  ;;  %7087 = vmatprep.subr.bf16.mxu1 %v7502_v59 }
 0x6a3   : > { %v5013_v63 = vmax.f32 %v4936_v55, 0.0  ;;  %v4749_v57 = vadd.f32 %v4748_v7, %v9244_v2  ;;  %v5080_v49 = vpack.c.bf16 %v5012_v44, %v5010_v0  ;;  %v4940_v15 = vadd.f32 %v4939_v47, %v4747_v1  ;;  %7088 = vmatpush3.bf16.msra.mxu1 %v7502_v59 }
 0x6a4   : > { %v4750_v4 = vpop.f32.mrf.mxu1  ;;  %v4943_v13 = vpop.f32.mrf.mxu0  ;;  %7089 = vmatprep.subr.bf16.mxu1 %v7503_v42 }
 0x6a5   : > { %v5081_v48 = vpack.c.bf16 %v5013_v63, %v5011_v35  ;;  %v4751_v8 = vadd.f32 %v4750_v4, %v9247_v46  ;;  %v4942_v58 = vadd.f32 %v4941_v60, %v4749_v57  ;;  %v5014_v52 = vmax.f32 %v4940_v15, 0.0 }
 0x6a6   : > { %v4752_v27 = vpop.f32.mrf.mxu1  ;;  %v4945_v62 = vpop.f32.mrf.mxu0 }
 0x6a7   : > { %v4944_v14 = vadd.f32 %v4943_v13, %v4751_v8  ;;  %v4753_v53 = vadd.f32 %v4752_v27, %v9244_v2  ;;  %5325 = vmatprep.mubr.bf16.mxu1 %v5081_v48  ;;  %v5015_v61 = vmax.f32 %v4942_v58, 0.0  ;;  %7090 = vmatpush3.bf16.msra.mxu1 %v7503_v42 }
 0x6a8   : > { %v4756_v9 = vpop.f32.mrf.mxu1  ;;  %v4949_v12 = vpop.f32.mrf.mxu0  ;;  %5326 = vmatmul.mubr.bf16.gmra.mxu1 %v5080_v49 }
 0x6a9   : > { %v4946_v36 = vadd.f32 %v4945_v62, %v4753_v53  ;;  %v5016_v21 = vmax.f32 %v4944_v14, 0.0  ;;  %v4757_v20 = vadd.f32 %v4756_v9, %v9247_v46 }
 0x6aa   : > { %v4758_v3 = vpop.f32.mrf.mxu1  ;;  %v4951_v17 = vpop.f32.mrf.mxu0 }
 0x6ab   : > { %v5017_v24 = vmax.f32 %v4946_v36, 0.0  ;;  %v4759_v10 = vadd.f32 %v4758_v3, %v9244_v2  ;;  %v5082_v28 = vpack.c.bf16 %v5016_v21, %v5014_v52  ;;  %v4950_v34 = vadd.f32 %v4949_v12, %v4757_v20 }
 0x6ac   : > { %v4760_v41 = vpop.f32.mrf.mxu1  ;;  %v4953_v22 = vpop.f32.mrf.mxu0 }
 0x6ad   : > { %v5083_v23 = vpack.c.bf16 %v5017_v24, %v5015_v61  ;;  %v4761_v26 = vadd.f32 %v4760_v41, %v9247_v46  ;;  %v4952_v6 = vadd.f32 %v4951_v17, %v4759_v10  ;;  %v5018_v19 = vmax.f32 %v4950_v34, 0.0 }
 0x6ae   : > { %v4762_v29 = vpop.f32.mrf.mxu1  ;;  %v4955_v38 = vpop.f32.mrf.mxu0 }
 0x6af   : > { %v4954_v30 = vadd.f32 %v4953_v22, %v4761_v26  ;;  %v4763_v32 = vadd.f32 %v4762_v29, %v9244_v2  ;;  %5333 = vmatprep.mubr.bf16.mxu1 %v5083_v23  ;;  %v5019_v45 = vmax.f32 %v4952_v6, 0.0  ;;  %v9340_v2 = vld [vmem:[%s9621_s8 + $0xf] ss:$0 sm:$0xff] }
 0x6b0   : > { %5334 = vmatmul.mubr.bf16.gmra.mxu1 %v5082_v28 }
 0x6b1   : > { %v4956_v39 = vadd.f32 %v4955_v38, %v4763_v32  ;;  %v5020_v37 = vmax.f32 %v4954_v30, 0.0 }
 0x6b3   : > { %v5021_v40 = vmax.f32 %v4956_v39, 0.0  ;;  %v5084_v43 = vpack.c.bf16 %v5020_v37, %v5018_v19 }
 0x6b5   : > { %v5085_v16 = vpack.c.bf16 %v5021_v40, %v5019_v45 }
 0x6b7   : > { %5341 = vmatprep.mubr.bf16.mxu1 %v5085_v16 }
 0x6b8   : > { %5342 = vmatmul.mubr.bf16.gmra.mxu1 %v5084_v43 }
 0x700   : > { %v6825_v46 = vpop.f32.mrf.mxu1 }
 0x702   : > { %v6826_v54 = vpop.f32.mrf.mxu1 }
 0x703   : > { %v6827_v11 = vadd.f32 %v6826_v54, %v6825_v46 }
 0x704   : > { %v6828_v31 = vpop.f32.mrf.mxu1 }
 0x705   : > { %v5224_v56 = vadd.f32 %v6827_v11, %v9340_v2 }
 0x706   : > { %v6829_v18 = vpop.f32.mrf.mxu1 }
 0x707   : > { %v6830_v25 = vadd.f32 %v6829_v18, %v6828_v31  ;;  %v5350_v50 = vmax.f32 %v5224_v56, 0.0 }
 0x708   : > { %v6831_v5 = vpop.f32.mrf.mxu1 }
 0x709   : > { %v5227_v33 = vadd.f32 %v6830_v25, %v9340_v2 }
 0x70a   : > { %v6832_v51 = vpop.f32.mrf.mxu1 }
 0x70b   : > { %v5351_v47 = vmax.f32 %v5227_v33, 0.0  ;;  %v6833_v55 = vadd.f32 %v6832_v51, %v6831_v5 }
 0x70c   : > { %v6834_v44 = vpop.f32.mrf.mxu1 }
 0x70d   : > { %v5398_v7 = vpack.c.bf16 %v5351_v47, %v5350_v50  ;;  %v5232_v35 = vadd.f32 %v6833_v55, %v9340_v2 }
 0x70e   : > { %v6835_v60 = vpop.f32.mrf.mxu1 }
 0x70f   : > { %v6836_v63 = vadd.f32 %v6835_v60, %v6834_v44  ;;  %7055 = vmatprep.mubr.bf16.mxu0 %v5398_v7  ;;  %v5352_v4 = vmax.f32 %v5232_v35, 0.0 }
 0x710   : > { %v6837_v57 = vpop.f32.mrf.mxu1 }
 0x711   : > { %v5235_v0 = vadd.f32 %v6836_v63, %v9340_v2 }
 0x712   : > { %v6838_v1 = vpop.f32.mrf.mxu1 }
 0x713   : > { %v5353_v13 = vmax.f32 %v5235_v0, 0.0  ;;  %v6839_v48 = vadd.f32 %v6838_v1, %v6837_v57 }
 0x714   : > { %v6840_v8 = vpop.f32.mrf.mxu1 }
 0x715   : > { %v5399_v49 = vpack.c.bf16 %v5353_v13, %v5352_v4  ;;  %v5240_v62 = vadd.f32 %v6839_v48, %v9340_v2 }
 0x716   : > { %v6841_v27 = vpop.f32.mrf.mxu1 }
 0x717   : > { %v6842_v58 = vadd.f32 %v6841_v27, %v6840_v8  ;;  %7056 = vmatmul.mubr.bf16.vlgmr.msra.gmra.mxu0 %v5399_v49  ;;  %v5354_v9 = vmax.f32 %v5240_v62, 0.0 }
 0x718   : > { %v6843_v14 = vpop.f32.mrf.mxu1 }
 0x719   : > { %v5243_v53 = vadd.f32 %v6842_v58, %v9340_v2 }
 0x71a   : > { %v6844_v15 = vpop.f32.mrf.mxu1 }
 0x71b   : > { %v5355_v12 = vmax.f32 %v5243_v53, 0.0  ;;  %v6845_v36 = vadd.f32 %v6844_v15, %v6843_v14 }
 0x71c   : > { %v6846_v21 = vpop.f32.mrf.mxu1 }
 0x71d   : > { %v5400_v3 = vpack.c.bf16 %v5355_v12, %v5354_v9  ;;  %v5248_v61 = vadd.f32 %v6845_v36, %v9340_v2 }
 0x71e   : > { %v6847_v17 = vpop.f32.mrf.mxu1 }
 0x71f   : > { %v6848_v24 = vadd.f32 %v6847_v17, %v6846_v21  ;;  %7059 = vmatprep.mubr.bf16.mxu0 %v5400_v3  ;;  %v5356_v41 = vmax.f32 %v5248_v61, 0.0 }
 0x720   : > { %v6849_v10 = vpop.f32.mrf.mxu1 }
 0x721   : > { %v5251_v52 = vadd.f32 %v6848_v24, %v9340_v2 }
 0x722   : > { %v6850_v20 = vpop.f32.mrf.mxu1 }
 0x723   : > { %v5357_v22 = vmax.f32 %v5251_v52, 0.0  ;;  %v6851_v23 = vadd.f32 %v6850_v20, %v6849_v10 }
 0x724   : > { %v6852_v26 = vpop.f32.mrf.mxu1 }
 0x725   : > { %v5401_v28 = vpack.c.bf16 %v5357_v22, %v5356_v41  ;;  %v5256_v6 = vadd.f32 %v6851_v23, %v9340_v2 }
 0x726   : > { %v6853_v29 = vpop.f32.mrf.mxu1 }
 0x727   : > { %v6854_v30 = vadd.f32 %v6853_v29, %v6852_v26  ;;  %7060 = vmatmul.mubr.bf16.gmra.mxu0 %v5401_v28  ;;  %v5358_v39 = vmax.f32 %v5256_v6, 0.0 }
 0x728   : > { %v6855_v32 = vpop.f32.mrf.mxu1 }
 0x729   : > { %v5259_v34 = vadd.f32 %v6854_v30, %v9340_v2 }
 0x72a   : > { %v6856_v38 = vpop.f32.mrf.mxu1 }
 0x72b   : > { %v5359_v37 = vmax.f32 %v5259_v34, 0.0  ;;  %v6857_v45 = vadd.f32 %v6856_v38, %v6855_v32 }
 0x72c   : > { %v6858_v40 = vpop.f32.mrf.mxu1 }
 0x72d   : > { %v5402_v19 = vpack.c.bf16 %v5359_v37, %v5358_v39  ;;  %v5264_v43 = vadd.f32 %v6857_v45, %v9340_v2 }
 0x72e   : > { %v6859_v16 = vpop.f32.mrf.mxu1 }
 0x72f   : > { %v6860_v46 = vadd.f32 %v6859_v16, %v6858_v40  ;;  %7063 = vmatprep.mubr.bf16.mxu0 %v5402_v19  ;;  %v5360_v18 = vmax.f32 %v5264_v43, 0.0 }
 0x730   : > { %v6861_v54 = vpop.f32.mrf.mxu1 }
 0x731   : > { %v5267_v11 = vadd.f32 %v6860_v46, %v9340_v2  ;;  %v7504_v46 = vld [vmem:[%s9620_s7 + $0x108] sm:$0xff]  }
 0x732   : > { %v6862_v31 = vpop.f32.mrf.mxu1  ;;  %7091 = vmatprep.subr.bf16.mxu1 %v7504_v46 }
 0x733   : > { %v5361_v56 = vmax.f32 %v5267_v11, 0.0  ;;  %v6863_v25 = vadd.f32 %v6862_v31, %v6861_v54  ;;  %7092 = vmatpush3.bf16.msra.mxu1 %v7504_v46 }
 0x734   : > { %v6864_v59 = vpop.f32.mrf.mxu1 }
 0x735   : > { %v5403_v42 = vpack.c.bf16 %v5361_v56, %v5360_v18  ;;  %v5272_v33 = vadd.f32 %v6863_v25, %v9340_v2  ;;  %v7505_v25 = vld [vmem:[%s9620_s7 + $0x100] sm:$0xff]  }
 0x736   : > { %v6865_v5 = vpop.f32.mrf.mxu1  ;;  %7093 = vmatprep.subr.bf16.mxu1 %v7505_v25 }
 0x737   : > { %v6866_v51 = vadd.f32 %v6865_v5, %v6864_v59  ;;  %7064 = vmatmul.mubr.bf16.gmra.mxu0 %v5403_v42  ;;  %v5362_v44 = vmax.f32 %v5272_v33, 0.0  ;;  %7094 = vmatpush3.bf16.msra.mxu1 %v7505_v25 }
 0x738   : > { %v6867_v50 = vpop.f32.mrf.mxu1 }
 0x739   : > { %v5275_v47 = vadd.f32 %v6866_v51, %v9340_v2 }
 0x73a   : > { %v6868_v55 = vpop.f32.mrf.mxu1 }
 0x73b   : > { %v5363_v7 = vmax.f32 %v5275_v47, 0.0  ;;  %v6869_v60 = vadd.f32 %v6868_v55, %v6867_v50 }
 0x73c   : > { %v6870_v35 = vpop.f32.mrf.mxu1 }
 0x73d   : > { %v5404_v63 = vpack.c.bf16 %v5363_v7, %v5362_v44  ;;  %v5280_v0 = vadd.f32 %v6869_v60, %v9340_v2 }
 0x73e   : > { %v6871_v57 = vpop.f32.mrf.mxu1 }
 0x73f   : > { %v6872_v1 = vadd.f32 %v6871_v57, %v6870_v35  ;;  %7067 = vmatprep.mubr.bf16.mxu0 %v5404_v63  ;;  %v5364_v8 = vmax.f32 %v5280_v0, 0.0 }
 0x740   : > { %v6873_v4 = vpop.f32.mrf.mxu1 }
 0x741   : > { %v5283_v13 = vadd.f32 %v6872_v1, %v9340_v2 }
 0x742   : > { %v6874_v48 = vpop.f32.mrf.mxu1 }
 0x743   : > { %v5365_v49 = vmax.f32 %v5283_v13, 0.0  ;;  %v6875_v27 = vadd.f32 %v6874_v48, %v6873_v4 }
 0x744   : > { %v6876_v62 = vpop.f32.mrf.mxu1 }
 0x745   : > { %v5405_v58 = vpack.c.bf16 %v5365_v49, %v5364_v8  ;;  %v5288_v53 = vadd.f32 %v6875_v27, %v9340_v2 }
 0x746   : > { %v6877_v14 = vpop.f32.mrf.mxu1 }
 0x747   : > { %v6878_v15 = vadd.f32 %v6877_v14, %v6876_v62  ;;  %7068 = vmatmul.mubr.bf16.gmra.mxu0 %v5405_v58  ;;  %v5366_v21 = vmax.f32 %v5288_v53, 0.0 }
 0x748   : > { %v6879_v9 = vpop.f32.mrf.mxu1 }
 0x749   : > { %v5291_v12 = vadd.f32 %v6878_v15, %v9340_v2 }
 0x74a   : > { %v6880_v36 = vpop.f32.mrf.mxu1 }
 0x74b   : > { %v5367_v3 = vmax.f32 %v5291_v12, 0.0  ;;  %v6881_v17 = vadd.f32 %v6880_v36, %v6879_v9 }
 0x74c   : > { %v6882_v61 = vpop.f32.mrf.mxu1 }
 0x74d   : > { %v5406_v24 = vpack.c.bf16 %v5367_v3, %v5366_v21  ;;  %v5296_v52 = vadd.f32 %v6881_v17, %v9340_v2 }
 0x74e   : > { %v6883_v10 = vpop.f32.mrf.mxu1 }
 0x74f   : > { %v6884_v20 = vadd.f32 %v6883_v10, %v6882_v61  ;;  %7071 = vmatprep.mubr.bf16.mxu0 %v5406_v24  ;;  %v5368_v26 = vmax.f32 %v5296_v52, 0.0 }
 0x750   : > { %v6885_v41 = vpop.f32.mrf.mxu1 }
 0x751   : > { %v5299_v22 = vadd.f32 %v6884_v20, %v9340_v2 }
 0x752   : > { %v6886_v23 = vpop.f32.mrf.mxu1 }
 0x753   : > { %v5369_v28 = vmax.f32 %v5299_v22, 0.0  ;;  %v6887_v29 = vadd.f32 %v6886_v23, %v6885_v41 }
 0x754   : > { %v6888_v6 = vpop.f32.mrf.mxu1 }
 0x755   : > { %v5407_v30 = vpack.c.bf16 %v5369_v28, %v5368_v26  ;;  %v5304_v34 = vadd.f32 %v6887_v29, %v9340_v2 }
 0x756   : > { %v6889_v32 = vpop.f32.mrf.mxu1 }
 0x757   : > { %v6890_v38 = vadd.f32 %v6889_v32, %v6888_v6  ;;  %7072 = vmatmul.mubr.bf16.gmra.mxu0 %v5407_v30  ;;  %v5370_v40 = vmax.f32 %v5304_v34, 0.0 }
 0x758   : > { %v6891_v39 = vpop.f32.mrf.mxu1 }
 0x759   : > { %v5307_v37 = vadd.f32 %v6890_v38, %v9340_v2 }
 0x75a   : > { %v6892_v45 = vpop.f32.mrf.mxu1 }
 0x75b   : > { %v5371_v19 = vmax.f32 %v5307_v37, 0.0  ;;  %v6893_v16 = vadd.f32 %v6892_v45, %v6891_v39  ;;  %v9389_v39 = vld [vmem:[%s9621_s8 + $0x10] ss:$0 sm:$0xff] }
 0x75c   : > { %v6894_v43 = vpop.f32.mrf.mxu1 }
 0x75d   : > { %v5408_v54 = vpack.c.bf16 %v5371_v19, %v5370_v40  ;;  %v5312_v31 = vadd.f32 %v6893_v16, %v9340_v2 }
 0x75e   : > { %v6895_v11 = vpop.f32.mrf.mxu1 }
 0x75f   : > { %v6896_v18 = vadd.f32 %v6895_v11, %v6894_v43  ;;  %7075 = vmatprep.mubr.bf16.mxu0 %v5408_v54  ;;  %v5372_v5 = vmax.f32 %v5312_v31, 0.0 }
 0x760   : > { %v6897_v56 = vpop.f32.mrf.mxu1 }
 0x761   : > { %v5315_v59 = vadd.f32 %v6896_v18, %v9340_v2 }
 0x762   : > { %v6898_v42 = vpop.f32.mrf.mxu1 }
 0x763   : > { %v5373_v33 = vmax.f32 %v5315_v59, 0.0  ;;  %v6899_v51 = vadd.f32 %v6898_v42, %v6897_v56 }
 0x764   : > { %v6900_v50 = vpop.f32.mrf.mxu1 }
 0x765   : > { %v5409_v47 = vpack.c.bf16 %v5373_v33, %v5372_v5  ;;  %v5320_v44 = vadd.f32 %v6899_v51, %v9340_v2 }
 0x766   : > { %v6901_v55 = vpop.f32.mrf.mxu1 }
 0x767   : > { %v6902_v7 = vadd.f32 %v6901_v55, %v6900_v50  ;;  %7076 = vmatmul.mubr.bf16.gmra.mxu0 %v5409_v47  ;;  %v5374_v57 = vmax.f32 %v5320_v44, 0.0 }
 0x768   : > { %v6903_v60 = vpop.f32.mrf.mxu1 }
 0x769   : > { %v5323_v35 = vadd.f32 %v6902_v7, %v9340_v2 }
 0x76a   : > { %v6904_v63 = vpop.f32.mrf.mxu1 }
 0x76b   : > { %v5375_v0 = vmax.f32 %v5323_v35, 0.0  ;;  %v6905_v1 = vadd.f32 %v6904_v63, %v6903_v60 }
 0x76c   : > { %v6906_v4 = vpop.f32.mrf.mxu1 }
 0x76d   : > { %v5410_v13 = vpack.c.bf16 %v5375_v0, %v5374_v57  ;;  %v5328_v8 = vadd.f32 %v6905_v1, %v9340_v2 }
 0x76e   : > { %v6907_v48 = vpop.f32.mrf.mxu1 }
 0x76f   : > { %v6908_v49 = vadd.f32 %v6907_v48, %v6906_v4  ;;  %7079 = vmatprep.mubr.bf16.mxu0 %v5410_v13  ;;  %v5376_v14 = vmax.f32 %v5328_v8, 0.0 }
 0x770   : > { %v6909_v27 = vpop.f32.mrf.mxu1 }
 0x771   : > { %v5331_v62 = vadd.f32 %v6908_v49, %v9340_v2 }
 0x772   : > { %v6910_v58 = vpop.f32.mrf.mxu1 }
 0x773   : > { %v5377_v53 = vmax.f32 %v5331_v62, 0.0  ;;  %v6911_v15 = vadd.f32 %v6910_v58, %v6909_v27 }
 0x774   : > { %v6912_v9 = vpop.f32.mrf.mxu1 }
 0x775   : > { %v5411_v12 = vpack.c.bf16 %v5377_v53, %v5376_v14  ;;  %v5336_v21 = vadd.f32 %v6911_v15, %v9340_v2 }
 0x776   : > { %v6913_v36 = vpop.f32.mrf.mxu1 }
 0x777   : > { %v6914_v3 = vadd.f32 %v6913_v36, %v6912_v9  ;;  %7080 = vmatmul.mubr.bf16.gmra.mxu0 %v5411_v12  ;;  %v5378_v10 = vmax.f32 %v5336_v21, 0.0 }
 0x778   : > { %v6915_v17 = vpop.f32.mrf.mxu1 }
 0x779   : > { %v5339_v61 = vadd.f32 %v6914_v3, %v9340_v2 }
 0x77a   : > { %v6916_v24 = vpop.f32.mrf.mxu1 }
 0x77b   : > { %v5379_v52 = vmax.f32 %v5339_v61, 0.0  ;;  %v6917_v20 = vadd.f32 %v6916_v24, %v6915_v17 }
 0x77c   : > { %v6918_v41 = vpop.f32.mrf.mxu1 }
 0x77d   : > { %v5412_v22 = vpack.c.bf16 %v5379_v52, %v5378_v10  ;;  %v5344_v26 = vadd.f32 %v6917_v20, %v9340_v2 }
 0x77e   : > { %v6919_v23 = vpop.f32.mrf.mxu1 }
 0x77f   : > { %v6920_v28 = vadd.f32 %v6919_v23, %v6918_v41  ;;  %7083 = vmatprep.mubr.bf16.mxu0 %v5412_v22  ;;  %v5380_v6 = vmax.f32 %v5344_v26, 0.0 }
 0x781   : > { %v5347_v29 = vadd.f32 %v6920_v28, %v9340_v2 }
 0x783   : > { %v5381_v30 = vmax.f32 %v5347_v29, 0.0 }
 0x785   : > { %v5413_v32 = vpack.c.bf16 %v5381_v30, %v5380_v6 }
 0x787   : > { %7084 = vmatmul.mubr.bf16.gmra.mxu0 %v5413_v32 }
 0x7d7   : > { %v7057_v34 = vpop.f32.mrf.mxu0 }
 0x7d8   : > { %v5512_v19 = vadd.f32 %v7057_v34, %v9389_v39 }
 0x7d9   : > { %v5503_v38 = vpop.f32.mrf.mxu0 }
 0x7da   : > { %v5504_v45 = vadd.f32 %v9389_v39, %v5503_v38  ;;  %v5632_v11 = vmax.f32 %v5512_v19, 0.0 }
 0x7db   : > { %v7058_v37 = vpop.f32.mrf.mxu0 }
 0x7dc   : > { %v5515_v40 = vadd.f32 %v7058_v37, %v9389_v39  ;;  %v5630_v46 = vmax.f32 %v5504_v45, 0.0 }
 0x7dd   : > { %v5506_v16 = vpop.f32.mrf.mxu0 }
 0x7de   : > { %v5507_v2 = vadd.f32 %v9389_v39, %v5506_v16  ;;  %v5633_v43 = vmax.f32 %v5515_v40, 0.0 }
 0x7e0   : > { %v5631_v54 = vmax.f32 %v5507_v2, 0.0  ;;  %v5671_v18 = vpack.c.bf16 %v5633_v43, %v5632_v11 }
 0x7e2   : > { %v5670_v31 = vpack.c.bf16 %v5631_v54, %v5630_v46 }
 0x7e4   : > { %7095 = vmatprep.mubr.msk.bf16.mxu1 %vm741_vm1, %v5670_v31 }
 0x7e5   : > { %7096 = vmatmul.mubr.msk.bf16.vlgmr.msra.gmra.mxu1 %vm741_vm1, %v5671_v18 }
 0x7e7   : > { %v7061_v56 = vpop.f32.mrf.mxu0 }
 0x7e8   : > { %v5528_v33 = vadd.f32 %v7061_v56, %v9389_v39 }
 0x7e9   : > { %v5519_v25 = vpop.f32.mrf.mxu0 }
 0x7ea   : > { %v5520_v42 = vadd.f32 %v9389_v39, %v5519_v25  ;;  %v5636_v7 = vmax.f32 %v5528_v33, 0.0 }
 0x7eb   : > { %v7062_v59 = vpop.f32.mrf.mxu0 }
 0x7ec   : > { %v5531_v5 = vadd.f32 %v7062_v59, %v9389_v39  ;;  %v5634_v55 = vmax.f32 %v5520_v42, 0.0 }
 0x7ed   : > { %v5522_v51 = vpop.f32.mrf.mxu0 }
 0x7ee   : > { %v5523_v50 = vadd.f32 %v9389_v39, %v5522_v51  ;;  %v5637_v47 = vmax.f32 %v5531_v5, 0.0 }
 0x7f0   : > { %v5635_v44 = vmax.f32 %v5523_v50, 0.0  ;;  %v5673_v35 = vpack.c.bf16 %v5637_v47, %v5636_v7 }
 0x7f2   : > { %v5672_v60 = vpack.c.bf16 %v5635_v44, %v5634_v55 }
 0x7f4   : > { %7099 = vmatprep.mubr.msk.bf16.mxu1 %vm741_vm1, %v5672_v60 }
 0x7f5   : > { %7100 = vmatmul.mubr.msk.bf16.gmra.mxu1 %vm741_vm1, %v5673_v35 }
 0x7f7   : > { %v7065_v63 = vpop.f32.mrf.mxu0 }
 0x7f8   : > { %v5544_v13 = vadd.f32 %v7065_v63, %v9389_v39 }
 0x7f9   : > { %v5535_v57 = vpop.f32.mrf.mxu0 }
 0x7fa   : > { %v5536_v1 = vadd.f32 %v9389_v39, %v5535_v57  ;;  %v5640_v58 = vmax.f32 %v5544_v13, 0.0 }
 0x7fb   : > { %v7066_v0 = vpop.f32.mrf.mxu0 }
 0x7fc   : > { %v5547_v4 = vadd.f32 %v7066_v0, %v9389_v39  ;;  %v5638_v27 = vmax.f32 %v5536_v1, 0.0 }
 0x7fd   : > { %v5538_v48 = vpop.f32.mrf.mxu0 }
 0x7fe   : > { %v5539_v8 = vadd.f32 %v9389_v39, %v5538_v48  ;;  %v5641_v49 = vmax.f32 %v5547_v4, 0.0 }
 0x800   : > { %v5639_v62 = vmax.f32 %v5539_v8, 0.0  ;;  %v5675_v53 = vpack.c.bf16 %v5641_v49, %v5640_v58 }
 0x802   : > { %v5674_v14 = vpack.c.bf16 %v5639_v62, %v5638_v27 }
 0x804   : > { %7103 = vmatprep.mubr.msk.bf16.mxu1 %vm741_vm1, %v5674_v14 }
 0x805   : > { %7104 = vmatmul.mubr.msk.bf16.gmra.mxu1 %vm741_vm1, %v5675_v53 }
 0x807   : > { %v7069_v15 = vpop.f32.mrf.mxu0 }
 0x808   : > { %v5560_v3 = vadd.f32 %v7069_v15, %v9389_v39 }
 0x809   : > { %v5551_v9 = vpop.f32.mrf.mxu0 }
 0x80a   : > { %v5552_v36 = vadd.f32 %v9389_v39, %v5551_v9  ;;  %v5644_v20 = vmax.f32 %v5560_v3, 0.0 }
 0x80b   : > { %v7070_v12 = vpop.f32.mrf.mxu0 }
 0x80c   : > { %v5563_v21 = vadd.f32 %v7070_v12, %v9389_v39  ;;  %v5642_v10 = vmax.f32 %v5552_v36, 0.0 }
 0x80d   : > { %v5554_v17 = vpop.f32.mrf.mxu0 }
 0x80e   : > { %v5555_v61 = vadd.f32 %v9389_v39, %v5554_v17  ;;  %v5645_v24 = vmax.f32 %v5563_v21, 0.0 }
 0x810   : > { %v5643_v52 = vmax.f32 %v5555_v61, 0.0  ;;  %v5677_v22 = vpack.c.bf16 %v5645_v24, %v5644_v20  ;;  %v5959_v61 = vpop.permute.xlu0 %5958  ;;  %v9442_v24 = vld [vmem:[%s9621_s8 + $0x11] ss:$0 sm:$0xff] }
 0x812   : > { %v5676_v41 = vpack.c.bf16 %v5643_v52, %v5642_v10  ;;  %v5961_v10 = vpop.permute.xlu1 %5960 }
 0x814   : > { %7107 = vmatprep.mubr.msk.bf16.mxu1 %vm741_vm1, %v5676_v41  ;;  %v5963_v20 = vpop.permute.xlu0 %5962 }
 0x815   : > { %7108 = vmatmul.mubr.msk.bf16.gmra.mxu1 %vm741_vm1, %v5677_v22 }
 0x817   : > { %v7073_v23 = vpop.f32.mrf.mxu0 }
 0x818   : > { %v5576_v30 = vadd.f32 %v7073_v23, %v9389_v39 }
 0x819   : > { %v5567_v26 = vpop.f32.mrf.mxu0 }
 0x81a   : > { %v5568_v29 = vadd.f32 %v9389_v39, %v5567_v26  ;;  %v5648_v40 = vmax.f32 %v5576_v30, 0.0  ;;  %v5965_v30 = vpop.permute.xlu1 %5964 }
 0x81b   : > { %v7074_v28 = vpop.f32.mrf.mxu0 }
 0x81c   : > { %v5579_v6 = vadd.f32 %v7074_v28, %v9389_v39  ;;  %v5646_v37 = vmax.f32 %v5568_v29, 0.0 }
 0x81d   : > { %v5570_v32 = vpop.f32.mrf.mxu0 }
 0x81e   : > { %v5571_v34 = vadd.f32 %v9389_v39, %v5570_v32  ;;  %v5649_v38 = vmax.f32 %v5579_v6, 0.0 }
 0x820   : > { %v5647_v45 = vmax.f32 %v5571_v34, 0.0  ;;  %v5679_v16 = vpack.c.bf16 %v5649_v38, %v5648_v40 }
 0x822   : > { %v5678_v19 = vpack.c.bf16 %v5647_v45, %v5646_v37 }
 0x824   : > { %7111 = vmatprep.mubr.msk.bf16.mxu1 %vm741_vm1, %v5678_v19 }
 0x825   : > { %7112 = vmatmul.mubr.msk.bf16.gmra.mxu1 %vm741_vm1, %v5679_v16  ;;  %v5967_v16 = vpop.permute.xlu0 %5966 }
 0x827   : > { %v7077_v2 = vpop.f32.mrf.mxu0 }
 0x828   : > { %v5592_v31 = vadd.f32 %v7077_v2, %v9389_v39  ;;  %v5969_v2 = vpop.permute.xlu1 %5968 }
 0x829   : > { %v5583_v43 = vpop.f32.mrf.mxu0 }
 0x82a   : > { %v5584_v54 = vadd.f32 %v9389_v39, %v5583_v43  ;;  %v5652_v5 = vmax.f32 %v5592_v31, 0.0 }
 0x82b   : > { %v7078_v46 = vpop.f32.mrf.mxu0 }
 0x82c   : > { %v5595_v11 = vadd.f32 %v7078_v46, %v9389_v39  ;;  %v5650_v59 = vmax.f32 %v5584_v54, 0.0  ;;  %v5971_v54 = vpop.permute.xlu0 %5970 }
 0x82d   : > { %v5586_v18 = vpop.f32.mrf.mxu0 }
 0x82e   : > { %v5587_v56 = vadd.f32 %v9389_v39, %v5586_v18  ;;  %v5653_v25 = vmax.f32 %v5595_v11, 0.0 }
 0x830   : > { %v5651_v42 = vmax.f32 %v5587_v56, 0.0  ;;  %v5681_v51 = vpack.c.bf16 %v5653_v25, %v5652_v5  ;;  %v5973_v5 = vpop.permute.xlu1 %5972 }
 0x832   : > { %v5680_v33 = vpack.c.bf16 %v5651_v42, %v5650_v59 }
 0x834   : > { %7115 = vmatprep.mubr.msk.bf16.mxu1 %vm741_vm1, %v5680_v33 }
 0x835   : > { %7116 = vmatmul.mubr.msk.bf16.gmra.mxu1 %vm741_vm1, %v5681_v51 }
 0x837   : > { %v7081_v50 = vpop.f32.mrf.mxu0 }
 0x838   : > { %v5608_v60 = vadd.f32 %v7081_v50, %v9389_v39 }
 0x839   : > { %v5599_v47 = vpop.f32.mrf.mxu0 }
 0x83a   : > { %v5600_v44 = vadd.f32 %v9389_v39, %v5599_v47  ;;  %v5656_v4 = vmax.f32 %v5608_v60, 0.0  ;;  %v5975_v60 = vpop.permute.xlu0 %5974 }
 0x83b   : > { %v7082_v55 = vpop.f32.mrf.mxu0 }
 0x83c   : > { %v5611_v7 = vadd.f32 %v7082_v55, %v9389_v39  ;;  %v5654_v0 = vmax.f32 %v5600_v44, 0.0 }
 0x83d   : > { %v5602_v35 = vpop.f32.mrf.mxu0 }
 0x83e   : > { %v5603_v63 = vadd.f32 %v9389_v39, %v5602_v35  ;;  %v5657_v57 = vmax.f32 %v5611_v7, 0.0  ;;  %v5977_v35 = vpop.permute.xlu1 %5976 }
 0x840   : > { %v5655_v1 = vmax.f32 %v5603_v63, 0.0  ;;  %v5683_v48 = vpack.c.bf16 %v5657_v57, %v5656_v4 }
 0x842   : > { %v5682_v13 = vpack.c.bf16 %v5655_v1, %v5654_v0  ;;  %v5979_v0 = vpop.permute.xlu0 %5978 }
 0x844   : > { %7119 = vmatprep.mubr.msk.bf16.mxu1 %vm741_vm1, %v5682_v13 }
 0x845   : > { %7120 = vmatmul.mubr.msk.bf16.gmra.mxu1 %vm741_vm1, %v5683_v48 }
 0x847   : > { %v7085_v8 = vpop.f32.mrf.mxu0 }
 0x848   : > { %v5624_v14 = vadd.f32 %v7085_v8, %v9389_v39 }
 0x849   : > { %v5615_v49 = vpop.f32.mrf.mxu0 }
 0x84a   : > { %v5616_v62 = vadd.f32 %v9389_v39, %v5615_v49  ;;  %v5660_v21 = vmax.f32 %v5624_v14, 0.0 }
 0x84b   : > { %v7086_v27 = vpop.f32.mrf.mxu0 }
 0x84c   : > { %v5627_v58 = vadd.f32 %v7086_v27, %v9389_v39  ;;  %v5658_v12 = vmax.f32 %v5616_v62, 0.0  ;;  %v5981_v62 = vpop.permute.xlu1 %5980 }
 0x84d   : > { %v5618_v53 = vpop.f32.mrf.mxu0 }
 0x84e   : > { %v5619_v15 = vadd.f32 %v9389_v39, %v5618_v53  ;;  %v5661_v9 = vmax.f32 %v5627_v58, 0.0 }
 0x850   : > { %v5659_v36 = vmax.f32 %v5619_v15, 0.0  ;;  %v5685_v17 = vpack.c.bf16 %v5661_v9, %v5660_v21  ;;  %v5983_v21 = vpop.permute.xlu0 %5982 }
 0x852   : > { %v5684_v3 = vpack.c.bf16 %v5659_v36, %v5658_v12 }
 0x854   : > { %7123 = vmatprep.mubr.msk.bf16.mxu1 %vm741_vm1, %v5684_v3  ;;  %v5985_v3 = vpop.permute.xlu1 %5984 }
 0x855   : > { %7124 = vmatmul.mubr.msk.bf16.gmra.mxu1 %vm741_vm1, %v5685_v17 }
 0x8a5   : > { %v7097_v52 = vpop.f32.mrf.mxu1 }
 0x8a6   : > { %v5808_v39 = vadd.f32 %v7097_v52, %v9442_v24 }
 0x8a7   : > { %v5799_v41 = vpop.f32.mrf.mxu1 }
 0x8a8   : > { %v6056_v22 = vsel %vm444_vm0, %v5808_v39, %v5963_v20  ;;  %v5800_v23 = vadd.f32 %v9442_v24, %v5799_v41 }
 0x8a9   : > { %v6089_v26 = vsel %vm6086_vm5, %v6056_v22, %v5963_v20  ;;  %v7098_v28 = vpop.f32.mrf.mxu1 }
 0x8aa   : > { %6122 = vst.msk [vmem:[%s9449_s28 + $0x10] sm:$0xff] %vm6119_vm6, %v6089_v26  ;;  %v6054_v29 = vsel %vm444_vm0, %v5800_v23, %v5959_v61  ;;  %v5811_v6 = vadd.f32 %v7098_v28, %v9442_v24  ;;  %v5989_v28 = vpop.permute.xlu1 %5988 }
 0x8ab   : > { %v6087_v32 = vsel %vm6086_vm5, %v6054_v29, %v5959_v61  ;;  %v5802_v34 = vpop.f32.mrf.mxu1 }
 0x8ac   : > { %6120 = vst.msk [vmem:[%s9449_s28] sm:$0xff] %vm6119_vm6, %v6087_v32  ;;  %v6057_v38 = vsel %vm444_vm0, %v5811_v6, %v5965_v30  ;;  %v5803_v37 = vadd.f32 %v9442_v24, %v5802_v34 }
 0x8ad   : > { %v6090_v45 = vsel %vm6086_vm5, %v6057_v38, %v5965_v30 }
 0x8ae   : > { %6123 = vst.msk [vmem:[%s9449_s28 + $0x18] sm:$0xff] %vm6119_vm6, %v6090_v45  ;;  %v6055_v40 = vsel %vm444_vm0, %v5803_v37, %v5961_v10 }
 0x8af   : > { %v6088_v19 = vsel %vm6086_vm5, %v6055_v40, %v5961_v10  ;;  %v5987_v10 = vpop.permute.xlu0 %5986  ;;  %v5993_v40 = vpop.permute.xlu1 %5992 }
 0x8b0   : > { %6121 = vst.msk [vmem:[%s9449_s28 + $0x8] sm:$0xff] %vm6119_vm6, %v6088_v19 }
 0x8b3   : > { %v5991_v45 = vpop.permute.xlu0 %5990 }
 0x8b5   : > { %v7101_v43 = vpop.f32.mrf.mxu1 }
 0x8b6   : > { %v5824_v46 = vadd.f32 %v7101_v43, %v9442_v24 }
 0x8b7   : > { %v5815_v11 = vpop.f32.mrf.mxu1 }
 0x8b8   : > { %v6060_v31 = vsel %vm444_vm0, %v5824_v46, %v5971_v54  ;;  %v5816_v18 = vadd.f32 %v9442_v24, %v5815_v11 }
 0x8b9   : > { %v6093_v56 = vsel %vm6086_vm5, %v6060_v31, %v5971_v54  ;;  %v7102_v25 = vpop.f32.mrf.mxu1 }
 0x8ba   : > { %6126 = vst.msk [vmem:[%s9449_s28 + $0x30] sm:$0xff] %vm6119_vm6, %v6093_v56  ;;  %v6058_v59 = vsel %vm444_vm0, %v5816_v18, %v5967_v16  ;;  %v5827_v42 = vadd.f32 %v7102_v25, %v9442_v24  ;;  %v5997_v25 = vpop.permute.xlu1 %5996 }
 0x8bb   : > { %v6091_v33 = vsel %vm6086_vm5, %v6058_v59, %v5967_v16  ;;  %v5818_v51 = vpop.f32.mrf.mxu1 }
 0x8bc   : > { %6124 = vst.msk [vmem:[%s9449_s28 + $0x20] sm:$0xff] %vm6119_vm6, %v6091_v33  ;;  %v6061_v50 = vsel %vm444_vm0, %v5827_v42, %v5973_v5  ;;  %v5819_v47 = vadd.f32 %v9442_v24, %v5818_v51 }
 0x8bd   : > { %v6094_v55 = vsel %vm6086_vm5, %v6061_v50, %v5973_v5 }
 0x8be   : > { %6127 = vst.msk [vmem:[%s9449_s28 + $0x38] sm:$0xff] %vm6119_vm6, %v6094_v55  ;;  %v6059_v44 = vsel %vm444_vm0, %v5819_v47, %v5969_v2 }
 0x8bf   : > { %v6092_v7 = vsel %vm6086_vm5, %v6059_v44, %v5969_v2  ;;  %v5995_v2 = vpop.permute.xlu0 %5994  ;;  %v6001_v44 = vpop.permute.xlu1 %6000 }
 0x8c0   : > { %6125 = vst.msk [vmem:[%s9449_s28 + $0x28] sm:$0xff] %vm6119_vm6, %v6092_v7 }
 0x8c3   : > { %v5999_v55 = vpop.permute.xlu0 %5998 }
 0x8c5   : > { %v7105_v63 = vpop.f32.mrf.mxu1 }
 0x8c6   : > { %v5840_v57 = vadd.f32 %v7105_v63, %v9442_v24 }
 0x8c7   : > { %v5831_v1 = vpop.f32.mrf.mxu1 }
 0x8c8   : > { %v6064_v4 = vsel %vm444_vm0, %v5840_v57, %v5979_v0  ;;  %v5832_v13 = vadd.f32 %v9442_v24, %v5831_v1 }
 0x8c9   : > { %v6097_v48 = vsel %vm6086_vm5, %v6064_v4, %v5979_v0  ;;  %v7106_v8 = vpop.f32.mrf.mxu1 }
 0x8ca   : > { %6130 = vst.msk [vmem:[%s9449_s28 + $0x50] sm:$0xff] %vm6119_vm6, %v6097_v48  ;;  %v6062_v49 = vsel %vm444_vm0, %v5832_v13, %v5975_v60  ;;  %v5843_v27 = vadd.f32 %v7106_v8, %v9442_v24  ;;  %v6005_v8 = vpop.permute.xlu1 %6004 }
 0x8cb   : > { %v6095_v58 = vsel %vm6086_vm5, %v6062_v49, %v5975_v60  ;;  %v5834_v14 = vpop.f32.mrf.mxu1 }
 0x8cc   : > { %6128 = vst.msk [vmem:[%s9449_s28 + $0x40] sm:$0xff] %vm6119_vm6, %v6095_v58  ;;  %v6065_v53 = vsel %vm444_vm0, %v5843_v27, %v5981_v62  ;;  %v5835_v15 = vadd.f32 %v9442_v24, %v5834_v14 }
 0x8cd   : > { %v6098_v9 = vsel %vm6086_vm5, %v6065_v53, %v5981_v62 }
 0x8ce   : > { %6131 = vst.msk [vmem:[%s9449_s28 + $0x58] sm:$0xff] %vm6119_vm6, %v6098_v9  ;;  %v6063_v12 = vsel %vm444_vm0, %v5835_v15, %v5977_v35 }
 0x8cf   : > { %v6096_v36 = vsel %vm6086_vm5, %v6063_v12, %v5977_v35  ;;  %v6003_v35 = vpop.permute.xlu0 %6002  ;;  %v6009_v12 = vpop.permute.xlu1 %6008 }
 0x8d0   : > { %6129 = vst.msk [vmem:[%s9449_s28 + $0x48] sm:$0xff] %vm6119_vm6, %v6096_v36 }
 0x8d3   : > { %v6007_v9 = vpop.permute.xlu0 %6006 }
 0x8d5   : > { %v7109_v17 = vpop.f32.mrf.mxu1 }
 0x8d6   : > { %v5856_v61 = vadd.f32 %v7109_v17, %v9442_v24 }
 0x8d7   : > { %v5847_v52 = vpop.f32.mrf.mxu1 }
 0x8d8   : > { %v6068_v39 = vsel %vm444_vm0, %v5856_v61, %v5987_v10  ;;  %v5848_v20 = vadd.f32 %v9442_v24, %v5847_v52 }
 0x8d9   : > { %v6101_v41 = vsel %vm6086_vm5, %v6068_v39, %v5987_v10  ;;  %v7110_v22 = vpop.f32.mrf.mxu1 }
 0x8da   : > { %6134 = vst.msk [vmem:[%s9449_s28 + $0x70] sm:$0xff] %vm6119_vm6, %v6101_v41  ;;  %v6066_v23 = vsel %vm444_vm0, %v5848_v20, %v5983_v21  ;;  %v5859_v26 = vadd.f32 %v7110_v22, %v9442_v24  ;;  %v6013_v22 = vpop.permute.xlu1 %6012 }
 0x8db   : > { %v6099_v29 = vsel %vm6086_vm5, %v6066_v23, %v5983_v21  ;;  %v5850_v6 = vpop.f32.mrf.mxu1 }
 0x8dc   : > { %6132 = vst.msk [vmem:[%s9449_s28 + $0x60] sm:$0xff] %vm6119_vm6, %v6099_v29  ;;  %v6069_v30 = vsel %vm444_vm0, %v5859_v26, %v5989_v28  ;;  %v5851_v32 = vadd.f32 %v9442_v24, %v5850_v6 }
 0x8dd   : > { %v6102_v34 = vsel %vm6086_vm5, %v6069_v30, %v5989_v28 }
 0x8de   : > { %6135 = vst.msk [vmem:[%s9449_s28 + $0x78] sm:$0xff] %vm6119_vm6, %v6102_v34  ;;  %v6067_v38 = vsel %vm444_vm0, %v5851_v32, %v5985_v3 }
 0x8df   : > { %v6100_v37 = vsel %vm6086_vm5, %v6067_v38, %v5985_v3  ;;  %v6011_v3 = vpop.permute.xlu0 %6010  ;;  %v6017_v38 = vpop.permute.xlu1 %6016 }
 0x8e0   : > { %6133 = vst.msk [vmem:[%s9449_s28 + $0x68] sm:$0xff] %vm6119_vm6, %v6100_v37 }
 0x8e3   : > { %v6015_v34 = vpop.permute.xlu0 %6014 }
 0x8e5   : > { %v7113_v19 = vpop.f32.mrf.mxu1 }
 0x8e6   : > { %v5872_v16 = vadd.f32 %v7113_v19, %v9442_v24 }
 0x8e7   : > { %v5863_v43 = vpop.f32.mrf.mxu1 }
 0x8e8   : > { %v6072_v46 = vsel %vm444_vm0, %v5872_v16, %v5995_v2  ;;  %v5864_v54 = vadd.f32 %v9442_v24, %v5863_v43 }
 0x8e9   : > { %v6105_v11 = vsel %vm6086_vm5, %v6072_v46, %v5995_v2  ;;  %v7114_v31 = vpop.f32.mrf.mxu1 }
 0x8ea   : > { %6138 = vst.msk [vmem:[%s9449_s28 + $0x90] sm:$0xff] %vm6119_vm6, %v6105_v11  ;;  %v6070_v18 = vsel %vm444_vm0, %v5864_v54, %v5991_v45  ;;  %v5875_v56 = vadd.f32 %v7114_v31, %v9442_v24  ;;  %v6021_v31 = vpop.permute.xlu1 %6020 }
 0x8eb   : > { %v6103_v59 = vsel %vm6086_vm5, %v6070_v18, %v5991_v45  ;;  %v5866_v42 = vpop.f32.mrf.mxu1 }
 0x8ec   : > { %6136 = vst.msk [vmem:[%s9449_s28 + $0x80] sm:$0xff] %vm6119_vm6, %v6103_v59  ;;  %v6073_v5 = vsel %vm444_vm0, %v5875_v56, %v5997_v25  ;;  %v5867_v33 = vadd.f32 %v9442_v24, %v5866_v42 }
 0x8ed   : > { %v6106_v51 = vsel %vm6086_vm5, %v6073_v5, %v5997_v25 }
 0x8ee   : > { %6139 = vst.msk [vmem:[%s9449_s28 + $0x98] sm:$0xff] %vm6119_vm6, %v6106_v51  ;;  %v6071_v50 = vsel %vm444_vm0, %v5867_v33, %v5993_v40 }
 0x8ef   : > { %v6104_v47 = vsel %vm6086_vm5, %v6071_v50, %v5993_v40  ;;  %v6019_v40 = vpop.permute.xlu0 %6018 }
 0x8f0   : > { %6137 = vst.msk [vmem:[%s9449_s28 + $0x88] sm:$0xff] %vm6119_vm6, %v6104_v47 }
 0x8f5   : > { %v7117_v7 = vpop.f32.mrf.mxu1 }
 0x8f6   : > { %v5888_v60 = vadd.f32 %v7117_v7, %v9442_v24 }
 0x8f7   : > { %v5879_v63 = vpop.f32.mrf.mxu1 }
 0x8f8   : > { %v6076_v57 = vsel %vm444_vm0, %v5888_v60, %v6003_v35  ;;  %v5880_v0 = vadd.f32 %v9442_v24, %v5879_v63 }
 0x8f9   : > { %v6109_v1 = vsel %vm6086_vm5, %v6076_v57, %v6003_v35  ;;  %v7118_v4 = vpop.f32.mrf.mxu1 }
 0x8fa   : > { %6142 = vst.msk [vmem:[%s9449_s28 + $0xb0] sm:$0xff] %vm6119_vm6, %v6109_v1  ;;  %v6074_v13 = vsel %vm444_vm0, %v5880_v0, %v5999_v55  ;;  %v5891_v48 = vadd.f32 %v7118_v4, %v9442_v24 }
 0x8fb   : > { %v6107_v49 = vsel %vm6086_vm5, %v6074_v13, %v5999_v55  ;;  %v5882_v27 = vpop.f32.mrf.mxu1 }
 0x8fc   : > { %6140 = vst.msk [vmem:[%s9449_s28 + $0xa0] sm:$0xff] %vm6119_vm6, %v6107_v49  ;;  %v6077_v62 = vsel %vm444_vm0, %v5891_v48, %v6005_v8  ;;  %v5883_v58 = vadd.f32 %v9442_v24, %v5882_v27 }
 0x8fd   : > { %v6110_v14 = vsel %vm6086_vm5, %v6077_v62, %v6005_v8 }
 0x8fe   : > { %6143 = vst.msk [vmem:[%s9449_s28 + $0xb8] sm:$0xff] %vm6119_vm6, %v6110_v14  ;;  %v6075_v53 = vsel %vm444_vm0, %v5883_v58, %v6001_v44 }
 0x8ff   : > { %v6108_v15 = vsel %vm6086_vm5, %v6075_v53, %v6001_v44 }
 0x900   : > { %6141 = vst.msk [vmem:[%s9449_s28 + $0xa8] sm:$0xff] %vm6119_vm6, %v6108_v15 }
 0x905   : > { %v7121_v36 = vpop.f32.mrf.mxu1 }
 0x906   : > { %v5904_v21 = vadd.f32 %v7121_v36, %v9442_v24 }
 0x907   : > { %v5895_v17 = vpop.f32.mrf.mxu1 }
 0x908   : > { %v6080_v61 = vsel %vm444_vm0, %v5904_v21, %v6011_v3  ;;  %v5896_v10 = vadd.f32 %v9442_v24, %v5895_v17 }
 0x909   : > { %v6113_v52 = vsel %vm6086_vm5, %v6080_v61, %v6011_v3  ;;  %v7122_v39 = vpop.f32.mrf.mxu1 }
 0x90a   : > { %6146 = vst.msk [vmem:[%s9449_s28 + $0xd0] sm:$0xff] %vm6119_vm6, %v6113_v52  ;;  %v6078_v20 = vsel %vm444_vm0, %v5896_v10, %v6007_v9  ;;  %v5907_v41 = vadd.f32 %v7122_v39, %v9442_v24 }
 0x90b   : > { %v6111_v23 = vsel %vm6086_vm5, %v6078_v20, %v6007_v9  ;;  %v5898_v26 = vpop.f32.mrf.mxu1 }
 0x90c   : > { %6144 = vst.msk [vmem:[%s9449_s28 + $0xc0] sm:$0xff] %vm6119_vm6, %v6111_v23  ;;  %v6081_v28 = vsel %vm444_vm0, %v5907_v41, %v6013_v22  ;;  %v5899_v29 = vadd.f32 %v9442_v24, %v5898_v26 }
 0x90d   : > { %v6114_v6 = vsel %vm6086_vm5, %v6081_v28, %v6013_v22 }
 0x90e   : > { %6147 = vst.msk [vmem:[%s9449_s28 + $0xd8] sm:$0xff] %vm6119_vm6, %v6114_v6  ;;  %v6079_v30 = vsel %vm444_vm0, %v5899_v29, %v6009_v12 }
 0x90f   : > { %v6112_v32 = vsel %vm6086_vm5, %v6079_v30, %v6009_v12 }
 0x910   : > { %6145 = vst.msk [vmem:[%s9449_s28 + $0xc8] sm:$0xff] %vm6119_vm6, %v6112_v32 }
 0x915   : > { %v7125_v37 = vpop.f32.mrf.mxu1 }
 0x916   : > { %v5920_v45 = vadd.f32 %v7125_v37, %v9442_v24 }
 0x917   : > { %v5911_v19 = vpop.f32.mrf.mxu1 }
 0x918   : > { %v6084_v16 = vsel %vm444_vm0, %v5920_v45, %v6019_v40  ;;  %v5912_v2 = vadd.f32 %v9442_v24, %v5911_v19 }
 0x919   : > { %v6117_v43 = vsel %vm6086_vm5, %v6084_v16, %v6019_v40  ;;  %v7126_v46 = vpop.f32.mrf.mxu1 }
 0x91a   : > { %6150 = vst.msk [vmem:[%s9449_s28 + $0xf0] sm:$0xff] %vm6119_vm6, %v6117_v43  ;;  %v6082_v54 = vsel %vm444_vm0, %v5912_v2, %v6015_v34  ;;  %v5923_v11 = vadd.f32 %v7126_v46, %v9442_v24 }
 0x91b   : > { %v6115_v18 = vsel %vm6086_vm5, %v6082_v54, %v6015_v34  ;;  %v5914_v56 = vpop.f32.mrf.mxu1 }
 0x91c   : > { %6148 = vst.msk [vmem:[%s9449_s28 + $0xe0] sm:$0xff] %vm6119_vm6, %v6115_v18  ;;  %v6085_v25 = vsel %vm444_vm0, %v5923_v11, %v6021_v31  ;;  %v5915_v59 = vadd.f32 %v9442_v24, %v5914_v56 }
 0x91d   : > { %v6118_v42 = vsel %vm6086_vm5, %v6085_v25, %v6021_v31 }
 0x91e   : > { %6151 = vst.msk [vmem:[%s9449_s28 + $0xf8] sm:$0xff] %vm6119_vm6, %v6118_v42  ;;  %v6083_v5 = vsel %vm444_vm0, %v5915_v59, %v6017_v38 }
 0x91f   : > { %v6116_v33 = vsel %vm6086_vm5, %v6083_v5, %v6017_v38 }
 0x920   : > { %6149 = vst.msk [vmem:[%s9449_s28 + $0xe8] sm:$0xff] %vm6119_vm6, %v6116_v33 }
 0x921 PF: > { %s19_s30 = sadd.s32 1, %s7576_s30  }
 0x922   : > { %p16_p4 = scmp.ge.s32.totalorder %s19_s30, 4  }
 0x924   :  { %18 = sbr.rel (!%p16_p4) target bundleno = 1 (0x1), region = 92 }

</bundles_post_ra>
